<compile_context>
chip_gen: v6e
topology: v6e:2x2x1
jax: 0.10.0
libtpu: 0.0.40
codegen_flags: <defaults>
</compile_context>

<pallas_src>
import functools

import jax
import jax.numpy as jnp
from jax import lax
from jax.experimental import pallas as pl
from jax.experimental.pallas import tpu as pltpu


def _round_up(x, m):
    return ((x + m - 1) // m) * m


def _cdiv(a, b):
    return -(-a // b)


def _tpu_generation():
    """Coarse per-generation tuning knobs (num TensorCores / chip, VMEM cap, MXU rows)."""
    kind = ""
    try:
        kind = jax.devices()[0].device_kind.lower()
    except Exception:
        pass
    if "v7" in kind or "7x" in kind:
        return {"num_tc": 2, "vmem_cap": 48 << 20, "max_rows": 256}
    if "v6" in kind:
        return {"num_tc": 1, "vmem_cap": 100 << 20, "max_rows": 256}
    # v5e / v4 / unknown: conservative single-TC, 128-row MXU.
    return {"num_tc": 1, "vmem_cap": 100 << 20, "max_rows": 128}


def _choose_blocking(batch, info):
    """Pick (block_b, num_blocks): fill the MXU rows, one block per TensorCore, and
    only split across TCs when there is enough real batch to justify the padding."""
    bp16 = _round_up(max(batch, 1), 16)          # bf16 LHS packs 16 sublanes / vreg
    num_blocks = info["num_tc"] if bp16 >= 16 * info["num_tc"] else 1
    block_b = _round_up(_cdiv(bp16, num_blocks), 16)
    if block_b > info["max_rows"]:
        block_b = info["max_rows"]
        num_blocks = _cdiv(bp16, block_b)
    return block_b, num_blocks


def _reorder_pad_gates(w, h_dim, h_pad):
    """[..., 5*h_dim] in PyTorch gate order [i,o,f,u,r] -> [..., 5*h_pad] in kernel
    order [i,o,f,r,u], each gate block zero-padded from h_dim to h_pad lanes."""
    blocks = jnp.split(w, 5, axis=-1)
    blocks = [blocks[k] for k in (0, 1, 2, 4, 3)]
    pad = [(0, 0)] * (w.ndim - 1) + [(0, h_pad - h_dim)]
    return jnp.concatenate([jnp.pad(b, pad) for b in blocks], axis=-1)


def chain_lstm_kernel(feat_ref, wbig_ref, bbig_ref, wh_ref, out_ref, xg_ref,
                      *, h_pad, n_steps, block_b, unroll):
    """Highway-LSTM chain over n_steps, batched over block_b independent chains.

    feat_ref : [N, Bb, Fp]   bf16, features gathered in chain-processing order
    wbig_ref : [Fp, 6*Hp]    fused [Wx(i,o,f,r,u) | Wp], lane-padded, bf16
    bbig_ref : [1, 6*Hp]     fused bias (bx + bh for gates, bp for px), f32
    wh_ref   : [Hp, 5*Hp]    recurrent weight, gate-reordered, padded, bf16
    out_ref  : [N, Bb, Hp]   h_final per (step, chain), bf16
    xg_ref   : [N, Bb, 6*Hp] scratch: batched feed-forward projections, bf16
    """
    h4, h5 = 4 * h_pad, 5 * h_pad
    f_pad = feat_ref.shape[-1]

    # One batched MXU matmul produces gate preactivations AND the highway projection
    # for every (step, chain); bx + bh and bp are folded in here (not in the loop).
    feats2d = feat_ref[...].reshape(n_steps * block_b, f_pad)
    xg = jnp.dot(feats2d, wbig_ref[...], preferred_element_type=jnp.float32)
    xg = (xg + bbig_ref[...]).astype(xg_ref.dtype)
    xg_ref[...] = xg.reshape(n_steps, block_b, 6 * h_pad)

    h0 = jnp.zeros((block_b, h_pad), jnp.float32)
    c0 = jnp.zeros((block_b, h_pad), jnp.float32)

    def step(t, carry):
        h_prev, c_prev = carry                                    # f32 carries
        pre = xg_ref[t]                                           # [Bb, 6Hp] bf16
        # Deliberate bf16 x bf16 -> f32 recurrent matmul on the serial critical path.
        rec = jnp.dot(h_prev.astype(wh_ref.dtype), wh_ref[...],
                      preferred_element_type=jnp.float32)         # [Bb, 5Hp] f32
        gates = pre[:, :h5].astype(jnp.float32) + rec
        px = pre[:, h5:].astype(jnp.float32)
        sig = jax.nn.sigmoid(gates[:, :h4])                       # i|o|f|r in one go
        u = jnp.tanh(gates[:, h4:h5])
        i = sig[:, :h_pad]
        o = sig[:, h_pad:2 * h_pad]
        f = sig[:, 2 * h_pad:3 * h_pad]
        r = sig[:, 3 * h_pad:4 * h_pad]
        c = i * u + f * c_prev                                    # f32
        h = o * jnp.tanh(c)
        h_final = px + r * (h - px)                               # == r*h + (1-r)*px
        out_ref[t] = h_final.astype(out_ref.dtype)                # lane-dense bf16 store
        return (h_final, c)

    lax.fori_loop(0, n_steps, step, (h0, c0), unroll=unroll)


def run_chain_lstm(feats, wbig, bbig, wh, *, h_pad, block_b, num_blocks,
                   out_dtype, unroll, vmem_cap):
    """feats: [N, Bp, Fp] with Bp == block_b * num_blocks. Returns [N, Bp, Hp]."""
    n, b, f_pad = feats.shape
    assert b == block_b * num_blocks
    kernel = functools.partial(chain_lstm_kernel, h_pad=h_pad, n_steps=n,
                               block_b=block_b, unroll=unroll)

    # Per-grid-block resident footprint (weights + one feats/out block double-buffered
    # + the bf16 xg scratch), with headroom; capped per generation.
    nbytes = lambda a: int(a.size) * a.dtype.itemsize
    wbytes = nbytes(wbig) + nbytes(bbig) + nbytes(wh)
    blk_in = n * block_b * f_pad * feats.dtype.itemsize
    blk_out = n * block_b * h_pad * jnp.dtype(out_dtype).itemsize
    scratch = n * block_b * 6 * h_pad * 2
    vmem_limit = int(min(max(2 * (wbytes + blk_in + blk_out) + scratch + (4 << 20),
                             32 << 20), vmem_cap))

    return pl.pallas_call(
        kernel,
        out_shape=jax.ShapeDtypeStruct((n, b, h_pad), out_dtype),
        grid_spec=pltpu.PrefetchScalarGridSpec(
            num_scalar_prefetch=0,
            grid=(num_blocks,),
            in_specs=[
                pl.BlockSpec((n, block_b, f_pad), lambda g: (0, g, 0)),
                pl.BlockSpec(wbig.shape, lambda g: (0, 0)),
                pl.BlockSpec(bbig.shape, lambda g: (0, 0)),
                pl.BlockSpec(wh.shape, lambda g: (0, 0)),
            ],
            out_specs=pl.BlockSpec((n, block_b, h_pad), lambda g: (0, g, 0)),
            scratch_shapes=[pltpu.VMEM((n, block_b, 6 * h_pad), jnp.bfloat16)],
        ),
        compiler_params=pltpu.CompilerParams(
            # One block per TensorCore on v7x; single block (grid=1) on v5e/v6e.
            dimension_semantics=("parallel",) if num_blocks > 1 else ("arbitrary",),
            vmem_limit_bytes=vmem_limit,
        ),
    )(feats, wbig, bbig, wh)


class ChainLSTMPallas:
    """Mirror of ChainLSTM(direction, feat_dim, h_dim, use_highway=True) forward,
    batched over B independent chains (e.g. images)."""

    def __init__(self, in_dim, out_dim, direction, key, *,
                 block_chains=None, weight_dtype=jnp.bfloat16,
                 out_dtype=jnp.bfloat16, unroll=None):
        assert direction in ("forward", "backward")
        if block_chains is not None:
            assert block_chains % 16 == 0  # bf16 LHS packs 16 sublanes per vreg
        self.in_dim = in_dim
        self.h_dim = out_dim
        self.direction = direction
        self.block_chains = block_chains      # None -> generation-aware auto sizing
        self.weight_dtype = weight_dtype
        self.out_dtype = out_dtype
        self.unroll = unroll                  # None -> full unroll for small n_steps

        H = out_dim
        k1, k2, k3 = jax.random.split(key, 3)
        # Deterministic synthetic init (stand-in for block_orthogonal), stored in the
        # PyTorch gate order [i, o, f, u, r] with the y = x @ W + b convention.
        self.wx = (jax.random.normal(k1, (in_dim, 5 * H), jnp.float32)
                   / jnp.sqrt(jnp.float32(in_dim)))
        self.wh = (jax.random.normal(k2, (H, 5 * H), jnp.float32)
                   / jnp.sqrt(jnp.float32(H)))
        self.wp = (jax.random.normal(k3, (in_dim, H), jnp.float32)
                   / jnp.sqrt(jnp.float32(in_dim)))
        self.bx = jnp.zeros((1, 5 * H), jnp.float32)
        bh = jnp.zeros((5 * H,), jnp.float32).at[2 * H:3 * H].set(1.0)  # forget bias
        self.bh = bh[None, :]
        self.bp = jnp.zeros((1, H), jnp.float32)

        # ---- kernel-side parameters: gate-reordered, lane-padded, fused ----
        self.h_pad = _round_up(H, 128)
        self.f_pad = _round_up(in_dim, 128)
        Hp = self.h_pad

        wx_r = _reorder_pad_gates(self.wx, H, Hp)                  # [F, 5Hp]
        wp_p = jnp.pad(self.wp, ((0, 0), (0, Hp - H)))             # [F, Hp]
        wbig = jnp.concatenate([wx_r, wp_p], axis=1)               # [F, 6Hp]
        self.wbig = jnp.pad(wbig, ((0, self.f_pad - in_dim), (0, 0))).astype(weight_dtype)

        b_gates = _reorder_pad_gates(self.bx + self.bh, H, Hp)     # [1, 5Hp] (bh folded)
        bp_p = jnp.pad(self.bp, ((0, 0), (0, Hp - H)))             # [1, Hp]
        self.bbig = jnp.concatenate([b_gates, bp_p], axis=1)       # [1, 6Hp], f32

        # Recurrent weight stored in the compute dtype (explicit bf16 by default: the
        # MXU would truncate an f32 operand to bf16 under default precision anyway).
        wh_r = _reorder_pad_gates(self.wh, H, Hp)                  # [H, 5Hp]
        self.wh_k = jnp.pad(wh_r, ((0, Hp - H), (0, 0))).astype(weight_dtype)

    def __call__(self, chain_orders, features):
        """chain_orders: [B, num_obj] sibling (children-of-dummy-root) order per chain;
        features: [B, num_obj, in_dim]. Returns [B, num_obj, h_dim] in original object
        order (mirrors treelstm_io.order bookkeeping + the final index_select)."""
        B, num_obj, _ = features.shape
        seq = chain_orders[:, ::-1] if self.direction == "backward" else chain_orders
        # Cast to bf16 BEFORE gather/pad/transpose: halves the wrapper-side data moved.
        feats_chain = jnp.take_along_axis(features.astype(self.weight_dtype),
                                          seq[..., None], axis=1)  # [B, N, F] bf16

        info = _tpu_generation()
        if self.block_chains is not None:
            block_b = self.block_chains
            num_blocks = _cdiv(B, block_b)
        else:
            block_b, num_blocks = _choose_blocking(B, info)
        bp_batch = block_b * num_blocks

        feats_k = jnp.pad(feats_chain,
                          ((0, bp_batch - B), (0, 0), (0, self.f_pad - self.in_dim)))
        feats_k = jnp.transpose(feats_k, (1, 0, 2))                # [N, Bp, Fp] bf16

        n_steps = num_obj
        unroll = self.unroll if self.unroll is not None else (
            n_steps if n_steps <= 32 else 8)

        hidden = run_chain_lstm(feats_k, self.wbig, self.bbig, self.wh_k,
                                h_pad=self.h_pad, block_b=block_b,
                                num_blocks=num_blocks, out_dtype=self.out_dtype,
                                unroll=unroll, vmem_cap=info["vmem_cap"])  # [N,Bp,Hp]
        hidden = jnp.transpose(hidden, (1, 0, 2))[:B, :, :self.h_dim]      # [B,N,H]

        out = jnp.zeros((B, num_obj, self.h_dim), hidden.dtype)
        return out.at[jnp.arange(B)[:, None], seq].set(hidden)


def reference_chain(chain_orders, features, model):
    """Pure-JAX reference of the same recurrence (original gate order), replicating the
    kernel's deliberate bf16 quantization points (feed-forward operands, xg/px storage,
    recurrent-dot operands, output store) so agreement is at f32-accumulation level."""
    B, num_obj, _ = features.shape
    H = model.h_dim
    seq = chain_orders[:, ::-1] if model.direction == "backward" else chain_orders
    q = lambda a: a.astype(jnp.bfloat16).astype(jnp.float32)
    feats = jnp.take_along_axis(q(features), seq[..., None], axis=1)  # [B, N, F]

    wx_q, wp_q, wh_q = q(model.wx), q(model.wp), q(model.wh)

    def per_chain(x_seq):
        xg = q(x_seq @ wx_q + model.bx[0] + model.bh[0])   # [N, 5H], bf16-stored
        px = q(x_seq @ wp_q + model.bp[0])                 # [N, H],  bf16-stored

        def step(carry, inp):
            h, c = carry
            g_x, p = inp
            gates = g_x + q(h) @ wh_q                      # bf16 operands, f32 accum
            i = jax.nn.sigmoid(gates[0 * H:1 * H])
            o = jax.nn.sigmoid(gates[1 * H:2 * H])
            f = jax.nn.sigmoid(gates[2 * H:3 * H])
            u = jnp.tanh(gates[3 * H:4 * H])
            r = jax.nn.sigmoid(gates[4 * H:5 * H])
            c_new = i * u + f * c
            h_lstm = o * jnp.tanh(c_new)
            h_final = r * h_lstm + (1.0 - r) * p
            emitted = h_final.astype(model.out_dtype).astype(jnp.float32)
            return (h_final, c_new), emitted

        (_, _), hid = lax.scan(step, (jnp.zeros(H), jnp.zeros(H)), (xg, px))
        return hid

    hidden = jax.vmap(per_chain)(feats)  # [B, N, H] f32
    out = jnp.zeros((B, num_obj, H), hidden.dtype)
    return out.at[jnp.arange(B)[:, None], seq].set(hidden)


if __name__ == "__main__":
    key = jax.random.PRNGKey(0)
    B, num_obj, in_dim, out_dim = 16, 8, 64, 32

    k_feat, k_fwd, k_bwd, k_perm = jax.random.split(key, 4)
    features = jax.random.normal(k_feat, (B, num_obj, in_dim), jnp.float32)

    # Synthetic forest per chain: a single dummy root whose children are all objects in
    # a deterministic permuted sibling order (the chain the LSTM walks over).
    perm_keys = jax.random.split(k_perm, B)
    chain_orders = jnp.stack(
        [jax.random.permutation(k, num_obj) for k in perm_keys]).astype(jnp.int32)

    ok = True
    for direction, k_model in (("forward", k_fwd), ("backward", k_bwd)):
        model = ChainLSTMPallas(in_dim, out_dim, direction, k_model)
        out = jax.block_until_ready(model(chain_orders, features))
        assert out.shape == (B, num_obj, out_dim)
        ref = reference_chain(chain_orders, features, model)
        # bf16-precision-scale agreement check (kernel deliberately stores
        # preactivations and outputs in bf16; divergence is at most ~1 bf16 ulp).
        max_diff = float(jnp.max(jnp.abs(out.astype(jnp.float32) - ref)))
        ok = ok and (max_diff < 3e-2)

    assert ok, "kernel/reference mismatch"
    print("KERNEL_OK")
</pallas_src>

<mosaic_0001>
module attributes {stable_mosaic.version = 11 : i64} {
  func.func @chain_lstm_kernel(%arg0: i32, %arg1: memref<8x16x128xbf16, #tpu.memory_space<vmem>>, %arg2: memref<128x768xbf16, #tpu.memory_space<vmem>>, %arg3: memref<1x768xf32, #tpu.memory_space<vmem>>, %arg4: memref<128x640xbf16, #tpu.memory_space<vmem>>, %arg5: memref<8x16x128xbf16, #tpu.memory_space<vmem>>, %arg6: memref<8x16x768xbf16, #tpu.memory_space<vmem>>) attributes {dimension_semantics = [#tpu.dimension_semantics<arbitrary>], iteration_bounds = array<i64: 1>, scalar_prefetch = 0 : i64, scratch_operands = 1 : i64, tpu.core_type = #tpu.core_type<tc>, window_params = [{transform_indices = @transform_0, window_bounds = array<i64: 8, 16, 128>}, {pipeline_mode = #tpu.pipeline_mode<synchronous>, transform_indices = @transform_1, window_bounds = array<i64: 128, 768>}, {pipeline_mode = #tpu.pipeline_mode<synchronous>, transform_indices = @transform_2, window_bounds = array<i64: 1, 768>}, {pipeline_mode = #tpu.pipeline_mode<synchronous>, transform_indices = @transform_3, window_bounds = array<i64: 128, 640>}, {transform_indices = @transform_4, window_bounds = array<i64: 8, 16, 128>}]} {
    %c0 = arith.constant 0 : index
    %c0_0 = arith.constant 0 : index
    %c0_1 = arith.constant 0 : index
    %0 = vector.load %arg1[%c0, %c0_0, %c0_1] : memref<8x16x128xbf16, #tpu.memory_space<vmem>>, vector<8x16x128xbf16>
    %1 = vector.shape_cast %0 : vector<8x16x128xbf16> to vector<128x128xbf16>
    %c0_2 = arith.constant 0 : index
    %c0_3 = arith.constant 0 : index
    %2 = vector.load %arg2[%c0_2, %c0_3] : memref<128x768xbf16, #tpu.memory_space<vmem>>, vector<128x768xbf16>
    %cst = arith.constant dense<0.000000e+00> : vector<128x768xf32>
    %3 = tpu.matmul %1, %2, %cst {dimension_numbers = #tpu.dot_dimension_numbers<[1], [0], [0], [1], [0, 0, 1, 1], [], []>} : vector<128x128xbf16>, vector<128x768xbf16>, vector<128x768xf32> -> vector<128x768xf32>
    %c0_4 = arith.constant 0 : index
    %c0_5 = arith.constant 0 : index
    %4 = vector.load %arg3[%c0_4, %c0_5] : memref<1x768xf32, #tpu.memory_space<vmem>>, vector<1x768xf32>
    %5 = vector.broadcast %4 : vector<1x768xf32> to vector<128x768xf32>
    %6 = arith.addf %3, %5 : vector<128x768xf32>
    %7 = arith.truncf %6 : vector<128x768xf32> to vector<128x768xbf16>
    %8 = vector.shape_cast %7 : vector<128x768xbf16> to vector<8x16x768xbf16>
    %c0_6 = arith.constant 0 : index
    %c0_7 = arith.constant 0 : index
    %c0_8 = arith.constant 0 : index
    %9 = vector.load %arg6[%c0_6, %c0_7, %c0_8] : memref<8x16x768xbf16, #tpu.memory_space<vmem>>, vector<8x16x768xbf16>
    tpu.vector_store %arg6[%c0_6, %c0_7, %c0_8], %8 {strides = array<i32>} : memref<8x16x768xbf16, #tpu.memory_space<vmem>>, vector<8x16x768xbf16>,
    %cst_9 = arith.constant 0.000000e+00 : f32
    %10 = vector.broadcast %cst_9 : f32 to vector<16x128xf32>
    %cst_10 = arith.constant 0.000000e+00 : f32
    %11 = vector.broadcast %cst_10 : f32 to vector<16x128xf32>
    %c0_i32 = arith.constant 0 : i32
    %12 = arith.index_cast %c0_i32 : i32 to index
    %c0_11 = arith.constant 0 : index
    %c0_12 = arith.constant 0 : index
    %13 = vector.load %arg6[%12, %c0_11, %c0_12] : memref<8x16x768xbf16, #tpu.memory_space<vmem>>, vector<1x16x768xbf16>
    %14 = vector.shape_cast %13 : vector<1x16x768xbf16> to vector<16x768xbf16>
    %15 = arith.truncf %10 : vector<16x128xf32> to vector<16x128xbf16>
    %c0_13 = arith.constant 0 : index
    %c0_14 = arith.constant 0 : index
    %16 = vector.load %arg4[%c0_13, %c0_14] : memref<128x640xbf16, #tpu.memory_space<vmem>>, vector<128x640xbf16>
    %cst_15 = arith.constant dense<0.000000e+00> : vector<16x640xf32>
    %17 = tpu.matmul %15, %16, %cst_15 {dimension_numbers = #tpu.dot_dimension_numbers<[1], [0], [0], [1], [0, 0, 1, 1], [], []>} : vector<16x128xbf16>, vector<128x640xbf16>, vector<16x640xf32> -> vector<16x640xf32>
    %18 = vector.extract_strided_slice %14 {offsets = [0, 0], sizes = [16, 640], strides = [1, 1]} : vector<16x768xbf16> to vector<16x640xbf16>
    %19 = arith.extf %18 : vector<16x640xbf16> to vector<16x640xf32>
    %20 = arith.addf %19, %17 : vector<16x640xf32>
    %21 = vector.extract_strided_slice %14 {offsets = [0, 640], sizes = [16, 128], strides = [1, 1]} : vector<16x768xbf16> to vector<16x128xbf16>
    %22 = arith.extf %21 : vector<16x128xbf16> to vector<16x128xf32>
    %23 = vector.extract_strided_slice %20 {offsets = [0, 0], sizes = [16, 512], strides = [1, 1]} : vector<16x640xf32> to vector<16x512xf32>
    %24 = arith.negf %23 : vector<16x512xf32>
    %25 = math.exp %24 : vector<16x512xf32>
    %cst_16 = arith.constant 1.000000e+00 : f32
    %26 = vector.broadcast %cst_16 : f32 to vector<16x512xf32>
    %27 = arith.addf %26, %25 : vector<16x512xf32>
    %28 = arith.divf %26, %27 : vector<16x512xf32>
    %29 = vector.extract_strided_slice %20 {offsets = [0, 512], sizes = [16, 128], strides = [1, 1]} : vector<16x640xf32> to vector<16x128xf32>
    %30 = math.tanh %29 : vector<16x128xf32>
    %31 = vector.extract_strided_slice %28 {offsets = [0, 0], sizes = [16, 128], strides = [1, 1]} : vector<16x512xf32> to vector<16x128xf32>
    %32 = vector.extract_strided_slice %28 {offsets = [0, 128], sizes = [16, 128], strides = [1, 1]} : vector<16x512xf32> to vector<16x128xf32>
    %33 = vector.extract_strided_slice %28 {offsets = [0, 256], sizes = [16, 128], strides = [1, 1]} : vector<16x512xf32> to vector<16x128xf32>
    %34 = vector.extract_strided_slice %28 {offsets = [0, 384], sizes = [16, 128], strides = [1, 1]} : vector<16x512xf32> to vector<16x128xf32>
    %35 = arith.mulf %31, %30 : vector<16x128xf32>
    %36 = arith.mulf %33, %11 : vector<16x128xf32>
    %37 = arith.addf %35, %36 : vector<16x128xf32>
    %38 = math.tanh %37 : vector<16x128xf32>
    %39 = arith.mulf %32, %38 : vector<16x128xf32>
    %40 = arith.subf %39, %22 : vector<16x128xf32>
    %41 = arith.mulf %34, %40 : vector<16x128xf32>
    %42 = arith.addf %22, %41 : vector<16x128xf32>
    %43 = arith.truncf %42 : vector<16x128xf32> to vector<16x128xbf16>
    %44 = arith.index_cast %c0_i32 : i32 to index
    %c0_17 = arith.constant 0 : index
    %c0_18 = arith.constant 0 : index
    %45 = vector.load %arg5[%44, %c0_17, %c0_18] : memref<8x16x128xbf16, #tpu.memory_space<vmem>>, vector<1x16x128xbf16>
    %46 = vector.shape_cast %45 : vector<1x16x128xbf16> to vector<16x128xbf16>
    %47 = vector.shape_cast %43 : vector<16x128xbf16> to vector<1x16x128xbf16>
    tpu.vector_store %arg5[%44, %c0_17, %c0_18], %47 {strides = array<i32>} : memref<8x16x128xbf16, #tpu.memory_space<vmem>>, vector<1x16x128xbf16>,
    %c1_i32 = arith.constant 1 : i32
    %48 = arith.index_cast %c1_i32 : i32 to index
    %c0_19 = arith.constant 0 : index
    %c0_20 = arith.constant 0 : index
    %49 = vector.load %arg6[%48, %c0_19, %c0_20] : memref<8x16x768xbf16, #tpu.memory_space<vmem>>, vector<1x16x768xbf16>
    %50 = vector.shape_cast %49 : vector<1x16x768xbf16> to vector<16x768xbf16>
    %51 = arith.truncf %42 : vector<16x128xf32> to vector<16x128xbf16>
    %c0_21 = arith.constant 0 : index
    %c0_22 = arith.constant 0 : index
    %52 = vector.load %arg4[%c0_21, %c0_22] : memref<128x640xbf16, #tpu.memory_space<vmem>>, vector<128x640xbf16>
    %cst_23 = arith.constant dense<0.000000e+00> : vector<16x640xf32>
    %53 = tpu.matmul %51, %52, %cst_23 {dimension_numbers = #tpu.dot_dimension_numbers<[1], [0], [0], [1], [0, 0, 1, 1], [], []>} : vector<16x128xbf16>, vector<128x640xbf16>, vector<16x640xf32> -> vector<16x640xf32>
    %54 = vector.extract_strided_slice %50 {offsets = [0, 0], sizes = [16, 640], strides = [1, 1]} : vector<16x768xbf16> to vector<16x640xbf16>
    %55 = arith.extf %54 : vector<16x640xbf16> to vector<16x640xf32>
    %56 = arith.addf %55, %53 : vector<16x640xf32>
    %57 = vector.extract_strided_slice %50 {offsets = [0, 640], sizes = [16, 128], strides = [1, 1]} : vector<16x768xbf16> to vector<16x128xbf16>
    %58 = arith.extf %57 : vector<16x128xbf16> to vector<16x128xf32>
    %59 = vector.extract_strided_slice %56 {offsets = [0, 0], sizes = [16, 512], strides = [1, 1]} : vector<16x640xf32> to vector<16x512xf32>
    %60 = arith.negf %59 : vector<16x512xf32>
    %61 = math.exp %60 : vector<16x512xf32>
    %cst_24 = arith.constant 1.000000e+00 : f32
    %62 = vector.broadcast %cst_24 : f32 to vector<16x512xf32>
    %63 = arith.addf %62, %61 : vector<16x512xf32>
    %64 = arith.divf %62, %63 : vector<16x512xf32>
    %65 = vector.extract_strided_slice %56 {offsets = [0, 512], sizes = [16, 128], strides = [1, 1]} : vector<16x640xf32> to vector<16x128xf32>
    %66 = math.tanh %65 : vector<16x128xf32>
    %67 = vector.extract_strided_slice %64 {offsets = [0, 0], sizes = [16, 128], strides = [1, 1]} : vector<16x512xf32> to vector<16x128xf32>
    %68 = vector.extract_strided_slice %64 {offsets = [0, 128], sizes = [16, 128], strides = [1, 1]} : vector<16x512xf32> to vector<16x128xf32>
    %69 = vector.extract_strided_slice %64 {offsets = [0, 256], sizes = [16, 128], strides = [1, 1]} : vector<16x512xf32> to vector<16x128xf32>
    %70 = vector.extract_strided_slice %64 {offsets = [0, 384], sizes = [16, 128], strides = [1, 1]} : vector<16x512xf32> to vector<16x128xf32>
    %71 = arith.mulf %67, %66 : vector<16x128xf32>
    %72 = arith.mulf %69, %37 : vector<16x128xf32>
    %73 = arith.addf %71, %72 : vector<16x128xf32>
    %74 = math.tanh %73 : vector<16x128xf32>
    %75 = arith.mulf %68, %74 : vector<16x128xf32>
    %76 = arith.subf %75, %58 : vector<16x128xf32>
    %77 = arith.mulf %70, %76 : vector<16x128xf32>
    %78 = arith.addf %58, %77 : vector<16x128xf32>
    %79 = arith.truncf %78 : vector<16x128xf32> to vector<16x128xbf16>
    %80 = arith.index_cast %c1_i32 : i32 to index
    %c0_25 = arith.constant 0 : index
    %c0_26 = arith.constant 0 : index
    %81 = vector.load %arg5[%80, %c0_25, %c0_26] : memref<8x16x128xbf16, #tpu.memory_space<vmem>>, vector<1x16x128xbf16>
    %82 = vector.shape_cast %81 : vector<1x16x128xbf16> to vector<16x128xbf16>
    %83 = vector.shape_cast %79 : vector<16x128xbf16> to vector<1x16x128xbf16>
    tpu.vector_store %arg5[%80, %c0_25, %c0_26], %83 {strides = array<i32>} : memref<8x16x128xbf16, #tpu.memory_space<vmem>>, vector<1x16x128xbf16>,
    %c2_i32 = arith.constant 2 : i32
    %84 = arith.index_cast %c2_i32 : i32 to index
    %c0_27 = arith.constant 0 : index
    %c0_28 = arith.constant 0 : index
    %85 = vector.load %arg6[%84, %c0_27, %c0_28] : memref<8x16x768xbf16, #tpu.memory_space<vmem>>, vector<1x16x768xbf16>
    %86 = vector.shape_cast %85 : vector<1x16x768xbf16> to vector<16x768xbf16>
    %87 = arith.truncf %78 : vector<16x128xf32> to vector<16x128xbf16>
    %c0_29 = arith.constant 0 : index
    %c0_30 = arith.constant 0 : index
    %88 = vector.load %arg4[%c0_29, %c0_30] : memref<128x640xbf16, #tpu.memory_space<vmem>>, vector<128x640xbf16>
    %cst_31 = arith.constant dense<0.000000e+00> : vector<16x640xf32>
    %89 = tpu.matmul %87, %88, %cst_31 {dimension_numbers = #tpu.dot_dimension_numbers<[1], [0], [0], [1], [0, 0, 1, 1], [], []>} : vector<16x128xbf16>, vector<128x640xbf16>, vector<16x640xf32> -> vector<16x640xf32>
    %90 = vector.extract_strided_slice %86 {offsets = [0, 0], sizes = [16, 640], strides = [1, 1]} : vector<16x768xbf16> to vector<16x640xbf16>
    %91 = arith.extf %90 : vector<16x640xbf16> to vector<16x640xf32>
    %92 = arith.addf %91, %89 : vector<16x640xf32>
    %93 = vector.extract_strided_slice %86 {offsets = [0, 640], sizes = [16, 128], strides = [1, 1]} : vector<16x768xbf16> to vector<16x128xbf16>
    %94 = arith.extf %93 : vector<16x128xbf16> to vector<16x128xf32>
    %95 = vector.extract_strided_slice %92 {offsets = [0, 0], sizes = [16, 512], strides = [1, 1]} : vector<16x640xf32> to vector<16x512xf32>
    %96 = arith.negf %95 : vector<16x512xf32>
    %97 = math.exp %96 : vector<16x512xf32>
    %cst_32 = arith.constant 1.000000e+00 : f32
    %98 = vector.broadcast %cst_32 : f32 to vector<16x512xf32>
    %99 = arith.addf %98, %97 : vector<16x512xf32>
    %100 = arith.divf %98, %99 : vector<16x512xf32>
    %101 = vector.extract_strided_slice %92 {offsets = [0, 512], sizes = [16, 128], strides = [1, 1]} : vector<16x640xf32> to vector<16x128xf32>
    %102 = math.tanh %101 : vector<16x128xf32>
    %103 = vector.extract_strided_slice %100 {offsets = [0, 0], sizes = [16, 128], strides = [1, 1]} : vector<16x512xf32> to vector<16x128xf32>
    %104 = vector.extract_strided_slice %100 {offsets = [0, 128], sizes = [16, 128], strides = [1, 1]} : vector<16x512xf32> to vector<16x128xf32>
    %105 = vector.extract_strided_slice %100 {offsets = [0, 256], sizes = [16, 128], strides = [1, 1]} : vector<16x512xf32> to vector<16x128xf32>
    %106 = vector.extract_strided_slice %100 {offsets = [0, 384], sizes = [16, 128], strides = [1, 1]} : vector<16x512xf32> to vector<16x128xf32>
    %107 = arith.mulf %103, %102 : vector<16x128xf32>
    %108 = arith.mulf %105, %73 : vector<16x128xf32>
    %109 = arith.addf %107, %108 : vector<16x128xf32>
    %110 = math.tanh %109 : vector<16x128xf32>
    %111 = arith.mulf %104, %110 : vector<16x128xf32>
    %112 = arith.subf %111, %94 : vector<16x128xf32>
    %113 = arith.mulf %106, %112 : vector<16x128xf32>
    %114 = arith.addf %94, %113 : vector<16x128xf32>
    %115 = arith.truncf %114 : vector<16x128xf32> to vector<16x128xbf16>
    %116 = arith.index_cast %c2_i32 : i32 to index
    %c0_33 = arith.constant 0 : index
    %c0_34 = arith.constant 0 : index
    %117 = vector.load %arg5[%116, %c0_33, %c0_34] : memref<8x16x128xbf16, #tpu.memory_space<vmem>>, vector<1x16x128xbf16>
    %118 = vector.shape_cast %117 : vector<1x16x128xbf16> to vector<16x128xbf16>
    %119 = vector.shape_cast %115 : vector<16x128xbf16> to vector<1x16x128xbf16>
    tpu.vector_store %arg5[%116, %c0_33, %c0_34], %119 {strides = array<i32>} : memref<8x16x128xbf16, #tpu.memory_space<vmem>>, vector<1x16x128xbf16>,
    %c3_i32 = arith.constant 3 : i32
    %120 = arith.index_cast %c3_i32 : i32 to index
    %c0_35 = arith.constant 0 : index
    %c0_36 = arith.constant 0 : index
    %121 = vector.load %arg6[%120, %c0_35, %c0_36] : memref<8x16x768xbf16, #tpu.memory_space<vmem>>, vector<1x16x768xbf16>
    %122 = vector.shape_cast %121 : vector<1x16x768xbf16> to vector<16x768xbf16>
    %123 = arith.truncf %114 : vector<16x128xf32> to vector<16x128xbf16>
    %c0_37 = arith.constant 0 : index
    %c0_38 = arith.constant 0 : index
    %124 = vector.load %arg4[%c0_37, %c0_38] : memref<128x640xbf16, #tpu.memory_space<vmem>>, vector<128x640xbf16>
    %cst_39 = arith.constant dense<0.000000e+00> : vector<16x640xf32>
    %125 = tpu.matmul %123, %124, %cst_39 {dimension_numbers = #tpu.dot_dimension_numbers<[1], [0], [0], [1], [0, 0, 1, 1], [], []>} : vector<16x128xbf16>, vector<128x640xbf16>, vector<16x640xf32> -> vector<16x640xf32>
    %126 = vector.extract_strided_slice %122 {offsets = [0, 0], sizes = [16, 640], strides = [1, 1]} : vector<16x768xbf16> to vector<16x640xbf16>
    %127 = arith.extf %126 : vector<16x640xbf16> to vector<16x640xf32>
    %128 = arith.addf %127, %125 : vector<16x640xf32>
    %129 = vector.extract_strided_slice %122 {offsets = [0, 640], sizes = [16, 128], strides = [1, 1]} : vector<16x768xbf16> to vector<16x128xbf16>
    %130 = arith.extf %129 : vector<16x128xbf16> to vector<16x128xf32>
    %131 = vector.extract_strided_slice %128 {offsets = [0, 0], sizes = [16, 512], strides = [1, 1]} : vector<16x640xf32> to vector<16x512xf32>
    %132 = arith.negf %131 : vector<16x512xf32>
    %133 = math.exp %132 : vector<16x512xf32>
    %cst_40 = arith.constant 1.000000e+00 : f32
    %134 = vector.broadcast %cst_40 : f32 to vector<16x512xf32>
    %135 = arith.addf %134, %133 : vector<16x512xf32>
    %136 = arith.divf %134, %135 : vector<16x512xf32>
    %137 = vector.extract_strided_slice %128 {offsets = [0, 512], sizes = [16, 128], strides = [1, 1]} : vector<16x640xf32> to vector<16x128xf32>
    %138 = math.tanh %137 : vector<16x128xf32>
    %139 = vector.extract_strided_slice %136 {offsets = [0, 0], sizes = [16, 128], strides = [1, 1]} : vector<16x512xf32> to vector<16x128xf32>
    %140 = vector.extract_strided_slice %136 {offsets = [0, 128], sizes = [16, 128], strides = [1, 1]} : vector<16x512xf32> to vector<16x128xf32>
    %141 = vector.extract_strided_slice %136 {offsets = [0, 256], sizes = [16, 128], strides = [1, 1]} : vector<16x512xf32> to vector<16x128xf32>
    %142 = vector.extract_strided_slice %136 {offsets = [0, 384], sizes = [16, 128], strides = [1, 1]} : vector<16x512xf32> to vector<16x128xf32>
    %143 = arith.mulf %139, %138 : vector<16x128xf32>
    %144 = arith.mulf %141, %109 : vector<16x128xf32>
    %145 = arith.addf %143, %144 : vector<16x128xf32>
    %146 = math.tanh %145 : vector<16x128xf32>
    %147 = arith.mulf %140, %146 : vector<16x128xf32>
    %148 = arith.subf %147, %130 : vector<16x128xf32>
    %149 = arith.mulf %142, %148 : vector<16x128xf32>
    %150 = arith.addf %130, %149 : vector<16x128xf32>
    %151 = arith.truncf %150 : vector<16x128xf32> to vector<16x128xbf16>
    %152 = arith.index_cast %c3_i32 : i32 to index
    %c0_41 = arith.constant 0 : index
    %c0_42 = arith.constant 0 : index
    %153 = vector.load %arg5[%152, %c0_41, %c0_42] : memref<8x16x128xbf16, #tpu.memory_space<vmem>>, vector<1x16x128xbf16>
    %154 = vector.shape_cast %153 : vector<1x16x128xbf16> to vector<16x128xbf16>
    %155 = vector.shape_cast %151 : vector<16x128xbf16> to vector<1x16x128xbf16>
    tpu.vector_store %arg5[%152, %c0_41, %c0_42], %155 {strides = array<i32>} : memref<8x16x128xbf16, #tpu.memory_space<vmem>>, vector<1x16x128xbf16>,
    %c4_i32 = arith.constant 4 : i32
    %156 = arith.index_cast %c4_i32 : i32 to index
    %c0_43 = arith.constant 0 : index
    %c0_44 = arith.constant 0 : index
    %157 = vector.load %arg6[%156, %c0_43, %c0_44] : memref<8x16x768xbf16, #tpu.memory_space<vmem>>, vector<1x16x768xbf16>
    %158 = vector.shape_cast %157 : vector<1x16x768xbf16> to vector<16x768xbf16>
    %159 = arith.truncf %150 : vector<16x128xf32> to vector<16x128xbf16>
    %c0_45 = arith.constant 0 : index
    %c0_46 = arith.constant 0 : index
    %160 = vector.load %arg4[%c0_45, %c0_46] : memref<128x640xbf16, #tpu.memory_space<vmem>>, vector<128x640xbf16>
    %cst_47 = arith.constant dense<0.000000e+00> : vector<16x640xf32>
    %161 = tpu.matmul %159, %160, %cst_47 {dimension_numbers = #tpu.dot_dimension_numbers<[1], [0], [0], [1], [0, 0, 1, 1], [], []>} : vector<16x128xbf16>, vector<128x640xbf16>, vector<16x640xf32> -> vector<16x640xf32>
    %162 = vector.extract_strided_slice %158 {offsets = [0, 0], sizes = [16, 640], strides = [1, 1]} : vector<16x768xbf16> to vector<16x640xbf16>
    %163 = arith.extf %162 : vector<16x640xbf16> to vector<16x640xf32>
    %164 = arith.addf %163, %161 : vector<16x640xf32>
    %165 = vector.extract_strided_slice %158 {offsets = [0, 640], sizes = [16, 128], strides = [1, 1]} : vector<16x768xbf16> to vector<16x128xbf16>
    %166 = arith.extf %165 : vector<16x128xbf16> to vector<16x128xf32>
    %167 = vector.extract_strided_slice %164 {offsets = [0, 0], sizes = [16, 512], strides = [1, 1]} : vector<16x640xf32> to vector<16x512xf32>
    %168 = arith.negf %167 : vector<16x512xf32>
    %169 = math.exp %168 : vector<16x512xf32>
    %cst_48 = arith.constant 1.000000e+00 : f32
    %170 = vector.broadcast %cst_48 : f32 to vector<16x512xf32>
    %171 = arith.addf %170, %169 : vector<16x512xf32>
    %172 = arith.divf %170, %171 : vector<16x512xf32>
    %173 = vector.extract_strided_slice %164 {offsets = [0, 512], sizes = [16, 128], strides = [1, 1]} : vector<16x640xf32> to vector<16x128xf32>
    %174 = math.tanh %173 : vector<16x128xf32>
    %175 = vector.extract_strided_slice %172 {offsets = [0, 0], sizes = [16, 128], strides = [1, 1]} : vector<16x512xf32> to vector<16x128xf32>
    %176 = vector.extract_strided_slice %172 {offsets = [0, 128], sizes = [16, 128], strides = [1, 1]} : vector<16x512xf32> to vector<16x128xf32>
    %177 = vector.extract_strided_slice %172 {offsets = [0, 256], sizes = [16, 128], strides = [1, 1]} : vector<16x512xf32> to vector<16x128xf32>
    %178 = vector.extract_strided_slice %172 {offsets = [0, 384], sizes = [16, 128], strides = [1, 1]} : vector<16x512xf32> to vector<16x128xf32>
    %179 = arith.mulf %175, %174 : vector<16x128xf32>
    %180 = arith.mulf %177, %145 : vector<16x128xf32>
    %181 = arith.addf %179, %180 : vector<16x128xf32>
    %182 = math.tanh %181 : vector<16x128xf32>
    %183 = arith.mulf %176, %182 : vector<16x128xf32>
    %184 = arith.subf %183, %166 : vector<16x128xf32>
    %185 = arith.mulf %178, %184 : vector<16x128xf32>
    %186 = arith.addf %166, %185 : vector<16x128xf32>
    %187 = arith.truncf %186 : vector<16x128xf32> to vector<16x128xbf16>
    %188 = arith.index_cast %c4_i32 : i32 to index
    %c0_49 = arith.constant 0 : index
    %c0_50 = arith.constant 0 : index
    %189 = vector.load %arg5[%188, %c0_49, %c0_50] : memref<8x16x128xbf16, #tpu.memory_space<vmem>>, vector<1x16x128xbf16>
    %190 = vector.shape_cast %189 : vector<1x16x128xbf16> to vector<16x128xbf16>
    %191 = vector.shape_cast %187 : vector<16x128xbf16> to vector<1x16x128xbf16>
    tpu.vector_store %arg5[%188, %c0_49, %c0_50], %191 {strides = array<i32>} : memref<8x16x128xbf16, #tpu.memory_space<vmem>>, vector<1x16x128xbf16>,
    %c5_i32 = arith.constant 5 : i32
    %192 = arith.index_cast %c5_i32 : i32 to index
    %c0_51 = arith.constant 0 : index
    %c0_52 = arith.constant 0 : index
    %193 = vector.load %arg6[%192, %c0_51, %c0_52] : memref<8x16x768xbf16, #tpu.memory_space<vmem>>, vector<1x16x768xbf16>
    %194 = vector.shape_cast %193 : vector<1x16x768xbf16> to vector<16x768xbf16>
    %195 = arith.truncf %186 : vector<16x128xf32> to vector<16x128xbf16>
    %c0_53 = arith.constant 0 : index
    %c0_54 = arith.constant 0 : index
    %196 = vector.load %arg4[%c0_53, %c0_54] : memref<128x640xbf16, #tpu.memory_space<vmem>>, vector<128x640xbf16>
    %cst_55 = arith.constant dense<0.000000e+00> : vector<16x640xf32>
    %197 = tpu.matmul %195, %196, %cst_55 {dimension_numbers = #tpu.dot_dimension_numbers<[1], [0], [0], [1], [0, 0, 1, 1], [], []>} : vector<16x128xbf16>, vector<128x640xbf16>, vector<16x640xf32> -> vector<16x640xf32>
    %198 = vector.extract_strided_slice %194 {offsets = [0, 0], sizes = [16, 640], strides = [1, 1]} : vector<16x768xbf16> to vector<16x640xbf16>
    %199 = arith.extf %198 : vector<16x640xbf16> to vector<16x640xf32>
    %200 = arith.addf %199, %197 : vector<16x640xf32>
    %201 = vector.extract_strided_slice %194 {offsets = [0, 640], sizes = [16, 128], strides = [1, 1]} : vector<16x768xbf16> to vector<16x128xbf16>
    %202 = arith.extf %201 : vector<16x128xbf16> to vector<16x128xf32>
    %203 = vector.extract_strided_slice %200 {offsets = [0, 0], sizes = [16, 512], strides = [1, 1]} : vector<16x640xf32> to vector<16x512xf32>
    %204 = arith.negf %203 : vector<16x512xf32>
    %205 = math.exp %204 : vector<16x512xf32>
    %cst_56 = arith.constant 1.000000e+00 : f32
    %206 = vector.broadcast %cst_56 : f32 to vector<16x512xf32>
    %207 = arith.addf %206, %205 : vector<16x512xf32>
    %208 = arith.divf %206, %207 : vector<16x512xf32>
    %209 = vector.extract_strided_slice %200 {offsets = [0, 512], sizes = [16, 128], strides = [1, 1]} : vector<16x640xf32> to vector<16x128xf32>
    %210 = math.tanh %209 : vector<16x128xf32>
    %211 = vector.extract_strided_slice %208 {offsets = [0, 0], sizes = [16, 128], strides = [1, 1]} : vector<16x512xf32> to vector<16x128xf32>
    %212 = vector.extract_strided_slice %208 {offsets = [0, 128], sizes = [16, 128], strides = [1, 1]} : vector<16x512xf32> to vector<16x128xf32>
    %213 = vector.extract_strided_slice %208 {offsets = [0, 256], sizes = [16, 128], strides = [1, 1]} : vector<16x512xf32> to vector<16x128xf32>
    %214 = vector.extract_strided_slice %208 {offsets = [0, 384], sizes = [16, 128], strides = [1, 1]} : vector<16x512xf32> to vector<16x128xf32>
    %215 = arith.mulf %211, %210 : vector<16x128xf32>
    %216 = arith.mulf %213, %181 : vector<16x128xf32>
    %217 = arith.addf %215, %216 : vector<16x128xf32>
    %218 = math.tanh %217 : vector<16x128xf32>
    %219 = arith.mulf %212, %218 : vector<16x128xf32>
    %220 = arith.subf %219, %202 : vector<16x128xf32>
    %221 = arith.mulf %214, %220 : vector<16x128xf32>
    %222 = arith.addf %202, %221 : vector<16x128xf32>
    %223 = arith.truncf %222 : vector<16x128xf32> to vector<16x128xbf16>
    %224 = arith.index_cast %c5_i32 : i32 to index
    %c0_57 = arith.constant 0 : index
    %c0_58 = arith.constant 0 : index
    %225 = vector.load %arg5[%224, %c0_57, %c0_58] : memref<8x16x128xbf16, #tpu.memory_space<vmem>>, vector<1x16x128xbf16>
    %226 = vector.shape_cast %225 : vector<1x16x128xbf16> to vector<16x128xbf16>
    %227 = vector.shape_cast %223 : vector<16x128xbf16> to vector<1x16x128xbf16>
    tpu.vector_store %arg5[%224, %c0_57, %c0_58], %227 {strides = array<i32>} : memref<8x16x128xbf16, #tpu.memory_space<vmem>>, vector<1x16x128xbf16>,
    %c6_i32 = arith.constant 6 : i32
    %228 = arith.index_cast %c6_i32 : i32 to index
    %c0_59 = arith.constant 0 : index
    %c0_60 = arith.constant 0 : index
    %229 = vector.load %arg6[%228, %c0_59, %c0_60] : memref<8x16x768xbf16, #tpu.memory_space<vmem>>, vector<1x16x768xbf16>
    %230 = vector.shape_cast %229 : vector<1x16x768xbf16> to vector<16x768xbf16>
    %231 = arith.truncf %222 : vector<16x128xf32> to vector<16x128xbf16>
    %c0_61 = arith.constant 0 : index
    %c0_62 = arith.constant 0 : index
    %232 = vector.load %arg4[%c0_61, %c0_62] : memref<128x640xbf16, #tpu.memory_space<vmem>>, vector<128x640xbf16>
    %cst_63 = arith.constant dense<0.000000e+00> : vector<16x640xf32>
    %233 = tpu.matmul %231, %232, %cst_63 {dimension_numbers = #tpu.dot_dimension_numbers<[1], [0], [0], [1], [0, 0, 1, 1], [], []>} : vector<16x128xbf16>, vector<128x640xbf16>, vector<16x640xf32> -> vector<16x640xf32>
    %234 = vector.extract_strided_slice %230 {offsets = [0, 0], sizes = [16, 640], strides = [1, 1]} : vector<16x768xbf16> to vector<16x640xbf16>
    %235 = arith.extf %234 : vector<16x640xbf16> to vector<16x640xf32>
    %236 = arith.addf %235, %233 : vector<16x640xf32>
    %237 = vector.extract_strided_slice %230 {offsets = [0, 640], sizes = [16, 128], strides = [1, 1]} : vector<16x768xbf16> to vector<16x128xbf16>
    %238 = arith.extf %237 : vector<16x128xbf16> to vector<16x128xf32>
    %239 = vector.extract_strided_slice %236 {offsets = [0, 0], sizes = [16, 512], strides = [1, 1]} : vector<16x640xf32> to vector<16x512xf32>
    %240 = arith.negf %239 : vector<16x512xf32>
    %241 = math.exp %240 : vector<16x512xf32>
    %cst_64 = arith.constant 1.000000e+00 : f32
    %242 = vector.broadcast %cst_64 : f32 to vector<16x512xf32>
    %243 = arith.addf %242, %241 : vector<16x512xf32>
    %244 = arith.divf %242, %243 : vector<16x512xf32>
    %245 = vector.extract_strided_slice %236 {offsets = [0, 512], sizes = [16, 128], strides = [1, 1]} : vector<16x640xf32> to vector<16x128xf32>
    %246 = math.tanh %245 : vector<16x128xf32>
    %247 = vector.extract_strided_slice %244 {offsets = [0, 0], sizes = [16, 128], strides = [1, 1]} : vector<16x512xf32> to vector<16x128xf32>
    %248 = vector.extract_strided_slice %244 {offsets = [0, 128], sizes = [16, 128], strides = [1, 1]} : vector<16x512xf32> to vector<16x128xf32>
    %249 = vector.extract_strided_slice %244 {offsets = [0, 256], sizes = [16, 128], strides = [1, 1]} : vector<16x512xf32> to vector<16x128xf32>
    %250 = vector.extract_strided_slice %244 {offsets = [0, 384], sizes = [16, 128], strides = [1, 1]} : vector<16x512xf32> to vector<16x128xf32>
    %251 = arith.mulf %247, %246 : vector<16x128xf32>
    %252 = arith.mulf %249, %217 : vector<16x128xf32>
    %253 = arith.addf %251, %252 : vector<16x128xf32>
    %254 = math.tanh %253 : vector<16x128xf32>
    %255 = arith.mulf %248, %254 : vector<16x128xf32>
    %256 = arith.subf %255, %238 : vector<16x128xf32>
    %257 = arith.mulf %250, %256 : vector<16x128xf32>
    %258 = arith.addf %238, %257 : vector<16x128xf32>
    %259 = arith.truncf %258 : vector<16x128xf32> to vector<16x128xbf16>
    %260 = arith.index_cast %c6_i32 : i32 to index
    %c0_65 = arith.constant 0 : index
    %c0_66 = arith.constant 0 : index
    %261 = vector.load %arg5[%260, %c0_65, %c0_66] : memref<8x16x128xbf16, #tpu.memory_space<vmem>>, vector<1x16x128xbf16>
    %262 = vector.shape_cast %261 : vector<1x16x128xbf16> to vector<16x128xbf16>
    %263 = vector.shape_cast %259 : vector<16x128xbf16> to vector<1x16x128xbf16>
    tpu.vector_store %arg5[%260, %c0_65, %c0_66], %263 {strides = array<i32>} : memref<8x16x128xbf16, #tpu.memory_space<vmem>>, vector<1x16x128xbf16>,
    %c7_i32 = arith.constant 7 : i32
    %264 = arith.index_cast %c7_i32 : i32 to index
    %c0_67 = arith.constant 0 : index
    %c0_68 = arith.constant 0 : index
    %265 = vector.load %arg6[%264, %c0_67, %c0_68] : memref<8x16x768xbf16, #tpu.memory_space<vmem>>, vector<1x16x768xbf16>
    %266 = vector.shape_cast %265 : vector<1x16x768xbf16> to vector<16x768xbf16>
    %267 = arith.truncf %258 : vector<16x128xf32> to vector<16x128xbf16>
    %c0_69 = arith.constant 0 : index
    %c0_70 = arith.constant 0 : index
    %268 = vector.load %arg4[%c0_69, %c0_70] : memref<128x640xbf16, #tpu.memory_space<vmem>>, vector<128x640xbf16>
    %cst_71 = arith.constant dense<0.000000e+00> : vector<16x640xf32>
    %269 = tpu.matmul %267, %268, %cst_71 {dimension_numbers = #tpu.dot_dimension_numbers<[1], [0], [0], [1], [0, 0, 1, 1], [], []>} : vector<16x128xbf16>, vector<128x640xbf16>, vector<16x640xf32> -> vector<16x640xf32>
    %270 = vector.extract_strided_slice %266 {offsets = [0, 0], sizes = [16, 640], strides = [1, 1]} : vector<16x768xbf16> to vector<16x640xbf16>
    %271 = arith.extf %270 : vector<16x640xbf16> to vector<16x640xf32>
    %272 = arith.addf %271, %269 : vector<16x640xf32>
    %273 = vector.extract_strided_slice %266 {offsets = [0, 640], sizes = [16, 128], strides = [1, 1]} : vector<16x768xbf16> to vector<16x128xbf16>
    %274 = arith.extf %273 : vector<16x128xbf16> to vector<16x128xf32>
    %275 = vector.extract_strided_slice %272 {offsets = [0, 0], sizes = [16, 512], strides = [1, 1]} : vector<16x640xf32> to vector<16x512xf32>
    %276 = arith.negf %275 : vector<16x512xf32>
    %277 = math.exp %276 : vector<16x512xf32>
    %cst_72 = arith.constant 1.000000e+00 : f32
    %278 = vector.broadcast %cst_72 : f32 to vector<16x512xf32>
    %279 = arith.addf %278, %277 : vector<16x512xf32>
    %280 = arith.divf %278, %279 : vector<16x512xf32>
    %281 = vector.extract_strided_slice %272 {offsets = [0, 512], sizes = [16, 128], strides = [1, 1]} : vector<16x640xf32> to vector<16x128xf32>
    %282 = math.tanh %281 : vector<16x128xf32>
    %283 = vector.extract_strided_slice %280 {offsets = [0, 0], sizes = [16, 128], strides = [1, 1]} : vector<16x512xf32> to vector<16x128xf32>
    %284 = vector.extract_strided_slice %280 {offsets = [0, 128], sizes = [16, 128], strides = [1, 1]} : vector<16x512xf32> to vector<16x128xf32>
    %285 = vector.extract_strided_slice %280 {offsets = [0, 256], sizes = [16, 128], strides = [1, 1]} : vector<16x512xf32> to vector<16x128xf32>
    %286 = vector.extract_strided_slice %280 {offsets = [0, 384], sizes = [16, 128], strides = [1, 1]} : vector<16x512xf32> to vector<16x128xf32>
    %287 = arith.mulf %283, %282 : vector<16x128xf32>
    %288 = arith.mulf %285, %253 : vector<16x128xf32>
    %289 = arith.addf %287, %288 : vector<16x128xf32>
    %290 = math.tanh %289 : vector<16x128xf32>
    %291 = arith.mulf %284, %290 : vector<16x128xf32>
    %292 = arith.subf %291, %274 : vector<16x128xf32>
    %293 = arith.mulf %286, %292 : vector<16x128xf32>
    %294 = arith.addf %274, %293 : vector<16x128xf32>
    %295 = arith.truncf %294 : vector<16x128xf32> to vector<16x128xbf16>
    %296 = arith.index_cast %c7_i32 : i32 to index
    %c0_73 = arith.constant 0 : index
    %c0_74 = arith.constant 0 : index
    %297 = vector.load %arg5[%296, %c0_73, %c0_74] : memref<8x16x128xbf16, #tpu.memory_space<vmem>>, vector<1x16x128xbf16>
    %298 = vector.shape_cast %297 : vector<1x16x128xbf16> to vector<16x128xbf16>
    %299 = vector.shape_cast %295 : vector<16x128xbf16> to vector<1x16x128xbf16>
    tpu.vector_store %arg5[%296, %c0_73, %c0_74], %299 {strides = array<i32>} : memref<8x16x128xbf16, #tpu.memory_space<vmem>>, vector<1x16x128xbf16>,
    %c8_i32 = arith.constant 8 : i32
    return
  }
  func.func @transform_0(%arg0: i32) -> (i32, i32, i32) {
    %c0_i32 = arith.constant 0 : i32
    %c0_i32_0 = arith.constant 0 : i32
    %c0_i32_1 = arith.constant 0 : i32
    return %c0_i32, %arg0, %c0_i32_0 : i32, i32, i32
  }
  func.func @transform_1(%arg0: i32) -> (i32, i32) {
    %c0_i32 = arith.constant 0 : i32
    %c0_i32_0 = arith.constant 0 : i32
    %c0_i32_1 = arith.constant 0 : i32
    return %c0_i32, %c0_i32_0 : i32, i32
  }
  func.func @transform_2(%arg0: i32) -> (i32, i32) {
    %c0_i32 = arith.constant 0 : i32
    %c0_i32_0 = arith.constant 0 : i32
    %c0_i32_1 = arith.constant 0 : i32
    return %c0_i32, %c0_i32_0 : i32, i32
  }
  func.func @transform_3(%arg0: i32) -> (i32, i32) {
    %c0_i32 = arith.constant 0 : i32
    %c0_i32_0 = arith.constant 0 : i32
    %c0_i32_1 = arith.constant 0 : i32
    return %c0_i32, %c0_i32_0 : i32, i32
  }
  func.func @transform_4(%arg0: i32) -> (i32, i32, i32) {
    %c0_i32 = arith.constant 0 : i32
    %c0_i32_0 = arith.constant 0 : i32
    %c0_i32_1 = arith.constant 0 : i32
    return %c0_i32, %arg0, %c0_i32_0 : i32, i32, i32
  }
}

</mosaic_0001>

<bundles_post_ra>
// kernel: tpu_custom_call.1
= control target key start
LH: loop header
LB: loop body
LE: loop exit
PB: predicated region body
PF: predicated region fallthrough
CT: control target
= control target key end

     0   :  { %9 = vsyncpa [#allocation4], 0  ;;  %s7659_s0 = inlined_call_operand.hbm [shape: bf16[8,16,128], index: 0, kind: input, shape index: {}]   ;;  %s7660_s1 = inlined_call_operand.hbm [shape: bf16[128,768], index: 1, kind: input, shape index: {}]   ;;  %s7661_s2 = inlined_call_operand.hbm [shape: f32[1,768], index: 2, kind: input, shape index: {}]   ;;  %s7662_s3 = inlined_call_operand.hbm [shape: bf16[128,640], index: 3, kind: input, shape index: {}]   ;;  %s7663_s4 = inlined_call_operand.hbm [shape: bf16[8,16,128], index: 4, kind: output, shape index: {}]  }
   0x1   :  { %10 = vsyncpa [#allocation7], 0 }
   0x2   :  { %11 = vsyncpa [#allocation10], 0 }
   0x3   :  { %12 = vsyncpa [#allocation5], 0  ;;  %s6709_s15 = smov [#allocation6]  }
   0x4   :  { %s30_s16 = sshll.u32 %s6709_s15, 4  ;;  %s31_s16 = int_to_ptr.vmem [resolvable:$true] %s30_s16 }
   0x5   :  { %s6609_s17 = scalar_lea.vmem %s31_s16, 6144  ;;  %p6614_p1 = scmp.lt.s32.totalorder %s31_s16, %s31_s16 }
   0x6   :  { %p6610_p0 = scmp.ne.s32.totalorder %s31_s16, %s6609_s17  ;;  %p6615_p2 = scmp.lt.s32.totalorder %s6609_s17, %s6609_s17 }
   0x8   :  { %p6616_p3 = por %p6615_p2, %p6614_p1 }
   0xa   :  { %p6617_p4 = pnand %p6616_p3, %p6610_p0 }
   0xc   :  { %6620 = shalt.err (!%p6617_p4)
}
   0xd   :  { %s6710_s18 = smov 384   ;;  %s6711_s19 = smov 24  }
   0xe   :  { %36 = dma.hbm_to_vmem [thread:$0]  %s7660_s1, 6144, %s31_s16, [#allocation7], %s6710_s18, %s6710_s18, %s6711_s19  }
   0xf   :  { %s6712_s22 = smov [#allocation3]  }
  0x10   :  { %s18_s23 = sshll.u32 %s6712_s22, 4  ;;  %s19_s23 = int_to_ptr.vmem [resolvable:$true] %s18_s23 }
  0x11   :  { %s6629_s24 = scalar_lea.vmem %s19_s23, 1024  ;;  %p6634_p6 = scmp.lt.s32.totalorder %s19_s23, %s19_s23 }
  0x12   :  { %p6630_p5 = scmp.ne.s32.totalorder %s19_s23, %s6629_s24  ;;  %p6635_p7 = scmp.lt.s32.totalorder %s6629_s24, %s6629_s24 }
  0x14   :  { %p6636_p8 = por %p6635_p7, %p6634_p6 }
  0x16   :  { %p6637_p9 = pnand %p6636_p8, %p6630_p5 }
  0x18   :  { %6640 = shalt.err (!%p6637_p9)
}
  0x19   :  { %s6713_s25 = smov 64   ;;  %s6714_s26 = smov 4  }
  0x1a   :  { %24 = dma.hbm_to_vmem [thread:$0]  %s7659_s0, 1024, %s19_s23, [#allocation4], %s6713_s25, %s6713_s25, %s6714_s26  }
  0x1b   :  { %s6715_s1 = smov [#allocation8]   ;;  %s6716_s30 = smov [#allocation9]  }
  0x1c   :  { %s43_s29 = sshll.u32 %s6715_s1, 4  ;;  %s52_s5 = sshll.u32 %s6716_s30, 4  ;;  %s44_s29 = int_to_ptr.vmem [resolvable:$true] %s43_s29  ;;  %s53_s5 = int_to_ptr.vmem [resolvable:$true] %s52_s5 }
  0x1d   :  { %s6649_s6 = scalar_lea.vmem %s44_s29, 96  ;;  %p6654_p11 = scmp.lt.s32.totalorder %s44_s29, %s44_s29 }
  0x1e   :  { %p6650_p10 = scmp.ne.s32.totalorder %s44_s29, %s6649_s6  ;;  %p6655_p12 = scmp.lt.s32.totalorder %s6649_s6, %s6649_s6 }
  0x20   :  { %p6656_p13 = por %p6655_p12, %p6654_p11 }
  0x22   :  { %p6657_p0 = pnand %p6656_p13, %p6650_p10 }
  0x24   :  { %6660 = shalt.err (!%p6657_p0)
}
  0x25   :  { %46 = dma.hbm_to_vmem [thread:$0]  %s7661_s2, 96, %s44_s29, [#allocation7]  }
  0x26   :  { %s6669_s9 = scalar_lea.vmem %s53_s5, 5120  ;;  %p6674_p2 = scmp.lt.s32.totalorder %s53_s5, %s53_s5 }
  0x27   :  { %p6670_p1 = scmp.ne.s32.totalorder %s53_s5, %s6669_s9  ;;  %p6675_p3 = scmp.lt.s32.totalorder %s6669_s9, %s6669_s9 }
  0x29   :  { %p6676_p4 = por %p6675_p3, %p6674_p2 }
  0x2b   :  { %p6677_p5 = pnand %p6676_p4, %p6670_p1 }
  0x2d   :  { %6680 = shalt.err (!%p6677_p5)
}
  0x2e   :  { %s6717_s0 = smov 320   ;;  %s6718_s10 = smov 20  }
  0x2f   :  { %58 = dma.hbm_to_vmem [thread:$0]  %s7662_s3, 5120, %s53_s5, [#allocation10], %s6717_s0, %s6717_s0, %s6718_s10  }
  0x30   :  { %6701 = dma.done.wait [#allocation4], 1024  }
  0x31   :  { %6702 = vsyncadd [#allocation4], 4294966272 }
  0x32   :  { %6703 = dma.done.wait [#allocation7], 6240  }
  0x33   :  { %6704 = vsyncadd [#allocation7], 4294961056 }
  0x34   :  { %6705 = dma.done.wait [#allocation10], 5120  }
  0x35   :  { %6706 = vsyncadd [#allocation10], 4294962176  ;;  %v7664_v0 = vmov 0   ;;  %v5962_v1 = vld [vmem:[#allocation6 + $0x154] ss:$24 sps:$4 sm:$0xff]   ;;  %v6765_v35 = vld [vmem:[#allocation3] sm:$0xff]  }
  0x36   :  { %488 = vmatprep.mubr.bf16.mxu0 %v7664_v0  ;;  %601 = vmatprep.mubr.bf16.mxu1 %v7664_v0  ;;  %v5964_v2 = vld [vmem:[#allocation6 + $0x15c] ss:$24 sps:$4 sm:$0xff]   ;;  %v5966_v3 = vld [vmem:[#allocation6 + $0x150] ss:$24 sps:$4 sm:$0xff]   ;;  %v5970_v6 = vld [vmem:[#allocation6 + $0x12c] ss:$24 sps:$4 sm:$0xff]  }
  0x37   :  { %456 = vmatprep.subr.bf16.mxu0 %v5962_v1  ;;  %v5967_v4 = vld [vmem:[#allocation6 + $0x158] ss:$24 sps:$4 sm:$0xff]   ;;  %569 = vmatprep.subr.bf16.mxu1 %v5964_v2  ;;  %v5968_v5 = vld [vmem:[#allocation6 + $0x124] ss:$24 sps:$4 sm:$0xff]   ;;  %v5973_v8 = vld [vmem:[#allocation6 + $0x128] ss:$24 sps:$4 sm:$0xff]  }
  0x38   :  { %457 = vmatpush1.bf16.msra.mxu0 %v5966_v3  ;;  %570 = vmatpush1.bf16.msra.mxu1 %v5967_v4  ;;  %v5972_v7 = vld [vmem:[#allocation6 + $0x120] ss:$24 sps:$4 sm:$0xff]   ;;  %v5974_v9 = vld [vmem:[#allocation6 + $0xf4] ss:$24 sps:$4 sm:$0xff]   ;;  %v5978_v11 = vld [vmem:[#allocation6 + $0xf0] ss:$24 sps:$4 sm:$0xff]  }
  0x39   :  { %458 = vmatprep.subr.bf16.mxu0 %v5968_v5  ;;  %571 = vmatprep.subr.bf16.mxu1 %v5970_v6  ;;  %v5976_v10 = vld [vmem:[#allocation6 + $0xfc] ss:$24 sps:$4 sm:$0xff]   ;;  %v5979_v12 = vld [vmem:[#allocation6 + $0xf8] ss:$24 sps:$4 sm:$0xff]   ;;  %v5982_v14 = vld [vmem:[#allocation6 + $0xcc] ss:$24 sps:$4 sm:$0xff]  }
  0x3a   :  { %v5980_v13 = vld [vmem:[#allocation6 + $0xc4] ss:$24 sps:$4 sm:$0xff]   ;;  %v5984_v15 = vld [vmem:[#allocation6 + $0xc0] ss:$24 sps:$4 sm:$0xff]   ;;  %v5986_v17 = vld [vmem:[#allocation6 + $0x94] ss:$24 sps:$4 sm:$0xff]  }
  0x3b   :  { %v5985_v16 = vld [vmem:[#allocation6 + $0xc8] ss:$24 sps:$4 sm:$0xff]   ;;  %v5988_v18 = vld [vmem:[#allocation6 + $0x9c] ss:$24 sps:$4 sm:$0xff]   ;;  %v5991_v20 = vld [vmem:[#allocation6 + $0x98] ss:$24 sps:$4 sm:$0xff]  }
  0x3c   :  { %459 = vmatpush1.bf16.msra.mxu0 %v5972_v7  ;;  %572 = vmatpush1.bf16.msra.mxu1 %v5973_v8  ;;  %v5990_v19 = vld [vmem:[#allocation6 + $0x90] ss:$24 sps:$4 sm:$0xff]   ;;  %v5992_v21 = vld [vmem:[#allocation6 + $0x64] ss:$24 sps:$4 sm:$0xff]   ;;  %v5996_v23 = vld [vmem:[#allocation6 + $0x60] ss:$24 sps:$4 sm:$0xff]  }
  0x3d   :  { %460 = vmatprep.subr.bf16.mxu0 %v5974_v9  ;;  %573 = vmatprep.subr.bf16.mxu1 %v5976_v10  ;;  %v5994_v22 = vld [vmem:[#allocation6 + $0x6c] ss:$24 sps:$4 sm:$0xff]   ;;  %v5997_v24 = vld [vmem:[#allocation6 + $0x68] ss:$24 sps:$4 sm:$0xff]   ;;  %v6000_v26 = vld [vmem:[#allocation6 + $0x3c] ss:$24 sps:$4 sm:$0xff]  }
  0x3e   :  { %v5998_v25 = vld [vmem:[#allocation6 + $0x34] ss:$24 sps:$4 sm:$0xff]   ;;  %v6002_v27 = vld [vmem:[#allocation6 + $0x30] ss:$24 sps:$4 sm:$0xff]   ;;  %v6004_v29 = vld [vmem:[#allocation6 + $0x4] ss:$24 sps:$4 sm:$0xff]  }
  0x3f   :  { %v6003_v28 = vld [vmem:[#allocation6 + $0x38] ss:$24 sps:$4 sm:$0xff]   ;;  %v6006_v30 = vld [vmem:[#allocation6 + $0xc] ss:$24 sps:$4 sm:$0xff]   ;;  %v6009_v32 = vld [vmem:[#allocation6 + $0x8] ss:$24 sps:$4 sm:$0xff]  }
  0x40   :  { %461 = vmatpush1.bf16.msra.mxu0 %v5978_v11  ;;  %574 = vmatpush1.bf16.msra.mxu1 %v5979_v12  ;;  %v6008_v31 = vld [vmem:[#allocation6] ss:$24 sps:$4 sm:$0xff]   ;;  %v6013_v33 = vld [vmem:[#allocation6 + $0x164] ss:$24 sps:$4 sm:$0xff]   ;;  %v6017_v37 = vld [vmem:[#allocation6 + $0x134] ss:$24 sps:$4 sm:$0xff]  }
  0x41   :  { %462 = vmatprep.subr.bf16.mxu0 %v5980_v13  ;;  %575 = vmatprep.subr.bf16.mxu1 %v5982_v14  ;;  %v6020_v34 = vld [vmem:[#allocation9 + $0x11c] ss:$20 sps:$4 sm:$0xff]   ;;  %v6018_v38 = vld [vmem:[#allocation9 + $0x118] ss:$20 sps:$4 sm:$0xff]   ;;  %v6027_v39 = vld [vmem:[#allocation9 + $0xf4] ss:$20 sps:$4 sm:$0xff]  }
  0x42   :  { %v6011_v36 = vld [vmem:[#allocation6 + $0x160] ss:$24 sps:$4 sm:$0xff]   ;;  %v6015_v40 = vld [vmem:[#allocation6 + $0x130] ss:$24 sps:$4 sm:$0xff]   ;;  %v6024_v41 = vld [vmem:[#allocation6 + $0x104] ss:$24 sps:$4 sm:$0xff]  }
  0x43   :  { %v6025_v42 = vld [vmem:[#allocation9 + $0xf0] ss:$20 sps:$4 sm:$0xff]   ;;  %v6034_v46 = vld [vmem:[#allocation9 + $0xcc] ss:$20 sps:$4 sm:$0xff]   ;;  %v6032_v47 = vld [vmem:[#allocation9 + $0xc8] ss:$20 sps:$4 sm:$0xff]  }
  0x44   :  { %463 = vmatpush1.bf16.msra.mxu0 %v5984_v15  ;;  %576 = vmatpush1.bf16.msra.mxu1 %v5985_v16  ;;  %v6771_v43 = vld [vmem:[#allocation3 + $0x8] sm:$0xff]   ;;  %v6022_v44 = vld [vmem:[#allocation6 + $0x100] ss:$24 sps:$4 sm:$0xff]   ;;  %v6038_v50 = vld [vmem:[#allocation6 + $0xa4] ss:$24 sps:$4 sm:$0xff]   ;;  %v7666_v8 = vmov 0.0  }
  0x45   :  { %464 = vmatprep.subr.bf16.mxu0 %v5986_v17  ;;  %577 = vmatprep.subr.bf16.mxu1 %v5988_v18  ;;  %v6031_v45 = vld [vmem:[#allocation6 + $0xd4] ss:$24 sps:$4 sm:$0xff]   ;;  %v6029_v49 = vld [vmem:[#allocation6 + $0xd0] ss:$24 sps:$4 sm:$0xff]   ;;  %v6036_v53 = vld [vmem:[#allocation6 + $0xa0] ss:$24 sps:$4 sm:$0xff]  }
  0x46   :  { %v6041_v48 = vld [vmem:[#allocation9 + $0xa4] ss:$20 sps:$4 sm:$0xff]   ;;  %v6039_v51 = vld [vmem:[#allocation9 + $0xa0] ss:$20 sps:$4 sm:$0xff]   ;;  %v6777_v52 = vld [vmem:[#allocation3 + $0x10] sm:$0xff]   ;;  %vm6721_vm0 = vmmov 0  }
  0x47   :  { %v6048_v54 = vld [vmem:[#allocation9 + $0x7c] ss:$20 sps:$4 sm:$0xff]   ;;  %v6046_v56 = vld [vmem:[#allocation9 + $0x78] ss:$20 sps:$4 sm:$0xff]   ;;  %v6055_v57 = vld [vmem:[#allocation9 + $0x54] ss:$20 sps:$4 sm:$0xff]  }
  0x48   :  { %465 = vmatpush1.bf16.msra.mxu0 %v5990_v19  ;;  %578 = vmatpush1.bf16.msra.mxu1 %v5991_v20  ;;  %v6045_v55 = vld [vmem:[#allocation6 + $0x74] ss:$24 sps:$4 sm:$0xff]   ;;  %v6043_v58 = vld [vmem:[#allocation6 + $0x70] ss:$24 sps:$4 sm:$0xff]   ;;  %v6052_v59 = vld [vmem:[#allocation6 + $0x44] ss:$24 sps:$4 sm:$0xff]  }
  0x49   :  { %466 = vmatprep.subr.bf16.mxu0 %v5992_v21  ;;  %579 = vmatprep.subr.bf16.mxu1 %v5994_v22  ;;  %v6053_v60 = vld [vmem:[#allocation9 + $0x50] ss:$20 sps:$4 sm:$0xff]   ;;  %v6056_v63 = vld [vmem:[#allocation9 + $0x28] ss:$20 sps:$4 sm:$0xff]   ;;  %v6058_v1 = vld [vmem:[#allocation9 + $0x2c] ss:$20 sps:$4 sm:$0xff]  }
  0x4a   :  { %v6783_v61 = vld [vmem:[#allocation3 + $0x18] sm:$0xff]   ;;  %v6062_v2 = vld [vmem:[#allocation6 + $0x14] ss:$24 sps:$4 sm:$0xff]   ;;  %v6060_v4 = vld [vmem:[#allocation6 + $0x10] ss:$24 sps:$4 sm:$0xff]   ;;  %s6722_s2 = smov [#allocation11]  }
  0x4b   :  { %v6050_v62 = vld [vmem:[#allocation6 + $0x40] ss:$24 sps:$4 sm:$0xff]   ;;  %v6798_v9 = vld [vmem:[#allocation3 + $0x28] sm:$0xff]   ;;  %v6805_v10 = vld [vmem:[#allocation3 + $0x30] sm:$0xff]   ;;  %s5094_s3 = sshll.u32 %s6722_s2, 4  ;;  %s5095_s3 = int_to_ptr.vmem [resolvable:$true] %s5094_s3 }
  0x4c   :  { %467 = vmatpush1.bf16.msra.mxu0 %v5996_v23  ;;  %580 = vmatpush1.bf16.msra.mxu1 %v5997_v24  ;;  %v6065_v3 = vld [vmem:[#allocation9 + $0x4] ss:$20 sps:$4 sm:$0xff]   ;;  %v6063_v5 = vld [vmem:[#allocation9] ss:$20 sps:$4 sm:$0xff]   ;;  %v6069_v13 = vld [vmem:[#allocation9 + $0x128] ss:$20 sps:$4 sm:$0xff]   ;;  %p6686_p7 = scmp.lt.s32.totalorder %s5095_s3, %s5095_s3 }
  0x4d   :  { %468 = vmatprep.subr.bf16.mxu0 %v5998_v25  ;;  %581 = vmatprep.subr.bf16.mxu1 %v6000_v26  ;;  %v6789_v6 = vld [vmem:[#allocation3 + $0x20] sm:$0xff]   ;;  %v6811_v11 = vld [vmem:[#allocation3 + $0x38] sm:$0xff]   ;;  %s6681_s13 = scalar_lea.vmem %s5095_s3, 1024 }
  0x4e   :  { %v6791_v7 = vld [vmem:[#allocation9 + $0x124] ss:$20 sps:$4 sm:$0xff]   ;;  %v6817_v12 = vld [vmem:[#allocation9 + $0x120] ss:$20 sps:$4 sm:$0xff]   ;;  %v6819_v14 = vld [vmem:[#allocation9 + $0xfc] ss:$20 sps:$4 sm:$0xff]   ;;  %p6682_p6 = scmp.ne.s32.totalorder %s5095_s3, %s6681_s13  ;;  %p6687_p8 = scmp.lt.s32.totalorder %s6681_s13, %s6681_s13 }
  0x4f   :  { %v6821_v15 = vld [vmem:[#allocation9 + $0xf8] ss:$20 sps:$4 sm:$0xff]   ;;  %v6076_v16 = vld [vmem:[#allocation9 + $0x100] ss:$20 sps:$4 sm:$0xff]   ;;  %v6830_v18 = vld [vmem:[#allocation9 + $0xd0] ss:$20 sps:$4 sm:$0xff]  }
  0x50   :  { %469 = vmatpush1.bf16.msra.mxu0 %v6002_v27  ;;  %582 = vmatpush1.bf16.msra.mxu1 %v6003_v28  ;;  %v6825_v17 = vld [vmem:[#allocation9 + $0xd4] ss:$20 sps:$4 sm:$0xff]   ;;  %v6834_v19 = vld [vmem:[#allocation9 + $0xac] ss:$20 sps:$4 sm:$0xff]   ;;  %v6082_v22 = vld [vmem:[#allocation9 + $0x84] ss:$20 sps:$4 sm:$0xff]   ;;  %p6688_p9 = por %p6687_p8, %p6686_p7 }
  0x51   :  { %470 = vmatprep.subr.bf16.mxu0 %v6004_v29  ;;  %583 = vmatprep.subr.bf16.mxu1 %v6006_v30  ;;  %v6083_v20 = vld [vmem:[#allocation9 + $0xd8] ss:$20 sps:$4 sm:$0xff]   ;;  %v6077_v21 = vld [vmem:[#allocation9 + $0xa8] ss:$20 sps:$4 sm:$0xff]   ;;  %v6090_v23 = vld [vmem:[#allocation9 + $0xb0] ss:$20 sps:$4 sm:$0xff]  }
  0x52   :  { %v6080_v24 = vld [vmem:[#allocation9 + $0x80] ss:$20 sps:$4 sm:$0xff]   ;;  %v6086_v25 = vld [vmem:[#allocation9 + $0x5c] ss:$20 sps:$4 sm:$0xff]   ;;  %v6084_v27 = vld [vmem:[#allocation9 + $0x58] ss:$20 sps:$4 sm:$0xff]   ;;  %p6689_p10 = pnand %p6688_p9, %p6682_p6 }
  0x53   :  { %v6094_v26 = vld [vmem:[#allocation9 + $0x88] ss:$20 sps:$4 sm:$0xff]   ;;  %v6095_v29 = vld [vmem:[#allocation9 + $0x60] ss:$20 sps:$4 sm:$0xff]   ;;  %v6087_v30 = vld [vmem:[#allocation9 + $0x30] ss:$20 sps:$4 sm:$0xff]  }
  0x54   :  { %471 = vmatpush1.bf16.msra.mxu0 %v6008_v31  ;;  %584 = vmatpush1.bf16.msra.mxu1 %v6009_v32  ;;  %v6089_v28 = vld [vmem:[#allocation9 + $0x34] ss:$20 sps:$4 sm:$0xff]   ;;  %v6093_v31 = vld [vmem:[#allocation9 + $0xc] ss:$20 sps:$4 sm:$0xff]  }
  0x55   :  { %682 = vmatprep.subr.bf16.mxu0 %v6013_v33  ;;  %1393 = vmatprep.subr.bf16.mxu1 %v6020_v34  ;;  %v6096_v32 = vld [vmem:[#allocation9 + $0x38] ss:$20 sps:$4 sm:$0xff]   ;;  %v6091_v33 = vld [vmem:[#allocation9 + $0x8] ss:$20 sps:$4 sm:$0xff]   ;;  %v6097_v34 = vld [vmem:[#allocation9 + $0x10] ss:$20 sps:$4 sm:$0xff]  }
  0x57   :  { %489 = vmatmul.mubr.bf16.vlgmr.msra.gmra.mxu0 %v6765_v35  ;;  %602 = vmatmul.mubr.bf16.vlgmr.msra.gmra.mxu1 %v6765_v35 }
  0x58   :  { %683 = vmatpush1.bf16.msra.mxu0 %v6011_v36  ;;  %498 = vmatprep.mubr.bf16.mxu0 %v7664_v0 }
  0x59   :  { %611 = vmatprep.mubr.bf16.mxu1 %v7664_v0  ;;  %684 = vmatprep.subr.bf16.mxu0 %v6017_v37 }
  0x5a   :  { %1394 = vmatpush1.bf16.msra.mxu1 %v6018_v38 }
  0x5b   :  { %1395 = vmatprep.subr.bf16.mxu1 %v6027_v39 }
  0x5c   :  { %685 = vmatpush1.bf16.msra.mxu0 %v6015_v40 }
  0x5d   :  { %686 = vmatprep.subr.bf16.mxu0 %v6024_v41  ;;  %v6878_v41 = vld [vmem:[#allocation8] sm:$0x3f] }
  0x5e   :  { %1396 = vmatpush1.bf16.msra.mxu1 %v6025_v42 }
  0x5f   :  { %499 = vmatmul.mubr.bf16.gmra.mxu0 %v6771_v43  ;;  %612 = vmatmul.mubr.bf16.gmra.mxu1 %v6771_v43 }
  0x60   :  { %508 = vmatprep.mubr.bf16.mxu0 %v7664_v0  ;;  %621 = vmatprep.mubr.bf16.mxu1 %v7664_v0 }
  0x61   :  { %687 = vmatpush1.bf16.msra.mxu0 %v6022_v44  ;;  %1397 = vmatprep.subr.bf16.mxu1 %v6034_v46 }
  0x62   :  { %688 = vmatprep.subr.bf16.mxu0 %v6031_v45  ;;  %1398 = vmatpush1.bf16.msra.mxu1 %v6032_v47 }
  0x63   :  { %1399 = vmatprep.subr.bf16.mxu1 %v6041_v48 }
  0x65   :  { %689 = vmatpush1.bf16.msra.mxu0 %v6029_v49 }
  0x66   :  { %690 = vmatprep.subr.bf16.mxu0 %v6038_v50  ;;  %1400 = vmatpush1.bf16.msra.mxu1 %v6039_v51 }
  0x67   :  { %509 = vmatmul.mubr.bf16.gmra.mxu0 %v6777_v52  ;;  %622 = vmatmul.mubr.bf16.gmra.mxu1 %v6777_v52 }
  0x68   :  { %518 = vmatprep.mubr.bf16.mxu0 %v7664_v0  ;;  %631 = vmatprep.mubr.bf16.mxu1 %v7664_v0 }
  0x69   :  { %691 = vmatpush1.bf16.msra.mxu0 %v6036_v53  ;;  %1401 = vmatprep.subr.bf16.mxu1 %v6048_v54 }
  0x6a   :  { %692 = vmatprep.subr.bf16.mxu0 %v6045_v55  ;;  %1402 = vmatpush1.bf16.msra.mxu1 %v6046_v56 }
  0x6b   :  { %1403 = vmatprep.subr.bf16.mxu1 %v6055_v57 }
  0x6d   :  { %693 = vmatpush1.bf16.msra.mxu0 %v6043_v58 }
  0x6e   :  { %694 = vmatprep.subr.bf16.mxu0 %v6052_v59  ;;  %1404 = vmatpush1.bf16.msra.mxu1 %v6053_v60 }
  0x6f   :  { %519 = vmatmul.mubr.bf16.gmra.mxu0 %v6783_v61  ;;  %632 = vmatmul.mubr.bf16.gmra.mxu1 %v6783_v61 }
  0x70   :  { %528 = vmatprep.mubr.bf16.mxu0 %v7664_v0  ;;  %641 = vmatprep.mubr.bf16.mxu1 %v7664_v0 }
  0x71   :  { %695 = vmatpush1.bf16.msra.mxu0 %v6050_v62  ;;  %1405 = vmatprep.subr.bf16.mxu1 %v6058_v1 }
  0x72   :  { %696 = vmatprep.subr.bf16.mxu0 %v6062_v2  ;;  %1406 = vmatpush1.bf16.msra.mxu1 %v6056_v63 }
  0x73   :  { %1407 = vmatprep.subr.bf16.mxu1 %v6065_v3 }
  0x75   :  { %697 = vmatpush1.bf16.msra.mxu0 %v6060_v4 }
  0x76   :  { %1408 = vmatpush1.bf16.msra.mxu1 %v6063_v5  ;;  %5788 = vmatprep.subr.bf16.mxu0 %v7666_v8 }
  0x77   :  { %529 = vmatmul.mubr.bf16.gmra.mxu0 %v6789_v6  ;;  %642 = vmatmul.mubr.bf16.gmra.mxu1 %v6789_v6 }
  0x78   :  { %538 = vmatprep.mubr.bf16.mxu0 %v7664_v0  ;;  %651 = vmatprep.mubr.bf16.mxu1 %v7664_v0 }
  0x79   :  { %1436 = vmatprep.subr.bf16.mxu1 %v6791_v7 }
  0x7f   :  { %539 = vmatmul.mubr.bf16.gmra.mxu0 %v6798_v9  ;;  %652 = vmatmul.mubr.bf16.gmra.mxu1 %v6798_v9 }
  0x80   :  { %548 = vmatprep.mubr.bf16.mxu0 %v7664_v0  ;;  %661 = vmatprep.mubr.bf16.mxu1 %v7664_v0 }
  0x87   :  { %549 = vmatmul.mubr.bf16.gmra.mxu0 %v6805_v10  ;;  %662 = vmatmul.mubr.bf16.gmra.mxu1 %v6805_v10 }
  0x88   :  { %558 = vmatprep.mubr.bf16.mxu0 %v7664_v0  ;;  %671 = vmatprep.mubr.bf16.mxu1 %v7664_v0 }
  0x8f   :  { %559 = vmatmul.mubr.bf16.gmra.mxu0 %v6811_v11  ;;  %672 = vmatmul.mubr.bf16.gmra.mxu1 %v6811_v11 }
  0x90   :  { %714 = vmatprep.mubr.bf16.mxu0 %v7664_v0  ;;  %1425 = vmatprep.mubr.bf16.mxu1 %v7664_v0 }
  0x97   :  { %715 = vmatmul.mubr.bf16.vlgmr.msra.gmra.mxu0 %v6765_v35  ;;  %1426 = vmatmul.mubr.bf16.vlgmr.msra.gmra.mxu1 %v7664_v0  ;;  %v138_v35 = vlaneseq }
  0x98   :  { %1437 = vmatpush1.bf16.msra.mxu1 %v6817_v12  ;;  %5789 = vmatpush3.bf16.msra.mxu0 %v6069_v13 }
  0x99   :  { %1438 = vmatprep.subr.bf16.mxu1 %v6819_v14  ;;  %724 = vmatprep.mubr.bf16.mxu0 %v7664_v0  ;;  %v6872_v36 = vshrl.u32 %v138_v35, 7 }
  0x9a   :  { %5790 = vmatprep.subr.bf16.mxu0 %v7666_v8  ;;  %1468 = vmatprep.mubr.bf16.mxu1 %v7664_v0 }
  0x9b   :  { %v148_v37 = vsub.s32 2, %v6872_v36  ;;  %v140_v38 = vsub.s32 0, %v6872_v36  ;;  %v144_v39 = vsub.s32 1, %v6872_v36  ;;  %v152_v40 = vsub.s32 3, %v6872_v36 }
  0x9c   :  { %1439 = vmatpush1.bf16.msra.mxu1 %v6821_v15  ;;  %5791 = vmatpush3.bf16.msra.mxu0 %v6076_v16 }
  0x9d   :  { %1440 = vmatprep.subr.bf16.mxu1 %v6825_v17  ;;  %5792 = vmatprep.subr.bf16.mxu0 %v7666_v8  ;;  %v6881_v42 = vrot.slane %v6878_v41, %v148_v37  ;;  %v6887_v44 = vrot.slane %v6878_v41, %v144_v39  ;;  %v6890_v45 = vrot.slane %v6878_v41, %v152_v40  ;;  %v6935_v37 = vld [vmem:[#allocation9 + $0xf4] ss:$20 sps:$4 sm:$0xff]  }
  0x9f   :  { %725 = vmatmul.mubr.bf16.gmra.mxu0 %v6771_v43  ;;  %v6884_v43 = vrot.slane %v6878_v41, %v140_v38 }
  0xa0   :  { %1441 = vmatpush1.bf16.msra.mxu1 %v6830_v18  ;;  %734 = vmatprep.mubr.bf16.mxu0 %v7664_v0 }
  0xa1   :  { %1442 = vmatprep.subr.bf16.mxu1 %v6834_v19  ;;  %5793 = vmatpush3.bf16.msra.mxu0 %v6083_v20 }
  0xa2   :  { %5794 = vmatprep.subr.bf16.mxu0 %v7666_v8 }
  0xa4   :  { %1443 = vmatpush1.bf16.msra.mxu1 %v6077_v21 }
  0xa5   :  { %1444 = vmatprep.subr.bf16.mxu1 %v6082_v22  ;;  %5795 = vmatpush3.bf16.msra.mxu0 %v6090_v23 }
  0xa6   :  { %5796 = vmatprep.subr.bf16.mxu0 %v7666_v8 }
  0xa7   :  { %735 = vmatmul.mubr.bf16.gmra.mxu0 %v6777_v52 }
  0xa8   :  { %1445 = vmatpush1.bf16.msra.mxu1 %v6080_v24  ;;  %744 = vmatprep.mubr.bf16.mxu0 %v7664_v0 }
  0xa9   :  { %1446 = vmatprep.subr.bf16.mxu1 %v6086_v25  ;;  %5797 = vmatpush3.bf16.msra.mxu0 %v6094_v26 }
  0xaa   :  { %5798 = vmatprep.subr.bf16.mxu0 %v7666_v8 }
  0xac   :  { %1447 = vmatpush1.bf16.msra.mxu1 %v6084_v27 }
  0xad   :  { %1448 = vmatprep.subr.bf16.mxu1 %v6089_v28  ;;  %5799 = vmatpush3.bf16.msra.mxu0 %v6095_v29  ;;  %v6928_v29 = vld [vmem:[#allocation9 + $0x118] ss:$20 sps:$4 sm:$0xff]  }
  0xae   :  { %5800 = vmatprep.subr.bf16.mxu0 %v7666_v8 }
  0xaf   :  { %745 = vmatmul.mubr.bf16.gmra.mxu0 %v6783_v61 }
  0xb0   :  { %1449 = vmatpush1.bf16.msra.mxu1 %v6087_v30  ;;  %754 = vmatprep.mubr.bf16.mxu0 %v7664_v0 }
  0xb1   :  { %1450 = vmatprep.subr.bf16.mxu1 %v6093_v31  ;;  %5801 = vmatpush3.bf16.msra.mxu0 %v6096_v32 }
  0xb2   :  { %5802 = vmatprep.subr.bf16.mxu0 %v7666_v8 }
  0xb4   :  { %1451 = vmatpush1.bf16.msra.mxu1 %v6091_v33 }
  0xb5   :  { %5803 = vmatpush3.bf16.msra.mxu0 %v6097_v34 }
  0xb6   :  { %1930 = vmatprep.subr.bf16.mxu0 %v6791_v7 }
  0xb7   :  { %1469 = vmatmul.mubr.bf16.vlgmr.msra.gmra.mxu1 %v7664_v0  ;;  %755 = vmatmul.mubr.bf16.gmra.mxu0 %v6789_v6 }
  0xb8   :  { %764 = vmatprep.mubr.bf16.mxu0 %v7664_v0  ;;  %1919 = vmatprep.mubr.bf16.mxu1 %v7664_v0 }
  0xbf   :  { %765 = vmatmul.mubr.bf16.gmra.mxu0 %v6798_v9 }
  0xc0   :  { %774 = vmatprep.mubr.bf16.mxu0 %v7664_v0 }
  0xc7   :  { %775 = vmatmul.mubr.bf16.gmra.mxu0 %v6805_v10 }
  0xc8   :  { %784 = vmatprep.mubr.bf16.mxu0 %v7664_v0 }
  0xcf   :  { %785 = vmatmul.mubr.bf16.gmra.mxu0 %v6811_v11 }
  0xd0   :  { %5804 = vmatprep.mubr.msk.bf16.mxu0 %vm6721_vm0, %v7666_v8 }
  0xd7   :  { %5805 = vmatmul.mubr.bf16.vlgmr.msra.gmra.mxu0 %v7664_v0 }
  0xd8   :  { %1931 = vmatpush1.bf16.msra.mxu0 %v6817_v12  ;;  %1962 = vmatprep.mubr.bf16.mxu0 %v7664_v0 }
  0xd9   :  { %1932 = vmatprep.subr.bf16.mxu0 %v6819_v14 }
  0xdc   :  { %1933 = vmatpush1.bf16.msra.mxu0 %v6821_v15 }
  0xdd   :  { %1934 = vmatprep.subr.bf16.mxu0 %v6825_v17 }
  0xe0   :  { %1935 = vmatpush1.bf16.msra.mxu0 %v6830_v18 }
  0xe1   :  { %1936 = vmatprep.subr.bf16.mxu0 %v6834_v19 }
  0xe4   :  { %1937 = vmatpush1.bf16.msra.mxu0 %v6077_v21 }
  0xe5   :  { %1938 = vmatprep.subr.bf16.mxu0 %v6082_v22 }
  0xe8   :  { %1939 = vmatpush1.bf16.msra.mxu0 %v6080_v24  ;;  %v6920_v24 = vld [vmem:[#allocation9 + $0x11c] ss:$20 sps:$4 sm:$0xff]  }
  0xe9   :  { %1940 = vmatprep.subr.bf16.mxu0 %v6086_v25  ;;  %1887 = vmatprep.subr.bf16.mxu1 %v6920_v24 }
  0xea   :  { %1888 = vmatpush1.bf16.msra.mxu1 %v6928_v29 }
  0xeb   :  { %1889 = vmatprep.subr.bf16.mxu1 %v6935_v37 }
  0xec   :  { %1941 = vmatpush1.bf16.msra.mxu0 %v6084_v27 }
  0xed   :  { %1942 = vmatprep.subr.bf16.mxu0 %v6089_v28 }
  0xf0   :  { %1943 = vmatpush1.bf16.msra.mxu0 %v6087_v30 }
  0xf1   :  { %1944 = vmatprep.subr.bf16.mxu0 %v6093_v31 }
  0xf4   :  { %1945 = vmatpush1.bf16.msra.mxu0 %v6091_v33 }
  0xf5   :  { %2382 = vmatprep.subr.bf16.mxu0 %v6920_v24 }
 0x117   :  { %v490_v46 = vpop.f32.mrf.mxu0  ;;  %v603_v47 = vpop.f32.mrf.mxu1 }
 0x118   :  { %v604_v48 = vadd.f32 %v603_v47, %v6881_v42  ;;  %v491_v51 = vadd.f32 %v490_v46, %v6884_v43  ;;  %v6943_v47 = vld [vmem:[#allocation9 + $0xf0] ss:$20 sps:$4 sm:$0xff]  }
 0x119   :  { %v492_v49 = vpop.f32.mrf.mxu0  ;;  %v605_v50 = vpop.f32.mrf.mxu1  ;;  %1890 = vmatpush1.bf16.msra.mxu1 %v6943_v47 }
 0x11a   :  { %v493_v52 = vadd.f32 %v492_v49, %v6887_v44  ;;  %v606_v53 = vadd.f32 %v605_v50, %v6890_v45 }
 0x11b   :  { %v494_v54 = vpop.f32.mrf.mxu0  ;;  %v607_v55 = vpop.f32.mrf.mxu1 }
 0x11c   :  { %v6896_v56 = vpack.c.bf16 %v493_v52, %v491_v51  ;;  %v6898_v57 = vpack.c.bf16 %v606_v53, %v604_v48  ;;  %v608_v58 = vadd.f32 %v607_v55, %v6881_v42  ;;  %v495_v61 = vadd.f32 %v494_v54, %v6884_v43  ;;  %v6949_v54 = vld [vmem:[#allocation9 + $0xcc] ss:$20 sps:$4 sm:$0xff]  }
 0x11d   :  { %v496_v59 = vpop.f32.mrf.mxu0  ;;  %v609_v60 = vpop.f32.mrf.mxu1  ;;  %1891 = vmatprep.subr.bf16.mxu1 %v6949_v54 }
 0x11e   :  { %v497_v62 = vadd.f32 %v496_v59, %v6887_v44  ;;  %v610_v63 = vadd.f32 %v609_v60, %v6890_v45 }
 0x11f   :  { %v500_v1 = vpop.f32.mrf.mxu0  ;;  %v613_v2 = vpop.f32.mrf.mxu1 }
 0x120   :  { %v6904_v3 = vpack.c.bf16 %v497_v62, %v495_v61  ;;  %v6906_v4 = vpack.c.bf16 %v610_v63, %v608_v58  ;;  %v501_v5 = vadd.f32 %v500_v1, %v6884_v43  ;;  %v614_v6 = vadd.f32 %v613_v2, %v6881_v42  ;;  %v6957_v61 = vld [vmem:[#allocation9 + $0xc8] ss:$20 sps:$4 sm:$0xff]   ;;  %v6959_v62 = vld [vmem:[#allocation9 + $0xa4] ss:$20 sps:$4 sm:$0xff]  }
 0x121   :  { %v502_v7 = vpop.f32.mrf.mxu0  ;;  %v615_v9 = vpop.f32.mrf.mxu1  ;;  %1892 = vmatpush1.bf16.msra.mxu1 %v6957_v61 }
 0x122   :  { %v503_v10 = vadd.f32 %v502_v7, %v6887_v44  ;;  %v616_v11 = vadd.f32 %v615_v9, %v6890_v45  ;;  %1893 = vmatprep.subr.bf16.mxu1 %v6959_v62 }
 0x123   :  { %v504_v12 = vpop.f32.mrf.mxu0  ;;  %v617_v13 = vpop.f32.mrf.mxu1 }
 0x124   :  { %v6912_v14 = vpack.c.bf16 %v503_v10, %v501_v5  ;;  %v6914_v15 = vpack.c.bf16 %v616_v11, %v614_v6  ;;  %v505_v16 = vadd.f32 %v504_v12, %v6884_v43  ;;  %v618_v17 = vadd.f32 %v617_v13, %v6881_v42  ;;  %v6965_v6 = vld [vmem:[#allocation9 + $0xa0] ss:$20 sps:$4 sm:$0xff]   ;;  %v6968_v10 = vld [vmem:[#allocation9 + $0x7c] ss:$20 sps:$4 sm:$0xff]  }
 0x125   :  { %v506_v18 = vpop.f32.mrf.mxu0  ;;  %v619_v19 = vpop.f32.mrf.mxu1  ;;  %1894 = vmatpush1.bf16.msra.mxu1 %v6965_v6 }
 0x126   :  { %v507_v20 = vadd.f32 %v506_v18, %v6887_v44  ;;  %v620_v21 = vadd.f32 %v619_v19, %v6890_v45  ;;  %1895 = vmatprep.subr.bf16.mxu1 %v6968_v10 }
 0x127   :  { %v510_v22 = vpop.f32.mrf.mxu0  ;;  %v623_v23 = vpop.f32.mrf.mxu1 }
 0x128   :  { %v6922_v25 = vpack.c.bf16 %v507_v20, %v505_v16  ;;  %v6924_v26 = vpack.c.bf16 %v620_v21, %v618_v17  ;;  %v511_v27 = vadd.f32 %v510_v22, %v6884_v43  ;;  %v624_v28 = vadd.f32 %v623_v23, %v6881_v42  ;;  %v6979_v21 = vld [vmem:[#allocation9 + $0x78] ss:$20 sps:$4 sm:$0xff]  }
 0x129   :  { %v512_v30 = vpop.f32.mrf.mxu0  ;;  %v625_v31 = vpop.f32.mrf.mxu1  ;;  %1896 = vmatpush1.bf16.msra.mxu1 %v6979_v21 }
 0x12a   :  { %v513_v32 = vadd.f32 %v512_v30, %v6887_v44  ;;  %v626_v33 = vadd.f32 %v625_v31, %v6890_v45 }
 0x12b   :  { %v514_v34 = vpop.f32.mrf.mxu0  ;;  %v627_v35 = vpop.f32.mrf.mxu1 }
 0x12c   :  { %v6937_v38 = vpack.c.bf16 %v513_v32, %v511_v27  ;;  %v6939_v39 = vpack.c.bf16 %v626_v33, %v624_v28  ;;  %v515_v40 = vadd.f32 %v514_v34, %v6884_v43  ;;  %v628_v46 = vadd.f32 %v627_v35, %v6881_v42  ;;  %v6982_v27 = vld [vmem:[#allocation9 + $0x54] ss:$20 sps:$4 sm:$0xff]  }
 0x12d   :  { %v516_v48 = vpop.f32.mrf.mxu0  ;;  %v629_v49 = vpop.f32.mrf.mxu1  ;;  %1897 = vmatprep.subr.bf16.mxu1 %v6982_v27 }
 0x12e   :  { %v517_v50 = vadd.f32 %v516_v48, %v6887_v44  ;;  %v630_v51 = vadd.f32 %v629_v49, %v6890_v45 }
 0x12f   :  { %v520_v52 = vpop.f32.mrf.mxu0  ;;  %v633_v53 = vpop.f32.mrf.mxu1 }
 0x130   :  { %v6951_v55 = vpack.c.bf16 %v517_v50, %v515_v40  ;;  %v6953_v58 = vpack.c.bf16 %v630_v51, %v628_v46  ;;  %v521_v59 = vadd.f32 %v520_v52, %v6884_v43  ;;  %v634_v60 = vadd.f32 %v633_v53, %v6881_v42  ;;  %v6993_v46 = vld [vmem:[#allocation9 + $0x50] ss:$20 sps:$4 sm:$0xff]   ;;  %v6996_v50 = vld [vmem:[#allocation9 + $0x2c] ss:$20 sps:$4 sm:$0xff]  }
 0x131   :  { %v522_v63 = vpop.f32.mrf.mxu0  ;;  %v635_v1 = vpop.f32.mrf.mxu1  ;;  %1898 = vmatpush1.bf16.msra.mxu1 %v6993_v46 }
 0x132   :  { %v523_v2 = vadd.f32 %v522_v63, %v6887_v44  ;;  %v636_v5 = vadd.f32 %v635_v1, %v6890_v45  ;;  %1899 = vmatprep.subr.bf16.mxu1 %v6996_v50 }
 0x133   :  { %v524_v7 = vpop.f32.mrf.mxu0  ;;  %v637_v9 = vpop.f32.mrf.mxu1 }
 0x134   :  { %v6970_v11 = vpack.c.bf16 %v523_v2, %v521_v59  ;;  %v6972_v12 = vpack.c.bf16 %v636_v5, %v634_v60  ;;  %v525_v13 = vadd.f32 %v524_v7, %v6884_v43  ;;  %v638_v16 = vadd.f32 %v637_v9, %v6881_v42  ;;  %v7007_v5 = vld [vmem:[#allocation9 + $0x28] ss:$20 sps:$4 sm:$0xff]  }
 0x135   :  { %v526_v17 = vpop.f32.mrf.mxu0  ;;  %v639_v18 = vpop.f32.mrf.mxu1  ;;  %1900 = vmatpush1.bf16.msra.mxu1 %v7007_v5 }
 0x136   :  { %7695 = vst [vmem:[#allocation16_spill] sm:$0xff] %v6970_v11  ;;  %v527_v19 = vadd.f32 %v526_v17, %v6887_v44  ;;  %v640_v20 = vadd.f32 %v639_v18, %v6890_v45 }
 0x137   :  { %v530_v22 = vpop.f32.mrf.mxu0  ;;  %v643_v23 = vpop.f32.mrf.mxu1 }
 0x138   :  { %v6984_v28 = vpack.c.bf16 %v527_v19, %v525_v13  ;;  %v6986_v30 = vpack.c.bf16 %v640_v20, %v638_v16  ;;  %v531_v31 = vadd.f32 %v530_v22, %v6884_v43  ;;  %v644_v32 = vadd.f32 %v643_v23, %v6881_v42  ;;  %v7010_v13 = vld [vmem:[#allocation9 + $0x4] ss:$20 sps:$4 sm:$0xff]  }
 0x139   :  { %v532_v33 = vpop.f32.mrf.mxu0  ;;  %v645_v34 = vpop.f32.mrf.mxu1  ;;  %1901 = vmatprep.subr.bf16.mxu1 %v7010_v13 }
 0x13a   :  { %7696 = vst [vmem:[#allocation17_spill] sm:$0xff] %v6984_v28  ;;  %7697 = vst [vmem:[#allocation18_spill] sm:$0xff] %v6986_v30  ;;  %v533_v35 = vadd.f32 %v532_v33, %v6887_v44  ;;  %v646_v40 = vadd.f32 %v645_v34, %v6890_v45 }
 0x13b   :  { %v534_v48 = vpop.f32.mrf.mxu0  ;;  %v647_v49 = vpop.f32.mrf.mxu1 }
 0x13c   :  { %v6998_v51 = vpack.c.bf16 %v533_v35, %v531_v31  ;;  %v7000_v52 = vpack.c.bf16 %v646_v40, %v644_v32  ;;  %v535_v53 = vadd.f32 %v534_v48, %v6884_v43  ;;  %v648_v59 = vadd.f32 %v647_v49, %v6881_v42  ;;  %v7021_v32 = vld [vmem:[#allocation9] ss:$20 sps:$4 sm:$0xff]  }
 0x13d   :  { %v536_v60 = vpop.f32.mrf.mxu0  ;;  %v649_v63 = vpop.f32.mrf.mxu1  ;;  %1902 = vmatpush1.bf16.msra.mxu1 %v7021_v32 }
 0x13e   :  { %7698 = vst [vmem:[#allocation19_spill] sm:$0xff] %v6998_v51  ;;  %7699 = vst [vmem:[#allocation20_spill] sm:$0xff] %v7000_v52  ;;  %v537_v1 = vadd.f32 %v536_v60, %v6887_v44  ;;  %v650_v2 = vadd.f32 %v649_v63, %v6890_v45  ;;  %5808 = vmatprep.subr.bf16.mxu1 %v7666_v8 }
 0x13f   :  { %v540_v7 = vpop.f32.mrf.mxu0  ;;  %v653_v9 = vpop.f32.mrf.mxu1 }
 0x140   :  { %v7012_v16 = vpack.c.bf16 %v537_v1, %v535_v53  ;;  %v7014_v17 = vpack.c.bf16 %v650_v2, %v648_v59  ;;  %v541_v18 = vadd.f32 %v540_v7, %v6884_v43  ;;  %v654_v19 = vadd.f32 %v653_v9, %v6881_v42 }
 0x141   :  { %v542_v20 = vpop.f32.mrf.mxu0  ;;  %v655_v22 = vpop.f32.mrf.mxu1 }
 0x142   :  { %7700 = vst [vmem:[#allocation21_spill] sm:$0xff] %v7012_v16  ;;  %7701 = vst [vmem:[#allocation22_spill] sm:$0xff] %v7014_v17  ;;  %v543_v23 = vadd.f32 %v542_v20, %v6887_v44  ;;  %v656_v31 = vadd.f32 %v655_v22, %v6890_v45 }
 0x143   :  { %v544_v33 = vpop.f32.mrf.mxu0  ;;  %v657_v34 = vpop.f32.mrf.mxu1 }
 0x144   :  { %v7024_v35 = vpack.c.bf16 %v543_v23, %v541_v18  ;;  %v7026_v40 = vpack.c.bf16 %v656_v31, %v654_v19  ;;  %v545_v48 = vadd.f32 %v544_v33, %v6884_v43  ;;  %v658_v49 = vadd.f32 %v657_v34, %v6881_v42 }
 0x145   :  { %v546_v53 = vpop.f32.mrf.mxu0  ;;  %v659_v59 = vpop.f32.mrf.mxu1 }
 0x146   :  { %7702 = vst [vmem:[#allocation23_spill] sm:$0xff] %v7024_v35  ;;  %7703 = vst [vmem:[#allocation24_spill] sm:$0xff] %v7026_v40  ;;  %v547_v60 = vadd.f32 %v546_v53, %v6887_v44  ;;  %v660_v63 = vadd.f32 %v659_v59, %v6890_v45 }
 0x147   :  { %v550_v1 = vpop.f32.mrf.mxu0  ;;  %v663_v2 = vpop.f32.mrf.mxu1 }
 0x148   :  { %v7034_v7 = vpack.c.bf16 %v547_v60, %v545_v48  ;;  %v7036_v9 = vpack.c.bf16 %v660_v63, %v658_v49  ;;  %v551_v18 = vadd.f32 %v550_v1, %v6884_v43  ;;  %v664_v19 = vadd.f32 %v663_v2, %v6881_v42 }
 0x149   :  { %v552_v20 = vpop.f32.mrf.mxu0  ;;  %v665_v22 = vpop.f32.mrf.mxu1 }
 0x14a   :  { %7704 = vst [vmem:[#allocation25_spill] sm:$0xff] %v7034_v7  ;;  %7705 = vst [vmem:[#allocation26_spill] sm:$0xff] %v7036_v9  ;;  %v553_v23 = vadd.f32 %v552_v20, %v6887_v44  ;;  %v666_v31 = vadd.f32 %v665_v22, %v6890_v45 }
 0x14b   :  { %v554_v33 = vpop.f32.mrf.mxu0  ;;  %v667_v34 = vpop.f32.mrf.mxu1 }
 0x14c   :  { %v7042_v53 = vpack.c.bf16 %v553_v23, %v551_v18  ;;  %v7044_v59 = vpack.c.bf16 %v666_v31, %v664_v19  ;;  %v555_v48 = vadd.f32 %v554_v33, %v6884_v43  ;;  %v668_v49 = vadd.f32 %v667_v34, %v6881_v42 }
 0x14d   :  { %v556_v60 = vpop.f32.mrf.mxu0  ;;  %v669_v63 = vpop.f32.mrf.mxu1 }
 0x14e   :  { %7706 = vst [vmem:[#allocation27_spill] sm:$0xff] %v7042_v53  ;;  %7707 = vst [vmem:[#allocation28_spill] sm:$0xff] %v7044_v59  ;;  %v557_v1 = vadd.f32 %v556_v60, %v6887_v44  ;;  %v670_v2 = vadd.f32 %v669_v63, %v6890_v45 }
 0x14f   :  { %v560_v0 = vpop.f32.mrf.mxu0  ;;  %v673_v20 = vpop.f32.mrf.mxu1 }
 0x150   :  { %v7050_v8 = vpack.c.bf16 %v557_v1, %v555_v48  ;;  %v7052_v22 = vpack.c.bf16 %v670_v2, %v668_v49  ;;  %v561_v18 = vadd.f32 %v560_v0, %v6884_v43  ;;  %v674_v19 = vadd.f32 %v673_v20, %v6881_v42 }
 0x151   :  { %v562_v23 = vpop.f32.mrf.mxu0  ;;  %v675_v31 = vpop.f32.mrf.mxu1 }
 0x152   :  { %7708 = vst [vmem:[#allocation29_spill] sm:$0xff] %v7050_v8  ;;  %7709 = vst [vmem:[#allocation30_spill] sm:$0xff] %v7052_v22  ;;  %v563_v33 = vadd.f32 %v562_v23, %v6887_v44  ;;  %v676_v34 = vadd.f32 %v675_v31, %v6890_v45 }
 0x153   :  { %v564_v53 = vpop.f32.mrf.mxu0  ;;  %v677_v60 = vpop.f32.mrf.mxu1 }
 0x154   :  { %v7058_v59 = vpack.c.bf16 %v563_v33, %v561_v18  ;;  %v7060_v63 = vpack.c.bf16 %v676_v34, %v674_v19  ;;  %v565_v48 = vadd.f32 %v564_v53, %v6884_v43  ;;  %v678_v49 = vadd.f32 %v677_v60, %v6881_v42 }
 0x155   :  { %v566_v1 = vpop.f32.mrf.mxu0  ;;  %v679_v0 = vpop.f32.mrf.mxu1  ;;  %v156_v19 = vsub.s32 4, %v6872_v36  ;;  %v160_v42 = vsub.s32 5, %v6872_v36 }
 0x156   :  { %7710 = vst [vmem:[#allocation31_spill] sm:$0xff] %v7058_v59  ;;  %7711 = vst [vmem:[#allocation32_spill] sm:$0xff] %v7060_v63  ;;  %v567_v2 = vadd.f32 %v566_v1, %v6887_v44  ;;  %v680_v20 = vadd.f32 %v679_v0, %v6890_v45 }
 0x157   :  { %v7066_v8 = vpop.f32.mrf.mxu0  ;;  %v7081_v44 = vrot.slane %v6878_v41, %v156_v19  ;;  %v7084_v53 = vrot.slane %v6878_v41, %v160_v42  ;;  %v1427_v41 = vpop.f32.mrf.mxu1 }
 0x158   :  { %v7068_v23 = vpack.c.bf16 %v567_v2, %v565_v48  ;;  %v7070_v31 = vpack.c.bf16 %v680_v20, %v678_v49 }
 0x159   :  { %v7072_v18 = vpop.f32.mrf.mxu0 }
 0x15a   :  { %7712 = vst [vmem:[#allocation33_spill] sm:$0xff] %v7068_v23  ;;  %7713 = vst [vmem:[#allocation34_spill] sm:$0xff] %v7070_v31 }
 0x15b   :  { %v7075_v33 = vpop.f32.mrf.mxu0 }
 0x15d   :  { %v7078_v43 = vpop.f32.mrf.mxu0 }
 0x15f   :  { %v726_v45 = vpop.f32.mrf.mxu0 }
 0x160   :  { %v727_v34 = vadd.f32 %v726_v45, %v7081_v44 }
 0x161   :  { %v728_v60 = vpop.f32.mrf.mxu0 }
 0x162   :  { %v729_v48 = vadd.f32 %v728_v60, %v7084_v53  ;;  %v7098_v60 = vpop.f32.mrf.mxu1 }
 0x163   :  { %v730_v49 = vpop.f32.mrf.mxu0 }
 0x164   :  { %v7088_v1 = vpack.c.bf16 %v729_v48, %v727_v34  ;;  %v731_v0 = vadd.f32 %v730_v49, %v7081_v44 }
 0x165   :  { %v732_v36 = vpop.f32.mrf.mxu0 }
 0x166   :  { %v733_v2 = vadd.f32 %v732_v36, %v7084_v53 }
 0x167   :  { %v736_v20 = vpop.f32.mrf.mxu0 }
 0x168   :  { %v7092_v19 = vpack.c.bf16 %v733_v2, %v731_v0  ;;  %v737_v23 = vadd.f32 %v736_v20, %v7081_v44  ;;  %v1431_v2 = vpop.f32.mrf.mxu1 }
 0x169   :  { %v738_v42 = vpop.f32.mrf.mxu0 }
 0x16a   :  { %v739_v45 = vadd.f32 %v738_v42, %v7084_v53 }
 0x16b   :  { %v740_v31 = vpop.f32.mrf.mxu0 }
 0x16c   :  { %v7096_v59 = vpack.c.bf16 %v739_v45, %v737_v23  ;;  %v741_v34 = vadd.f32 %v740_v31, %v7081_v44  ;;  %v1433_v45 = vpop.f32.mrf.mxu1 }
 0x16d   :  { %v742_v48 = vpop.f32.mrf.mxu0 }
 0x16e   :  { %v743_v49 = vadd.f32 %v742_v48, %v7084_v53 }
 0x16f   :  { %v746_v36 = vpop.f32.mrf.mxu0 }
 0x170   :  { %v7102_v63 = vpack.c.bf16 %v743_v49, %v741_v34  ;;  %v747_v0 = vadd.f32 %v746_v36, %v7081_v44 }
 0x171   :  { %v748_v20 = vpop.f32.mrf.mxu0 }
 0x172   :  { %v749_v22 = vadd.f32 %v748_v20, %v7084_v53  ;;  %v1522_v20 = vunpack.c.l.bf16 %v6898_v57 }
 0x173   :  { %v750_v42 = vpop.f32.mrf.mxu0 }
 0x174   :  { %v7106_v7 = vpack.c.bf16 %v749_v22, %v747_v0  ;;  %v751_v23 = vadd.f32 %v750_v42, %v7081_v44  ;;  %v1520_v0 = vunpack.c.l.bf16 %v6896_v56 }
 0x175   :  { %v752_v9 = vpop.f32.mrf.mxu0 }
 0x176   :  { %7714 = vst [vmem:[#allocation35_spill] sm:$0xff] %v7106_v7  ;;  %v753_v31 = vadd.f32 %v752_v9, %v7084_v53  ;;  %v1530_v9 = vadd.f32 %v1520_v0, %v1427_v41 }
 0x177   :  { %v1470_v35 = vpop.f32.mrf.mxu1  ;;  %v756_v48 = vpop.f32.mrf.mxu0 }
 0x178   :  { %v7110_v40 = vpack.c.bf16 %v753_v31, %v751_v23  ;;  %v757_v34 = vadd.f32 %v756_v48, %v7081_v44  ;;  %v1532_v16 = vadd.f32 %v1522_v20, %v1470_v35  ;;  %v1527_v48 = vunpack.c.l.bf16 %v6906_v4 }
 0x179   :  { %v7113_v49 = vpop.f32.mrf.mxu1  ;;  %v758_v36 = vpop.f32.mrf.mxu0 }
 0x17a   :  { %7715 = vst [vmem:[#allocation36_spill] sm:$0xff] %v7110_v40  ;;  %v759_v22 = vadd.f32 %v758_v36, %v7084_v53  ;;  %v1525_v40 = vunpack.c.l.bf16 %v6904_v3  ;;  %v5254_v28 = vmul.f32 -1.442695, %v1532_v16 }
 0x17b   :  { %v760_v42 = vpop.f32.mrf.mxu0  ;;  %v1474_v51 = vpop.f32.mrf.mxu1 }
 0x17c   :  { %v7118_v17 = vpack.c.bf16 %v759_v22, %v757_v34  ;;  %v761_v23 = vadd.f32 %v760_v42, %v7081_v44  ;;  %v1537_v36 = vadd.f32 %v1527_v48, %v1474_v51  ;;  %v5252_v34 = vmul.f32 -1.442695, %v1530_v9 }
 0x17d   :  { %v762_v31 = vpop.f32.mrf.mxu0  ;;  %v1535_v20 = vadd.f32 %v1525_v40, %v1431_v2  ;;  %6274 = vpow2.f32 %v5254_v28 }
 0x17e   :  { %7716 = vst [vmem:[#allocation37_spill] sm:$0xff] %v7118_v17  ;;  %v763_v52 = vadd.f32 %v762_v31, %v7084_v53  ;;  %v5258_v42 = vmul.f32 -1.442695, %v1537_v36  ;;  %6276 = vpow2.f32 %v5252_v34  ;;  %v1526_v36 = vunpack.c.h.bf16 %v6904_v3 }
 0x17f   :  { %v766_v7 = vpop.f32.mrf.mxu0  ;;  %v5256_v11 = vmul.f32 -1.442695, %v1535_v20  ;;  %v719_v20 = vadd.f32 %v7072_v18, %v7084_v53 }
 0x180   :  { %v7124_v30 = vpack.c.bf16 %v763_v52, %v761_v23  ;;  %v767_v35 = vadd.f32 %v766_v7, %v7081_v44  ;;  %6278 = vpow2.f32 %v5258_v42  ;;  %v1521_v23 = vunpack.c.h.bf16 %v6896_v56 }
 0x181   :  { %v768_v41 = vpop.f32.mrf.mxu0  ;;  %6280 = vpow2.f32 %v5256_v11  ;;  %v717_v42 = vadd.f32 %v7066_v8, %v7081_v44 }
 0x182   :  { %v769_v22 = vadd.f32 %v768_v41, %v7084_v53  ;;  %v1531_v41 = vadd.f32 %v1521_v23, %v7098_v60  ;;  %v723_v60 = vadd.f32 %v7078_v43, %v7084_v53 }
 0x183   :  { %v770_v0 = vpop.f32.mrf.mxu0 }
 0x184   :  { %v7128_v17 = vpack.c.bf16 %v769_v22, %v767_v35  ;;  %v771_v31 = vadd.f32 %v770_v0, %v7081_v44  ;;  %v1536_v22 = vadd.f32 %v1526_v36, %v1433_v45  ;;  %v5253_v18 = vmul.f32 -1.442695, %v1531_v41  ;;  %v1476_v36 = vpop.f32.mrf.mxu1 }
 0x185   :  { %v772_v16 = vpop.f32.mrf.mxu0  ;;  %v1528_v41 = vunpack.c.h.bf16 %v6906_v4 }
 0x186   :  { %v773_v51 = vadd.f32 %v772_v16, %v7084_v53  ;;  %v1523_v16 = vunpack.c.h.bf16 %v6898_v57  ;;  %6282 = vpow2.f32 %v5253_v18 }
 0x187   :  { %v776_v52 = vpop.f32.mrf.mxu0 }
 0x188   :  { %v7132_v7 = vpack.c.bf16 %v773_v51, %v771_v31  ;;  %v777_v40 = vadd.f32 %v776_v52, %v7081_v44  ;;  %v1533_v8 = vadd.f32 %v1523_v16, %v7113_v49 }
 0x189   :  { %v778_v2 = vpop.f32.mrf.mxu0 }
 0x18a   :  { %7717 = vst [vmem:[#allocation38_spill] sm:$0xff] %v7132_v7  ;;  %v779_v28 = vadd.f32 %v778_v2, %v7084_v53  ;;  %v6275_v3 = vpop.eup %6274  ;;  %v5257_v2 = vmul.f32 -1.442695, %v1536_v22  ;;  %v2020_v7 = vunpack.c.h.bf16 %v6922_v25 }
 0x18b   :  { %v780_v9 = vpop.f32.mrf.mxu0  ;;  %v6277_v52 = vpop.eup %6276  ;;  %v1574_v23 = vadd.f32 1.0, %v6275_v3 }
 0x18c   :  { %v7137_v48 = vpack.c.bf16 %v779_v28, %v777_v40  ;;  %v781_v35 = vadd.f32 %v780_v9, %v7081_v44  ;;  %v7151_v40 = vpack.c.bf16 %v719_v20, %v717_v42  ;;  %v721_v9 = vadd.f32 %v7075_v33, %v7081_v44 }
 0x18d   :  { %v782_v34 = vpop.f32.mrf.mxu0  ;;  %v1572_v20 = vadd.f32 1.0, %v6277_v52  ;;  %6284 = vpow2.f32 %v5257_v2  ;;  %v5255_v33 = vmul.f32 -1.442695, %v1533_v8  ;;  %v1538_v42 = vadd.f32 %v1528_v41, %v1476_v36 }
 0x18e   :  { %7718 = vst [vmem:[#allocation39_spill] sm:$0xff] %v7137_v48  ;;  %v783_v11 = vadd.f32 %v782_v34, %v7084_v53  ;;  %v6279_v34 = vpop.eup %6278  ;;  %v5617_v22 = vpack.c.bf16 %v723_v60, %v721_v9  ;;  %6286 = vrcp.f32 %v1574_v23 }
 0x18f   :  { %v786_v0 = vpop.f32.mrf.mxu0  ;;  %6288 = vrcp.f32 %v1572_v20 }
 0x190   :  { %v7147_v56 = vpack.c.bf16 %v783_v11, %v781_v35  ;;  %v787_v31 = vadd.f32 %v786_v0, %v7081_v44  ;;  %v6281_v11 = vpop.eup %6280  ;;  %v1524_v0 = vunpack.c.l.bf16 %v7151_v40  ;;  %v1529_v52 = vunpack.c.l.bf16 %v5617_v22 }
 0x191   :  { %v788_v51 = vpop.f32.mrf.mxu0 }
 0x192   :  { %7719 = vst [vmem:[#allocation40_spill] sm:$0xff] %v7147_v56  ;;  %v789_v45 = vadd.f32 %v788_v51, %v7084_v53  ;;  %v1576_v51 = vadd.f32 1.0, %v6281_v11  ;;  %v2015_v56 = vunpack.c.h.bf16 %v6912_v14 }
 0x193   :  { %v790_v28 = vpop.f32.mrf.mxu0  ;;  %v6283_v2 = vpop.eup %6282 }
 0x194   :  { %v7159_v57 = vpack.c.bf16 %v789_v45, %v787_v31  ;;  %v791_v35 = vadd.f32 %v790_v28, %v7081_v44  ;;  %v1578_v31 = vadd.f32 1.0, %v6279_v34  ;;  %v1573_v36 = vadd.f32 1.0, %v6283_v2 }
 0x195   :  { %v792_v43 = vpop.f32.mrf.mxu0 }
 0x196   :  { %7720 = vst [vmem:[#allocation41_spill] sm:$0xff] %v7159_v57  ;;  %v793_v49 = vadd.f32 %v792_v43, %v7084_v53  ;;  %v5259_v53 = vmul.f32 -1.442695, %v1538_v42 }
 0x197   :  { %v1513_v3 = vpop.f32.mrf.mxu0 }
 0x198   :  { %v7165_v16 = vpack.c.bf16 %v793_v49, %v791_v35  ;;  %v1534_v44 = vadd.f32 %v1524_v0, %v1513_v3 }
 0x199   :  { %v5806_v4 = vpop.f32.mrf.mxu0 }
 0x19a   :  { %7721 = vst [vmem:[#allocation42_spill] sm:$0xff] %v7165_v16  ;;  %6290 = vtanh.f32 %v1534_v44  ;;  %v6285_v8 = vpop.eup %6284  ;;  %v1542_v4 = vrot.slane %v7151_v40, 4  ;;  %v6123_v40 = vld [vmem:[#allocation9 + $0x100] ss:$20 sps:$4 sm:$0xff]  }
 0x19b   :  { %6292 = vpow2.f32 %v5255_v33  ;;  %v1516_v18 = vpop.f32.mrf.mxu0  ;;  %v6287_v28 = vpop.eup %6286  ;;  %v1577_v11 = vadd.f32 1.0, %v6285_v8 }
 0x19c   :  { %6294 = vrcp.f32 %v1578_v31  ;;  %v1539_v60 = vadd.f32 %v1529_v52, %v1516_v18  ;;  %v6289_v9 = vpop.eup %6288  ;;  %v1600_v34 = vmul.f32 0.0, %v6287_v28 }
 0x19d   :  { %6296 = vrcp.f32 %v1576_v51  ;;  %v5807_v45 = vpop.f32.mrf.mxu0 }
 0x19e   :  { %6298 = vtanh.f32 %v1539_v60  ;;  %v1543_v60 = vrot.slane %v5617_v22, 4  ;;  %v7722_v22 = vmov 0.0  }
 0x19f   :  { %6300 = vpow2.f32 %v5259_v53  ;;  %v1546_v53 = vunpack.c.l.bf16 %v1542_v4  ;;  %v7213_v4 = vld [vmem:[#allocation9 + $0xd4] ss:$20 sps:$4 sm:$0xff]  }
 0x1a0   :  { %6302 = vrcp.f32 %v1573_v36 }
 0x1a7   :  { %v6291_v23 = vpop.eup %6290 }
 0x1a8   :  { %v6293_v35 = vpop.eup %6292  ;;  %v1598_v20 = vmul.f32 %v6291_v23, %v6289_v9  ;;  %v1547_v23 = vunpack.c.l.bf16 %v1543_v60  ;;  %v7224_v60 = vld [vmem:[#allocation9 + $0x84] ss:$20 sps:$4 sm:$0xff]  }
 0x1a9   :  { %v6295_v41 = vpop.eup %6294  ;;  %v1575_v33 = vadd.f32 1.0, %v6293_v35 }
 0x1aa   :  { %v6297_v43 = vpop.eup %6296  ;;  %v7167_v49 = vadd.f32 %v1600_v34, %v1598_v20  ;;  %v1601_v42 = vmul.f32 0.0, %v6295_v41 }
 0x1ab   :  { %v6299_v0 = vpop.eup %6298 }
 0x1ac   :  { %6304 = vtanh.f32 %v7167_v49  ;;  %v1599_v3 = vmul.f32 %v6299_v0, %v6297_v43  ;;  %v6301_v31 = vpop.eup %6300  ;;  %v6122_v0 = vld [vmem:[#allocation9 + $0x128] ss:$20 sps:$4 sm:$0xff]  }
 0x1ad   :  { %6306 = vrcp.f32 %v1577_v11  ;;  %v1579_v51 = vadd.f32 1.0, %v6301_v31  ;;  %v6303_v52 = vpop.eup %6302  ;;  %v6125_v31 = vld [vmem:[#allocation9 + $0xb0] ss:$20 sps:$4 sm:$0xff]  }
 0x1ae   :  { %v7170_v44 = vadd.f32 %v1601_v42, %v1599_v3  ;;  %6308 = vrcp.f32 %v1575_v33  ;;  %v7723_v42 = vmov 0   ;;  %v6124_v3 = vld [vmem:[#allocation9 + $0xd8] ss:$20 sps:$4 sm:$0xff]  }
 0x1b0   :  { %6310 = vtanh.f32 %v7170_v44 }
 0x1b1   :  { %6312 = vrcp.f32 %v1579_v51  ;;  %v7209_v51 = vld [vmem:[#allocation9 + $0xf8] ss:$20 sps:$4 sm:$0xff]  }
 0x1b9   :  { %v6305_v18 = vpop.eup %6304 }
 0x1ba   :  { %v1606_v45 = vmul.f32 %v6305_v18, %v6303_v52  ;;  %v6307_v2 = vpop.eup %6306  ;;  %v7215_v52 = vld [vmem:[#allocation9 + $0xd0] ss:$20 sps:$4 sm:$0xff]   ;;  %v7217_v18 = vld [vmem:[#allocation9 + $0xac] ss:$20 sps:$4 sm:$0xff]  }
 0x1bb   :  { %v6309_v8 = vpop.eup %6308 }
 0x1bc   :  { %v1608_v28 = vsub.f32 %v1606_v45, %v1546_v53  ;;  %v7227_v45 = vld [vmem:[#allocation9 + $0x80] ss:$20 sps:$4 sm:$0xff]  }
 0x1bd   :  { %v6311_v9 = vpop.eup %6310 }
 0x1be   :  { %v1607_v36 = vmul.f32 %v6311_v9, %v6307_v2  ;;  %v1610_v35 = vmul.f32 %v6309_v8, %v1608_v28  ;;  %v6313_v20 = vpop.eup %6312  ;;  %v7230_v2 = vld [vmem:[#allocation9 + $0x5c] ss:$20 sps:$4 sm:$0xff]   ;;  %v7233_v8 = vld [vmem:[#allocation9 + $0x58] ss:$20 sps:$4 sm:$0xff]   ;;  %v7236_v28 = vld [vmem:[#allocation9 + $0x34] ss:$20 sps:$4 sm:$0xff]  }
 0x1bf   :  { %v7239_v9 = vld [vmem:[#allocation9 + $0x30] ss:$20 sps:$4 sm:$0xff]  }
 0x1c0   :  { %v1609_v34 = vsub.f32 %v1607_v36, %v1547_v23  ;;  %v1612_v43 = vadd.f32 %v1610_v35, %v1546_v53  ;;  %v7221_v53 = vld [vmem:[#allocation9 + $0xa8] ss:$20 sps:$4 sm:$0xff]  }
 0x1c1   :  { %v7245_v36 = vld [vmem:[#allocation9 + $0x8] ss:$20 sps:$4 sm:$0xff]  }
 0x1c2   :  { %v1611_v41 = vmul.f32 %v6313_v20, %v1609_v34 }
 0x1c4   :  { %v1613_v11 = vadd.f32 %v1611_v41, %v1547_v23  ;;  %v7242_v23 = vld [vmem:[#allocation9 + $0xc] ss:$20 sps:$4 sm:$0xff]   ;;  %v2016_v41 = vunpack.c.l.bf16 %v6914_v15 }
 0x1c6   :  { %v1614_v33 = vpack.c.bf16 %v1613_v11, %v1612_v43  ;;  %v2014_v11 = vunpack.c.l.bf16 %v6912_v14  ;;  %v2022_v14 = vunpack.c.h.bf16 %v6924_v26 }
 0x1c8   :  { %5680 = vst [vmem:[#allocation11] sm:$0xff] %v1614_v33   ;;  %1920 = vmatmul.mubr.bf16.vlgmr.msra.gmra.mxu1 %v1614_v33  ;;  %1963 = vmatmul.mubr.bf16.vlgmr.msra.gmra.mxu0 %v1614_v33 }
 0x1c9   :  { %5809 = vmatpush3.bf16.msra.mxu1 %v6122_v0  ;;  %5824 = vmatprep.mubr.msk.bf16.mxu1 %vm6721_vm0, %v7722_v22 }
 0x1ca   :  { %5810 = vmatprep.subr.bf16.mxu1 %v7722_v22  ;;  %2383 = vmatpush1.bf16.msra.mxu0 %v6928_v29  ;;  %v6126_v29 = vld [vmem:[#allocation9 + $0x88] ss:$20 sps:$4 sm:$0xff]  }
 0x1cb   :  { %2384 = vmatprep.subr.bf16.mxu0 %v6935_v37  ;;  %2414 = vmatprep.mubr.bf16.mxu0 %v7723_v42  ;;  %v6127_v37 = vld [vmem:[#allocation9 + $0x60] ss:$20 sps:$4 sm:$0xff]  }
 0x1cd   :  { %5811 = vmatpush3.bf16.msra.mxu1 %v6123_v40 }
 0x1ce   :  { %5812 = vmatprep.subr.bf16.mxu1 %v7722_v22  ;;  %2385 = vmatpush1.bf16.msra.mxu0 %v6943_v47  ;;  %v6128_v47 = vld [vmem:[#allocation9 + $0x38] ss:$20 sps:$4 sm:$0xff]  }
 0x1cf   :  { %2386 = vmatprep.subr.bf16.mxu0 %v6949_v54  ;;  %v6129_v54 = vld [vmem:[#allocation9 + $0x10] ss:$20 sps:$4 sm:$0xff]  }
 0x1d1   :  { %5813 = vmatpush3.bf16.msra.mxu1 %v6124_v3 }
 0x1d2   :  { %5814 = vmatprep.subr.bf16.mxu1 %v7722_v22  ;;  %2387 = vmatpush1.bf16.msra.mxu0 %v6957_v61  ;;  %v7201_v61 = vld [vmem:[#allocation9 + $0x124] ss:$20 sps:$4 sm:$0xff]  }
 0x1d3   :  { %2388 = vmatprep.subr.bf16.mxu0 %v6959_v62  ;;  %v7203_v62 = vld [vmem:[#allocation9 + $0x120] ss:$20 sps:$4 sm:$0xff]  }
 0x1d5   :  { %5815 = vmatpush3.bf16.msra.mxu1 %v6125_v31  ;;  %v2021_v31 = vunpack.c.l.bf16 %v6924_v26 }
 0x1d6   :  { %5816 = vmatprep.subr.bf16.mxu1 %v7722_v22  ;;  %2389 = vmatpush1.bf16.msra.mxu0 %v6965_v6  ;;  %v7207_v6 = vld [vmem:[#allocation9 + $0xfc] ss:$20 sps:$4 sm:$0xff]  }
 0x1d7   :  { %2390 = vmatprep.subr.bf16.mxu0 %v6968_v10 }
 0x1d9   :  { %5817 = vmatpush3.bf16.msra.mxu1 %v6126_v29  ;;  %v2019_v29 = vunpack.c.l.bf16 %v6922_v25 }
 0x1da   :  { %5818 = vmatprep.subr.bf16.mxu1 %v7722_v22  ;;  %2391 = vmatpush1.bf16.msra.mxu0 %v6979_v21 }
 0x1db   :  { %2392 = vmatprep.subr.bf16.mxu0 %v6982_v27 }
 0x1dd   :  { %5819 = vmatpush3.bf16.msra.mxu1 %v6127_v37 }
 0x1de   :  { %5820 = vmatprep.subr.bf16.mxu1 %v7722_v22  ;;  %2393 = vmatpush1.bf16.msra.mxu0 %v6993_v46 }
 0x1df   :  { %2394 = vmatprep.subr.bf16.mxu0 %v6996_v50 }
 0x1e1   :  { %5821 = vmatpush3.bf16.msra.mxu1 %v6128_v47 }
 0x1e2   :  { %5822 = vmatprep.subr.bf16.mxu1 %v7722_v22  ;;  %2395 = vmatpush1.bf16.msra.mxu0 %v7007_v5 }
 0x1e3   :  { %2396 = vmatprep.subr.bf16.mxu0 %v7010_v13 }
 0x1e5   :  { %5823 = vmatpush3.bf16.msra.mxu1 %v6129_v54 }
 0x1e6   :  { %2397 = vmatpush1.bf16.msra.mxu0 %v7021_v32  ;;  %2425 = vmatprep.subr.bf16.mxu1 %v7201_v61 }
 0x1e7   :  { %5828 = vmatprep.subr.bf16.mxu0 %v7722_v22 }
 0x1e8   :  { %5825 = vmatmul.mubr.bf16.vlgmr.msra.gmra.mxu1 %v1614_v33 }
 0x1e9   :  { %2457 = vmatprep.mubr.bf16.mxu1 %v7723_v42  ;;  %2426 = vmatpush1.bf16.msra.mxu1 %v7203_v62 }
 0x1ea   :  { %2427 = vmatprep.subr.bf16.mxu1 %v7207_v6 }
 0x1ed   :  { %2428 = vmatpush1.bf16.msra.mxu1 %v7209_v51 }
 0x1ee   :  { %2429 = vmatprep.subr.bf16.mxu1 %v7213_v4 }
 0x1f1   :  { %2430 = vmatpush1.bf16.msra.mxu1 %v7215_v52 }
 0x1f2   :  { %2431 = vmatprep.subr.bf16.mxu1 %v7217_v18 }
 0x1f5   :  { %2432 = vmatpush1.bf16.msra.mxu1 %v7221_v53 }
 0x1f6   :  { %2433 = vmatprep.subr.bf16.mxu1 %v7224_v60 }
 0x1f9   :  { %2434 = vmatpush1.bf16.msra.mxu1 %v7227_v45 }
 0x1fa   :  { %2435 = vmatprep.subr.bf16.mxu1 %v7230_v2 }
 0x1fd   :  { %2436 = vmatpush1.bf16.msra.mxu1 %v7233_v8 }
 0x1fe   :  { %2437 = vmatprep.subr.bf16.mxu1 %v7236_v28 }
 0x201   :  { %2438 = vmatpush1.bf16.msra.mxu1 %v7239_v9 }
 0x202   :  { %2439 = vmatprep.subr.bf16.mxu1 %v7242_v23 }
 0x205   :  { %2440 = vmatpush1.bf16.msra.mxu1 %v7245_v36 }
 0x206   :  { %2877 = vmatprep.subr.bf16.mxu1 %v6920_v24 }
 0x288   :  { %v1921_v35 = vpop.f32.mrf.mxu1  ;;  %v1964_v34 = vpop.f32.mrf.mxu0 }
 0x289   :  { %v2026_v0 = vadd.f32 %v2016_v41, %v1964_v34  ;;  %v2024_v33 = vadd.f32 %v2014_v11, %v1921_v35  ;;  %v2017_v35 = vunpack.c.h.bf16 %v6914_v15  ;;  %v2018_v15 = vunpack.c.l.bf16 %v7088_v1 }
 0x28a   :  { %v1966_v20 = vpop.f32.mrf.mxu0  ;;  %v1923_v43 = vpop.f32.mrf.mxu1 }
 0x28b   :  { %v5304_v37 = vmul.f32 -1.442695, %v2026_v0  ;;  %v5302_v54 = vmul.f32 -1.442695, %v2024_v33  ;;  %v2025_v34 = vadd.f32 %v2015_v56, %v1923_v43  ;;  %v2027_v41 = vadd.f32 %v2017_v35, %v1966_v20 }
 0x28c   :  { %v1968_v40 = vpop.f32.mrf.mxu0  ;;  %v1925_v3 = vpop.f32.mrf.mxu1 }
 0x28d   :  { %v2031_v47 = vadd.f32 %v2021_v31, %v1968_v40  ;;  %v2029_v24 = vadd.f32 %v2019_v29, %v1925_v3  ;;  %6314 = vpow2.f32 %v5304_v37  ;;  %v5303_v40 = vmul.f32 -1.442695, %v2025_v34 }
 0x28e   :  { %6316 = vpow2.f32 %v5302_v54  ;;  %v1927_v11 = vpop.f32.mrf.mxu1  ;;  %v5305_v33 = vmul.f32 -1.442695, %v2027_v41 }
 0x28f   :  { %v5308_v16 = vmul.f32 -1.442695, %v2031_v47  ;;  %v5306_v57 = vmul.f32 -1.442695, %v2029_v24  ;;  %v2030_v3 = vadd.f32 %v2020_v7, %v1927_v11  ;;  %v1970_v47 = vpop.f32.mrf.mxu0 }
 0x290   :  { %v2032_v25 = vadd.f32 %v2022_v14, %v1970_v47 }
 0x291   :  { %6318 = vpow2.f32 %v5308_v16  ;;  %v5307_v56 = vmul.f32 -1.442695, %v2030_v3 }
 0x292   :  { %6320 = vpow2.f32 %v5306_v57  ;;  %v5309_v35 = vmul.f32 -1.442695, %v2032_v25 }
 0x293   :  { %6322 = vpow2.f32 %v5303_v40 }
 0x294   :  { %6324 = vpow2.f32 %v5305_v33 }
 0x29a   :  { %v6315_v48 = vpop.eup %6314 }
 0x29b   :  { %v6317_v0 = vpop.eup %6316  ;;  %v2068_v31 = vadd.f32 1.0, %v6315_v48  ;;  %v2023_v48 = vunpack.c.l.bf16 %v7092_v19 }
 0x29c   :  { %v2066_v37 = vadd.f32 1.0, %v6317_v0 }
 0x29d   :  { %6326 = vrcp.f32 %v2068_v31 }
 0x29e   :  { %v6319_v29 = vpop.eup %6318  ;;  %6328 = vrcp.f32 %v2066_v37 }
 0x29f   :  { %v6321_v16 = vpop.eup %6320  ;;  %v2072_v20 = vadd.f32 1.0, %v6319_v29 }
 0x2a0   :  { %v2070_v54 = vadd.f32 1.0, %v6321_v16  ;;  %v6323_v41 = vpop.eup %6322 }
 0x2a1   :  { %v6325_v11 = vpop.eup %6324  ;;  %v2067_v3 = vadd.f32 1.0, %v6323_v41 }
 0x2a2   :  { %v2069_v14 = vadd.f32 1.0, %v6325_v11 }
 0x2a8   :  { %v2007_v57 = vpop.f32.mrf.mxu1 }
 0x2a9   :  { %v2028_v43 = vadd.f32 %v2018_v15, %v2007_v57 }
 0x2aa   :  { %v5826_v7 = vpop.f32.mrf.mxu1  ;;  %v6327_v0 = vpop.eup %6326 }
 0x2ab   :  { %6330 = vtanh.f32 %v2028_v43  ;;  %v6329_v40 = vpop.eup %6328  ;;  %v2094_v37 = vmul.f32 %v6327_v0, %v7167_v49  ;;  %v2036_v49 = vrot.slane %v7088_v1, 4 }
 0x2ac   :  { %6332 = vpow2.f32 %v5307_v56  ;;  %v2010_v24 = vpop.f32.mrf.mxu1 }
 0x2ad   :  { %6334 = vrcp.f32 %v2072_v20  ;;  %v2033_v26 = vadd.f32 %v2023_v48, %v2010_v24 }
 0x2ae   :  { %6336 = vrcp.f32 %v2070_v54  ;;  %v5827_v34 = vpop.f32.mrf.mxu1 }
 0x2af   :  { %6338 = vtanh.f32 %v2033_v26  ;;  %v2037_v26 = vrot.slane %v7092_v19, 4  ;;  %v6155_v19 = vld [vmem:[#allocation9 + $0x100] ss:$20 sps:$4 sm:$0xff]  }
 0x2b0   :  { %6340 = vpow2.f32 %v5309_v35  ;;  %v2040_v35 = vunpack.c.l.bf16 %v2036_v49  ;;  %v6598_v49 = vld [vmem:[#allocation9 + $0xc8] ss:$20 sps:$4 sm:$0xff]  }
 0x2b1   :  { %6342 = vrcp.f32 %v2067_v3 }
 0x2b8   :  { %v6331_v33 = vpop.eup %6330 }
 0x2b9   :  { %v6333_v31 = vpop.eup %6332  ;;  %v2092_v29 = vmul.f32 %v6331_v33, %v6329_v40  ;;  %v2041_v40 = vunpack.c.l.bf16 %v2037_v26  ;;  %v6159_v26 = vld [vmem:[#allocation9 + $0x60] ss:$20 sps:$4 sm:$0xff]  }
 0x2ba   :  { %v6335_v47 = vpop.eup %6334  ;;  %v2071_v57 = vadd.f32 1.0, %v6333_v31 }
 0x2bb   :  { %v6337_v16 = vpop.eup %6336  ;;  %v7261_v15 = vadd.f32 %v2094_v37, %v2092_v29  ;;  %v2095_v25 = vmul.f32 %v6335_v47, %v7170_v44 }
 0x2bc   :  { %v6339_v56 = vpop.eup %6338 }
 0x2bd   :  { %6344 = vtanh.f32 %v7261_v15  ;;  %v2093_v20 = vmul.f32 %v6339_v56, %v6337_v16  ;;  %v6341_v43 = vpop.eup %6340  ;;  %v6594_v56 = vld [vmem:[#allocation9 + $0x118] ss:$20 sps:$4 sm:$0xff]  }
 0x2be   :  { %6346 = vrcp.f32 %v2069_v14  ;;  %v2073_v7 = vadd.f32 1.0, %v6341_v43  ;;  %v6343_v48 = vpop.eup %6342  ;;  %v6154_v14 = vld [vmem:[#allocation9 + $0x128] ss:$20 sps:$4 sm:$0xff]   ;;  %v6597_v43 = vld [vmem:[#allocation9 + $0xcc] ss:$20 sps:$4 sm:$0xff]  }
 0x2bf   :  { %v7265_v54 = vadd.f32 %v2095_v25, %v2093_v20  ;;  %6348 = vrcp.f32 %v2071_v57  ;;  %v6595_v57 = vld [vmem:[#allocation9 + $0xf4] ss:$20 sps:$4 sm:$0xff]   ;;  %v6156_v20 = vld [vmem:[#allocation9 + $0xd8] ss:$20 sps:$4 sm:$0xff]   ;;  %v6596_v25 = vld [vmem:[#allocation9 + $0xf0] ss:$20 sps:$4 sm:$0xff]  }
 0x2c1   :  { %6350 = vtanh.f32 %v7265_v54 }
 0x2c2   :  { %6352 = vrcp.f32 %v2073_v7  ;;  %v6157_v7 = vld [vmem:[#allocation9 + $0xb0] ss:$20 sps:$4 sm:$0xff]  }
 0x2ca   :  { %v6345_v24 = vpop.eup %6344 }
 0x2cb   :  { %v2100_v34 = vmul.f32 %v6345_v24, %v6343_v48  ;;  %v6347_v41 = vpop.eup %6346  ;;  %v6599_v48 = vld [vmem:[#allocation9 + $0xa4] ss:$20 sps:$4 sm:$0xff]   ;;  %v6158_v24 = vld [vmem:[#allocation9 + $0x88] ss:$20 sps:$4 sm:$0xff]  }
 0x2cc   :  { %v6349_v11 = vpop.eup %6348 }
 0x2cd   :  { %v2102_v44 = vsub.f32 %v2100_v34, %v2040_v35  ;;  %v6160_v34 = vld [vmem:[#allocation9 + $0x38] ss:$20 sps:$4 sm:$0xff]  }
 0x2ce   :  { %v6351_v0 = vpop.eup %6350 }
 0x2cf   :  { %v2101_v33 = vmul.f32 %v6351_v0, %v6349_v11  ;;  %v2104_v3 = vmul.f32 %v6347_v41, %v2102_v44  ;;  %v6353_v37 = vpop.eup %6352  ;;  %v6161_v41 = vld [vmem:[#allocation9 + $0x10] ss:$20 sps:$4 sm:$0xff]   ;;  %v2516_v0 = vunpack.c.l.bf16 %v6953_v58 }
 0x2d1   :  { %v2103_v31 = vsub.f32 %v2101_v33, %v2041_v40  ;;  %v2106_v29 = vadd.f32 %v2104_v3, %v2040_v35  ;;  %v6600_v35 = vld [vmem:[#allocation9 + $0xa0] ss:$20 sps:$4 sm:$0xff]  }
 0x2d3   :  { %v2105_v47 = vmul.f32 %v6353_v37, %v2103_v31 }
 0x2d5   :  { %v2107_v16 = vadd.f32 %v2105_v47, %v2041_v40  ;;  %v2514_v40 = vunpack.c.l.bf16 %v6951_v55 }
 0x2d7   :  { %v2108_v1 = vpack.c.bf16 %v2107_v16, %v2106_v29  ;;  %v2510_v16 = vunpack.c.h.bf16 %v6937_v38 }
 0x2d9   :  { %5685 = vst [vmem:[#allocation11 + $0x8] sm:$0xff] %v2108_v1   ;;  %2415 = vmatmul.mubr.bf16.vlgmr.msra.gmra.mxu0 %v2108_v1  ;;  %2458 = vmatmul.mubr.bf16.vlgmr.msra.gmra.mxu1 %v2108_v1 }
 0x2da   :  { %5829 = vmatpush3.bf16.msra.mxu0 %v6154_v14  ;;  %5844 = vmatprep.mubr.msk.bf16.mxu0 %vm6721_vm0, %v7722_v22  ;;  %v2512_v14 = vunpack.c.h.bf16 %v6939_v39 }
 0x2db   :  { %5830 = vmatprep.subr.bf16.mxu0 %v7722_v22  ;;  %2878 = vmatpush1.bf16.msra.mxu1 %v6594_v56 }
 0x2dc   :  { %2879 = vmatprep.subr.bf16.mxu1 %v6595_v57  ;;  %2909 = vmatprep.mubr.bf16.mxu1 %v7723_v42 }
 0x2de   :  { %5831 = vmatpush3.bf16.msra.mxu0 %v6155_v19 }
 0x2df   :  { %5832 = vmatprep.subr.bf16.mxu0 %v7722_v22  ;;  %2880 = vmatpush1.bf16.msra.mxu1 %v6596_v25 }
 0x2e0   :  { %2881 = vmatprep.subr.bf16.mxu1 %v6597_v43 }
 0x2e2   :  { %5833 = vmatpush3.bf16.msra.mxu0 %v6156_v20  ;;  %v2515_v20 = vunpack.c.h.bf16 %v6951_v55 }
 0x2e3   :  { %5834 = vmatprep.subr.bf16.mxu0 %v7722_v22  ;;  %2882 = vmatpush1.bf16.msra.mxu1 %v6598_v49 }
 0x2e4   :  { %2883 = vmatprep.subr.bf16.mxu1 %v6599_v48 }
 0x2e6   :  { %5835 = vmatpush3.bf16.msra.mxu0 %v6157_v7 }
 0x2e7   :  { %5836 = vmatprep.subr.bf16.mxu0 %v7722_v22  ;;  %2884 = vmatpush1.bf16.msra.mxu1 %v6600_v35 }
 0x2e8   :  { %2885 = vmatprep.subr.bf16.mxu1 %v6968_v10 }
 0x2ea   :  { %5837 = vmatpush3.bf16.msra.mxu0 %v6158_v24 }
 0x2eb   :  { %5838 = vmatprep.subr.bf16.mxu0 %v7722_v22  ;;  %2886 = vmatpush1.bf16.msra.mxu1 %v6979_v21 }
 0x2ec   :  { %2887 = vmatprep.subr.bf16.mxu1 %v6982_v27 }
 0x2ee   :  { %5839 = vmatpush3.bf16.msra.mxu0 %v6159_v26 }
 0x2ef   :  { %5840 = vmatprep.subr.bf16.mxu0 %v7722_v22  ;;  %2888 = vmatpush1.bf16.msra.mxu1 %v6993_v46  ;;  %v2511_v46 = vunpack.c.l.bf16 %v6939_v39  ;;  %v2513_v39 = vunpack.c.l.bf16 %v7096_v59 }
 0x2f0   :  { %2889 = vmatprep.subr.bf16.mxu1 %v6996_v50 }
 0x2f2   :  { %5841 = vmatpush3.bf16.msra.mxu0 %v6160_v34 }
 0x2f3   :  { %5842 = vmatprep.subr.bf16.mxu0 %v7722_v22  ;;  %2890 = vmatpush1.bf16.msra.mxu1 %v7007_v5  ;;  %v2509_v5 = vunpack.c.l.bf16 %v6937_v38  ;;  %v2517_v38 = vunpack.c.h.bf16 %v6953_v58 }
 0x2f4   :  { %2891 = vmatprep.subr.bf16.mxu1 %v7010_v13 }
 0x2f6   :  { %5843 = vmatpush3.bf16.msra.mxu0 %v6161_v41 }
 0x2f7   :  { %2920 = vmatprep.subr.bf16.mxu0 %v7201_v61  ;;  %2892 = vmatpush1.bf16.msra.mxu1 %v7021_v32 }
 0x2f8   :  { %5848 = vmatprep.subr.bf16.mxu1 %v7722_v22 }
 0x2f9   :  { %5845 = vmatmul.mubr.bf16.vlgmr.msra.gmra.mxu0 %v2108_v1 }
 0x2fa   :  { %2921 = vmatpush1.bf16.msra.mxu0 %v7203_v62  ;;  %2952 = vmatprep.mubr.bf16.mxu0 %v7723_v42 }
 0x2fb   :  { %2922 = vmatprep.subr.bf16.mxu0 %v7207_v6 }
 0x2fe   :  { %2923 = vmatpush1.bf16.msra.mxu0 %v7209_v51 }
 0x2ff   :  { %2924 = vmatprep.subr.bf16.mxu0 %v7213_v4 }
 0x302   :  { %2925 = vmatpush1.bf16.msra.mxu0 %v7215_v52 }
 0x303   :  { %2926 = vmatprep.subr.bf16.mxu0 %v7217_v18 }
 0x306   :  { %2927 = vmatpush1.bf16.msra.mxu0 %v7221_v53 }
 0x307   :  { %2928 = vmatprep.subr.bf16.mxu0 %v7224_v60 }
 0x30a   :  { %2929 = vmatpush1.bf16.msra.mxu0 %v7227_v45 }
 0x30b   :  { %2930 = vmatprep.subr.bf16.mxu0 %v7230_v2 }
 0x30e   :  { %2931 = vmatpush1.bf16.msra.mxu0 %v7233_v8 }
 0x30f   :  { %2932 = vmatprep.subr.bf16.mxu0 %v7236_v28 }
 0x312   :  { %2933 = vmatpush1.bf16.msra.mxu0 %v7239_v9 }
 0x313   :  { %2934 = vmatprep.subr.bf16.mxu0 %v7242_v23 }
 0x316   :  { %2935 = vmatpush1.bf16.msra.mxu0 %v7245_v36 }
 0x399   :  { %v2416_v10 = vpop.f32.mrf.mxu0  ;;  %v2459_v21 = vpop.f32.mrf.mxu1 }
 0x39a   :  { %v2521_v13 = vadd.f32 %v2511_v46, %v2459_v21  ;;  %v2519_v32 = vadd.f32 %v2509_v5, %v2416_v10  ;;  %v2518_v5 = vunpack.c.l.bf16 %v7102_v63 }
 0x39b   :  { %v2461_v27 = vpop.f32.mrf.mxu1  ;;  %v2418_v50 = vpop.f32.mrf.mxu0 }
 0x39c   :  { %v5354_v33 = vmul.f32 -1.442695, %v2521_v13  ;;  %v5352_v31 = vmul.f32 -1.442695, %v2519_v32  ;;  %v2520_v1 = vadd.f32 %v2510_v16, %v2418_v50  ;;  %v2522_v19 = vadd.f32 %v2512_v14, %v2461_v27 }
 0x39d   :  { %v2463_v11 = vpop.f32.mrf.mxu1  ;;  %v2420_v44 = vpop.f32.mrf.mxu0 }
 0x39e   :  { %v2526_v3 = vadd.f32 %v2516_v0, %v2463_v11  ;;  %v2524_v29 = vadd.f32 %v2514_v40, %v2420_v44  ;;  %6354 = vpow2.f32 %v5354_v33  ;;  %v5353_v43 = vmul.f32 -1.442695, %v2520_v1 }
 0x39f   :  { %6356 = vpow2.f32 %v5352_v31  ;;  %v2422_v56 = vpop.f32.mrf.mxu0  ;;  %v5355_v7 = vmul.f32 -1.442695, %v2522_v19  ;;  %v2465_v26 = vpop.f32.mrf.mxu1 }
 0x3a0   :  { %v5358_v37 = vmul.f32 -1.442695, %v2526_v3  ;;  %v5356_v47 = vmul.f32 -1.442695, %v2524_v29  ;;  %v2525_v49 = vadd.f32 %v2515_v20, %v2422_v56  ;;  %v2527_v55 = vadd.f32 %v2517_v38, %v2465_v26 }
 0x3a1   :  { %v2532_v26 = vrot.slane %v7102_v63, 4  ;;  %v6163_v63 = vld [vmem:[#allocation9 + $0x100] ss:$20 sps:$4 sm:$0xff]  }
 0x3a2   :  { %6358 = vpow2.f32 %v5358_v37  ;;  %v5357_v41 = vmul.f32 -1.442695, %v2525_v49  ;;  %v5359_v32 = vmul.f32 -1.442695, %v2527_v55 }
 0x3a3   :  { %6360 = vpow2.f32 %v5356_v47 }
 0x3a4   :  { %6362 = vpow2.f32 %v5353_v43 }
 0x3a5   :  { %6364 = vpow2.f32 %v5355_v7 }
 0x3ab   :  { %v6355_v57 = vpop.eup %6354 }
 0x3ac   :  { %v6357_v25 = vpop.eup %6356  ;;  %v2563_v48 = vadd.f32 1.0, %v6355_v57 }
 0x3ad   :  { %v2561_v35 = vadd.f32 1.0, %v6357_v25 }
 0x3ae   :  { %6366 = vrcp.f32 %v2563_v48 }
 0x3af   :  { %v6359_v24 = vpop.eup %6358  ;;  %6368 = vrcp.f32 %v2561_v35 }
 0x3b0   :  { %v6361_v34 = vpop.eup %6360  ;;  %v2567_v21 = vadd.f32 1.0, %v6359_v24 }
 0x3b1   :  { %v2565_v46 = vadd.f32 1.0, %v6361_v34  ;;  %v6363_v44 = vpop.eup %6362 }
 0x3b2   :  { %v6365_v0 = vpop.eup %6364  ;;  %v2562_v31 = vadd.f32 1.0, %v6363_v44  ;;  %v6166_v44 = vld [vmem:[#allocation9 + $0x88] ss:$20 sps:$4 sm:$0xff]  }
 0x3b3   :  { %v2564_v1 = vadd.f32 1.0, %v6365_v0  ;;  %v6167_v0 = vld [vmem:[#allocation9 + $0x60] ss:$20 sps:$4 sm:$0xff]  }
 0x3b9   :  { %v2502_v10 = vpop.f32.mrf.mxu0 }
 0x3ba   :  { %v2523_v27 = vadd.f32 %v2513_v39, %v2502_v10  ;;  %v2536_v10 = vunpack.c.l.bf16 %v2532_v26 }
 0x3bb   :  { %v5846_v50 = vpop.f32.mrf.mxu0  ;;  %v6367_v40 = vpop.eup %6366 }
 0x3bc   :  { %6370 = vtanh.f32 %v2523_v27  ;;  %v6369_v33 = vpop.eup %6368  ;;  %v2589_v47 = vmul.f32 %v6367_v40, %v7261_v15  ;;  %v2531_v15 = vrot.slane %v7096_v59, 4  ;;  %v6168_v40 = vld [vmem:[#allocation9 + $0x38] ss:$20 sps:$4 sm:$0xff]  }
 0x3bd   :  { %6372 = vpow2.f32 %v5357_v41  ;;  %v2505_v13 = vpop.f32.mrf.mxu0 }
 0x3be   :  { %6374 = vrcp.f32 %v2567_v21  ;;  %v2528_v58 = vadd.f32 %v2518_v5, %v2505_v13  ;;  %v2535_v35 = vunpack.c.l.bf16 %v2531_v15 }
 0x3bf   :  { %6376 = vrcp.f32 %v2565_v46  ;;  %v5847_v11 = vpop.f32.mrf.mxu0 }
 0x3c0   :  { %6378 = vtanh.f32 %v2528_v58  ;;  %v6164_v58 = vld [vmem:[#allocation9 + $0xd8] ss:$20 sps:$4 sm:$0xff]   ;;  %v6165_v11 = vld [vmem:[#allocation9 + $0xb0] ss:$20 sps:$4 sm:$0xff]  }
 0x3c1   :  { %6380 = vpow2.f32 %v5359_v32  ;;  %v6162_v32 = vld [vmem:[#allocation9 + $0x128] ss:$20 sps:$4 sm:$0xff]  }
 0x3c2   :  { %6382 = vrcp.f32 %v2562_v31 }
 0x3c9   :  { %v6371_v3 = vpop.eup %6370 }
 0x3ca   :  { %v6373_v29 = vpop.eup %6372  ;;  %v2587_v37 = vmul.f32 %v6371_v3, %v6369_v33  ;;  %v6169_v33 = vld [vmem:[#allocation9 + $0x10] ss:$20 sps:$4 sm:$0xff]  }
 0x3cb   :  { %v6375_v16 = vpop.eup %6374  ;;  %v2566_v57 = vadd.f32 1.0, %v6373_v29 }
 0x3cc   :  { %v6377_v14 = vpop.eup %6376  ;;  %v7317_v19 = vadd.f32 %v2589_v47, %v2587_v37  ;;  %v2590_v25 = vmul.f32 %v6375_v16, %v7265_v54  ;;  %v3006_v37 = vunpack.c.l.bf16 %v6972_v12  ;;  %v7724_v16 = vld [vmem:[#allocation16_spill] sm:$0xff] }
 0x3cd   :  { %v6379_v56 = vpop.eup %6378 }
 0x3ce   :  { %6384 = vtanh.f32 %v7317_v19  ;;  %v2588_v20 = vmul.f32 %v6379_v56, %v6377_v14  ;;  %v6381_v43 = vpop.eup %6380  ;;  %v3004_v14 = vunpack.c.l.bf16 %v7724_v16 }
 0x3cf   :  { %6386 = vrcp.f32 %v2564_v1  ;;  %v2568_v49 = vadd.f32 1.0, %v6381_v43  ;;  %v6383_v48 = vpop.eup %6382 }
 0x3d0   :  { %v7321_v7 = vadd.f32 %v2590_v25, %v2588_v20  ;;  %6388 = vrcp.f32 %v2566_v57  ;;  %v7725_v25 = vld [vmem:[#allocation18_spill] sm:$0xff] }
 0x3d1   :  { %v3011_v43 = vunpack.c.l.bf16 %v7725_v25 }
 0x3d2   :  { %6390 = vtanh.f32 %v7321_v7 }
 0x3d3   :  { %6392 = vrcp.f32 %v2568_v49  ;;  %v7726_v49 = vld [vmem:[#allocation17_spill] sm:$0xff] }
 0x3d4   :  { %v3009_v15 = vunpack.c.l.bf16 %v7726_v49 }
 0x3db   :  { %v6385_v24 = vpop.eup %6384 }
 0x3dc   :  { %v2595_v34 = vmul.f32 %v6385_v24, %v6383_v48  ;;  %v6387_v38 = vpop.eup %6386 }
 0x3dd   :  { %v6389_v39 = vpop.eup %6388 }
 0x3de   :  { %v2597_v54 = vsub.f32 %v2595_v34, %v2535_v35 }
 0x3df   :  { %v6391_v41 = vpop.eup %6390 }
 0x3e0   :  { %v2596_v21 = vmul.f32 %v6391_v41, %v6389_v39  ;;  %v2599_v55 = vmul.f32 %v6387_v38, %v2597_v54  ;;  %v6393_v50 = vpop.eup %6392  ;;  %v3005_v39 = vunpack.c.h.bf16 %v7724_v16  ;;  %v3007_v54 = vunpack.c.h.bf16 %v6972_v12  ;;  %v7728_v16 = vld [vmem:[#allocation36_spill] sm:$0xff] }
 0x3e2   :  { %v2598_v27 = vsub.f32 %v2596_v21, %v2536_v10  ;;  %v2601_v46 = vadd.f32 %v2599_v55, %v2535_v35 }
 0x3e4   :  { %v2600_v5 = vmul.f32 %v6393_v50, %v2598_v27  ;;  %v3010_v27 = vunpack.c.h.bf16 %v7726_v49 }
 0x3e6   :  { %v2602_v13 = vadd.f32 %v2600_v5, %v2536_v10 }
 0x3e8   :  { %v2603_v59 = vpack.c.bf16 %v2602_v13, %v2601_v46 }
 0x3ea   :  { %5690 = vst [vmem:[#allocation11 + $0x10] sm:$0xff] %v2603_v59   ;;  %2910 = vmatmul.mubr.bf16.vlgmr.msra.gmra.mxu1 %v2603_v59  ;;  %2953 = vmatmul.mubr.bf16.vlgmr.msra.gmra.mxu0 %v2603_v59 }
 0x3eb   :  { %5849 = vmatpush3.bf16.msra.mxu1 %v6162_v32  ;;  %5864 = vmatprep.mubr.msk.bf16.mxu1 %vm6721_vm0, %v7722_v22 }
 0x3ec   :  { %5850 = vmatprep.subr.bf16.mxu1 %v7722_v22  ;;  %3404 = vmatprep.mubr.bf16.mxu0 %v7723_v42 }
 0x3ef   :  { %5851 = vmatpush3.bf16.msra.mxu1 %v6163_v63 }
 0x3f0   :  { %5852 = vmatprep.subr.bf16.mxu1 %v7722_v22 }
 0x3f3   :  { %5853 = vmatpush3.bf16.msra.mxu1 %v6164_v58 }
 0x3f4   :  { %5854 = vmatprep.subr.bf16.mxu1 %v7722_v22 }
 0x3f7   :  { %5855 = vmatpush3.bf16.msra.mxu1 %v6165_v11 }
 0x3f8   :  { %5856 = vmatprep.subr.bf16.mxu1 %v7722_v22 }
 0x3fb   :  { %5857 = vmatpush3.bf16.msra.mxu1 %v6166_v44  ;;  %v3012_v44 = vunpack.c.h.bf16 %v7725_v25 }
 0x3fc   :  { %5858 = vmatprep.subr.bf16.mxu1 %v7722_v22 }
 0x3ff   :  { %5859 = vmatpush3.bf16.msra.mxu1 %v6167_v0  ;;  %v7727_v0 = vld [vmem:[#allocation35_spill] sm:$0xff] }
 0x400   :  { %5860 = vmatprep.subr.bf16.mxu1 %v7722_v22  ;;  %v3008_v12 = vunpack.c.l.bf16 %v7727_v0 }
 0x403   :  { %5861 = vmatpush3.bf16.msra.mxu1 %v6168_v40 }
 0x404   :  { %5862 = vmatprep.subr.bf16.mxu1 %v7722_v22 }
 0x407   :  { %5863 = vmatpush3.bf16.msra.mxu1 %v6169_v33 }
 0x408   :  { %3415 = vmatprep.subr.bf16.mxu1 %v7201_v61  ;;  %v7353_v61 = vld [vmem:[#allocation9 + $0x11c] ss:$20 sps:$4 sm:$0xff]  }
 0x409   :  { %3372 = vmatprep.subr.bf16.mxu0 %v7353_v61 }
 0x40a   :  { %5865 = vmatmul.mubr.bf16.vlgmr.msra.gmra.mxu1 %v2603_v59 }
 0x40b   :  { %3416 = vmatpush1.bf16.msra.mxu1 %v7203_v62  ;;  %3447 = vmatprep.mubr.bf16.mxu1 %v7723_v42  ;;  %v7355_v62 = vld [vmem:[#allocation9 + $0x118] ss:$20 sps:$4 sm:$0xff]  }
 0x40c   :  { %3417 = vmatprep.subr.bf16.mxu1 %v7207_v6  ;;  %3373 = vmatpush1.bf16.msra.mxu0 %v7355_v62  ;;  %v7360_v6 = vld [vmem:[#allocation9 + $0xf4] ss:$20 sps:$4 sm:$0xff]  }
 0x40d   :  { %3374 = vmatprep.subr.bf16.mxu0 %v7360_v6 }
 0x40f   :  { %3418 = vmatpush1.bf16.msra.mxu1 %v7209_v51  ;;  %v7362_v51 = vld [vmem:[#allocation9 + $0xf0] ss:$20 sps:$4 sm:$0xff]  }
 0x410   :  { %3419 = vmatprep.subr.bf16.mxu1 %v7213_v4  ;;  %3375 = vmatpush1.bf16.msra.mxu0 %v7362_v51  ;;  %v7366_v4 = vld [vmem:[#allocation9 + $0xcc] ss:$20 sps:$4 sm:$0xff]  }
 0x411   :  { %3376 = vmatprep.subr.bf16.mxu0 %v7366_v4 }
 0x413   :  { %3420 = vmatpush1.bf16.msra.mxu1 %v7215_v52  ;;  %v7368_v52 = vld [vmem:[#allocation9 + $0xc8] ss:$20 sps:$4 sm:$0xff]  }
 0x414   :  { %3421 = vmatprep.subr.bf16.mxu1 %v7217_v18  ;;  %3377 = vmatpush1.bf16.msra.mxu0 %v7368_v52  ;;  %v7372_v18 = vld [vmem:[#allocation9 + $0xa0] ss:$20 sps:$4 sm:$0xff]  }
 0x417   :  { %3422 = vmatpush1.bf16.msra.mxu1 %v7221_v53  ;;  %v7374_v53 = vld [vmem:[#allocation9 + $0xa4] ss:$20 sps:$4 sm:$0xff]  }
 0x418   :  { %3423 = vmatprep.subr.bf16.mxu1 %v7224_v60  ;;  %v7376_v60 = vld [vmem:[#allocation9 + $0x7c] ss:$20 sps:$4 sm:$0xff]   ;;  %3378 = vmatprep.subr.bf16.mxu0 %v7374_v53 }
 0x419   :  { %3379 = vmatpush1.bf16.msra.mxu0 %v7372_v18 }
 0x41a   :  { %3380 = vmatprep.subr.bf16.mxu0 %v7376_v60 }
 0x41b   :  { %3424 = vmatpush1.bf16.msra.mxu1 %v7227_v45  ;;  %v7380_v45 = vld [vmem:[#allocation9 + $0x78] ss:$20 sps:$4 sm:$0xff]  }
 0x41c   :  { %3425 = vmatprep.subr.bf16.mxu1 %v7230_v2  ;;  %v7383_v2 = vld [vmem:[#allocation9 + $0x54] ss:$20 sps:$4 sm:$0xff]  }
 0x41d   :  { %3381 = vmatpush1.bf16.msra.mxu0 %v7380_v45 }
 0x41e   :  { %3382 = vmatprep.subr.bf16.mxu0 %v7383_v2 }
 0x41f   :  { %3426 = vmatpush1.bf16.msra.mxu1 %v7233_v8  ;;  %v7386_v8 = vld [vmem:[#allocation9 + $0x50] ss:$20 sps:$4 sm:$0xff]  }
 0x420   :  { %3427 = vmatprep.subr.bf16.mxu1 %v7236_v28  ;;  %v7389_v28 = vld [vmem:[#allocation9 + $0x2c] ss:$20 sps:$4 sm:$0xff]  }
 0x421   :  { %3383 = vmatpush1.bf16.msra.mxu0 %v7386_v8 }
 0x422   :  { %3384 = vmatprep.subr.bf16.mxu0 %v7389_v28 }
 0x423   :  { %3428 = vmatpush1.bf16.msra.mxu1 %v7239_v9  ;;  %v7392_v9 = vld [vmem:[#allocation9 + $0x28] ss:$20 sps:$4 sm:$0xff]  }
 0x424   :  { %3429 = vmatprep.subr.bf16.mxu1 %v7242_v23  ;;  %v7395_v23 = vld [vmem:[#allocation9 + $0x4] ss:$20 sps:$4 sm:$0xff]  }
 0x425   :  { %3385 = vmatpush1.bf16.msra.mxu0 %v7392_v9 }
 0x426   :  { %3386 = vmatprep.subr.bf16.mxu0 %v7395_v23 }
 0x427   :  { %3430 = vmatpush1.bf16.msra.mxu1 %v7245_v36  ;;  %v7398_v36 = vld [vmem:[#allocation9] ss:$20 sps:$4 sm:$0xff]  }
 0x428   :  { %3867 = vmatprep.subr.bf16.mxu1 %v7353_v61 }
 0x429   :  { %3387 = vmatpush1.bf16.msra.mxu0 %v7398_v36 }
 0x42a   :  { %5868 = vmatprep.subr.bf16.mxu0 %v7722_v22 }
 0x4aa   :  { %v2911_v3 = vpop.f32.mrf.mxu1  ;;  %v2954_v31 = vpop.f32.mrf.mxu0 }
 0x4ab   :  { %v3016_v1 = vadd.f32 %v3006_v37, %v2954_v31  ;;  %v3014_v56 = vadd.f32 %v3004_v14, %v2911_v3  ;;  %v3013_v14 = vunpack.c.l.bf16 %v7728_v16 }
 0x4ac   :  { %v2956_v29 = vpop.f32.mrf.mxu0  ;;  %v2913_v47 = vpop.f32.mrf.mxu1 }
 0x4ad   :  { %v5404_v48 = vmul.f32 -1.442695, %v3016_v1  ;;  %v5402_v35 = vmul.f32 -1.442695, %v3014_v56  ;;  %v3015_v41 = vadd.f32 %v3005_v39, %v2913_v47  ;;  %v3017_v10 = vadd.f32 %v3007_v54, %v2956_v29 }
 0x4ae   :  { %v2958_v57 = vpop.f32.mrf.mxu0  ;;  %v2915_v20 = vpop.f32.mrf.mxu1 }
 0x4af   :  { %v3021_v24 = vadd.f32 %v3011_v43, %v2958_v57  ;;  %v3019_v26 = vadd.f32 %v3009_v15, %v2915_v20  ;;  %6394 = vpow2.f32 %v5404_v48  ;;  %v5403_v50 = vmul.f32 -1.442695, %v3015_v41 }
 0x4b0   :  { %6396 = vpow2.f32 %v5402_v35  ;;  %v2917_v21 = vpop.f32.mrf.mxu1  ;;  %v5405_v5 = vmul.f32 -1.442695, %v3017_v10  ;;  %v2960_v58 = vpop.f32.mrf.mxu0 }
 0x4b1   :  { %v5408_v34 = vmul.f32 -1.442695, %v3021_v24  ;;  %v5406_v38 = vmul.f32 -1.442695, %v3019_v26  ;;  %v3020_v13 = vadd.f32 %v3010_v27, %v2917_v21  ;;  %v3022_v31 = vadd.f32 %v3012_v44, %v2960_v58 }
 0x4b3   :  { %6398 = vpow2.f32 %v5408_v34  ;;  %v5407_v40 = vmul.f32 -1.442695, %v3020_v13  ;;  %v5409_v56 = vmul.f32 -1.442695, %v3022_v31 }
 0x4b4   :  { %6400 = vpow2.f32 %v5406_v38 }
 0x4b5   :  { %6402 = vpow2.f32 %v5403_v50 }
 0x4b6   :  { %6404 = vpow2.f32 %v5405_v5 }
 0x4bc   :  { %v6395_v55 = vpop.eup %6394 }
 0x4bd   :  { %v6397_v46 = vpop.eup %6396  ;;  %v3058_v32 = vadd.f32 1.0, %v6395_v55 }
 0x4be   :  { %v3056_v63 = vadd.f32 1.0, %v6397_v46 }
 0x4bf   :  { %6406 = vrcp.f32 %v3058_v32 }
 0x4c0   :  { %v6399_v59 = vpop.eup %6398  ;;  %6408 = vrcp.f32 %v3056_v63  ;;  %v3027_v63 = vrot.slane %v7728_v16, 4  ;;  %v6195_v16 = vld [vmem:[#allocation9 + $0x100] ss:$20 sps:$4 sm:$0xff]  }
 0x4c1   :  { %v6401_v11 = vpop.eup %6400  ;;  %v3062_v3 = vadd.f32 1.0, %v6399_v59 }
 0x4c2   :  { %v3060_v37 = vadd.f32 1.0, %v6401_v11  ;;  %v6403_v25 = vpop.eup %6402 }
 0x4c3   :  { %v6405_v43 = vpop.eup %6404  ;;  %v3057_v24 = vadd.f32 1.0, %v6403_v25  ;;  %v6199_v25 = vld [vmem:[#allocation9 + $0x60] ss:$20 sps:$4 sm:$0xff]  }
 0x4c4   :  { %v3059_v54 = vadd.f32 1.0, %v6405_v43  ;;  %v6200_v43 = vld [vmem:[#allocation9 + $0x38] ss:$20 sps:$4 sm:$0xff]  }
 0x4ca   :  { %v2997_v33 = vpop.f32.mrf.mxu1 }
 0x4cb   :  { %v3018_v29 = vadd.f32 %v3008_v12, %v2997_v33 }
 0x4cc   :  { %v5866_v47 = vpop.f32.mrf.mxu1  ;;  %v6407_v49 = vpop.eup %6406 }
 0x4cd   :  { %6410 = vtanh.f32 %v3018_v29  ;;  %v6409_v15 = vpop.eup %6408  ;;  %v3084_v34 = vmul.f32 %v6407_v49, %v7317_v19  ;;  %v3026_v19 = vrot.slane %v7727_v0, 4  ;;  %v6201_v49 = vld [vmem:[#allocation9 + $0x10] ss:$20 sps:$4 sm:$0xff]  }
 0x4ce   :  { %6412 = vpow2.f32 %v5407_v40  ;;  %v3000_v1 = vpop.f32.mrf.mxu1  ;;  %v3031_v40 = vunpack.c.l.bf16 %v3027_v63  ;;  %v7729_v63 = vld [vmem:[#allocation20_spill] sm:$0xff] }
 0x4cf   :  { %6414 = vrcp.f32 %v3062_v3  ;;  %v3023_v57 = vadd.f32 %v3013_v14, %v3000_v1  ;;  %v3030_v59 = vunpack.c.l.bf16 %v3026_v19  ;;  %v6194_v1 = vld [vmem:[#allocation9 + $0x128] ss:$20 sps:$4 sm:$0xff]  }
 0x4d0   :  { %6416 = vrcp.f32 %v3060_v37  ;;  %v5867_v20 = vpop.f32.mrf.mxu1  ;;  %v7494_v19 = vld [vmem:[#allocation9 + $0x8] ss:$20 sps:$4 sm:$0xff]  }
 0x4d1   :  { %6418 = vtanh.f32 %v3023_v57  ;;  %v6197_v57 = vld [vmem:[#allocation9 + $0xb0] ss:$20 sps:$4 sm:$0xff]   ;;  %v6198_v20 = vld [vmem:[#allocation9 + $0x88] ss:$20 sps:$4 sm:$0xff]  }
 0x4d2   :  { %6420 = vpow2.f32 %v5409_v56  ;;  %v6196_v56 = vld [vmem:[#allocation9 + $0xd8] ss:$20 sps:$4 sm:$0xff]  }
 0x4d3   :  { %6422 = vrcp.f32 %v3057_v24  ;;  %v7456_v24 = vld [vmem:[#allocation9 + $0xfc] ss:$20 sps:$4 sm:$0xff]  }
 0x4da   :  { %v6411_v48 = vpop.eup %6410 }
 0x4db   :  { %v6413_v35 = vpop.eup %6412  ;;  %v3082_v26 = vmul.f32 %v6411_v48, %v6409_v15  ;;  %v7450_v15 = vld [vmem:[#allocation9 + $0x124] ss:$20 sps:$4 sm:$0xff]   ;;  %v7452_v48 = vld [vmem:[#allocation9 + $0x120] ss:$20 sps:$4 sm:$0xff]  }
 0x4dc   :  { %v6415_v38 = vpop.eup %6414  ;;  %v3061_v21 = vadd.f32 1.0, %v6413_v35  ;;  %v7458_v35 = vld [vmem:[#allocation9 + $0xf8] ss:$20 sps:$4 sm:$0xff]  }
 0x4dd   :  { %v6417_v39 = vpop.eup %6416  ;;  %v7414_v41 = vadd.f32 %v3084_v34, %v3082_v26  ;;  %v3085_v27 = vmul.f32 %v6415_v38, %v7321_v7  ;;  %v7462_v26 = vld [vmem:[#allocation9 + $0xd4] ss:$20 sps:$4 sm:$0xff]   ;;  %v7464_v34 = vld [vmem:[#allocation9 + $0xd0] ss:$20 sps:$4 sm:$0xff]   ;;  %v7467_v38 = vld [vmem:[#allocation9 + $0xac] ss:$20 sps:$4 sm:$0xff]  }
 0x4de   :  { %v6419_v10 = vpop.eup %6418 }
 0x4df   :  { %6424 = vtanh.f32 %v7414_v41  ;;  %v3083_v55 = vmul.f32 %v6419_v10, %v6417_v39  ;;  %v6421_v46 = vpop.eup %6420  ;;  %v7470_v39 = vld [vmem:[#allocation9 + $0xa8] ss:$20 sps:$4 sm:$0xff]   ;;  %v7476_v10 = vld [vmem:[#allocation9 + $0x80] ss:$20 sps:$4 sm:$0xff]  }
 0x4e0   :  { %6426 = vrcp.f32 %v3059_v54  ;;  %v3063_v5 = vadd.f32 1.0, %v6421_v46  ;;  %v6423_v13 = vpop.eup %6422  ;;  %v7473_v54 = vld [vmem:[#allocation9 + $0x84] ss:$20 sps:$4 sm:$0xff]  }
 0x4e1   :  { %v7418_v50 = vadd.f32 %v3085_v27, %v3083_v55  ;;  %6428 = vrcp.f32 %v3061_v21  ;;  %v7479_v21 = vld [vmem:[#allocation9 + $0x5c] ss:$20 sps:$4 sm:$0xff]   ;;  %v7482_v55 = vld [vmem:[#allocation9 + $0x58] ss:$20 sps:$4 sm:$0xff]   ;;  %v7485_v27 = vld [vmem:[#allocation9 + $0x34] ss:$20 sps:$4 sm:$0xff]  }
 0x4e2   :  { %v7488_v46 = vld [vmem:[#allocation9 + $0x30] ss:$20 sps:$4 sm:$0xff]  }
 0x4e3   :  { %6430 = vtanh.f32 %v7418_v50 }
 0x4e4   :  { %6432 = vrcp.f32 %v3063_v5  ;;  %v7491_v5 = vld [vmem:[#allocation9 + $0xc] ss:$20 sps:$4 sm:$0xff]  }
 0x4ec   :  { %v6425_v32 = vpop.eup %6424 }
 0x4ed   :  { %v3090_v58 = vmul.f32 %v6425_v32, %v6423_v13  ;;  %v6427_v11 = vpop.eup %6426 }
 0x4ee   :  { %v6429_v44 = vpop.eup %6428 }
 0x4ef   :  { %v3092_v7 = vsub.f32 %v3090_v58, %v3030_v59  ;;  %v3501_v58 = vunpack.c.l.bf16 %v7729_v63 }
 0x4f0   :  { %v6431_v12 = vpop.eup %6430 }
 0x4f1   :  { %v3091_v33 = vmul.f32 %v6431_v12, %v6429_v44  ;;  %v3094_v3 = vmul.f32 %v6427_v11, %v3092_v7  ;;  %v6433_v37 = vpop.eup %6432  ;;  %v7730_v44 = vld [vmem:[#allocation19_spill] sm:$0xff] }
 0x4f2   :  { %v3499_v7 = vunpack.c.l.bf16 %v7730_v44 }
 0x4f3   :  { %v3093_v31 = vsub.f32 %v3091_v33, %v3031_v40  ;;  %v3096_v29 = vadd.f32 %v3094_v3, %v3030_v59 }
 0x4f5   :  { %v3095_v47 = vmul.f32 %v6433_v37, %v3093_v31  ;;  %v7731_v31 = vld [vmem:[#allocation22_spill] sm:$0xff]  ;;  %v7732_v37 = vld [vmem:[#allocation21_spill] sm:$0xff] }
 0x4f7   :  { %v3097_v14 = vadd.f32 %v3095_v47, %v3031_v40  ;;  %v3504_v47 = vunpack.c.l.bf16 %v7732_v37 }
 0x4f9   :  { %v3098_v0 = vpack.c.bf16 %v3097_v14, %v3096_v29  ;;  %v3506_v29 = vunpack.c.l.bf16 %v7731_v31 }
 0x4fb   :  { %5695 = vst [vmem:[#allocation11 + $0x18] sm:$0xff] %v3098_v0   ;;  %3405 = vmatmul.mubr.bf16.vlgmr.msra.gmra.mxu0 %v3098_v0  ;;  %3448 = vmatmul.mubr.bf16.vlgmr.msra.gmra.mxu1 %v3098_v0 }
 0x4fc   :  { %5869 = vmatpush3.bf16.msra.mxu0 %v6194_v1  ;;  %5884 = vmatprep.mubr.msk.bf16.mxu0 %vm6721_vm0, %v7722_v22 }
 0x4fd   :  { %5870 = vmatprep.subr.bf16.mxu0 %v7722_v22  ;;  %3868 = vmatpush1.bf16.msra.mxu1 %v7355_v62 }
 0x4fe   :  { %3869 = vmatprep.subr.bf16.mxu1 %v7360_v6  ;;  %3899 = vmatprep.mubr.bf16.mxu1 %v7723_v42 }
 0x500   :  { %5871 = vmatpush3.bf16.msra.mxu0 %v6195_v16 }
 0x501   :  { %5872 = vmatprep.subr.bf16.mxu0 %v7722_v22  ;;  %3870 = vmatpush1.bf16.msra.mxu1 %v7362_v51 }
 0x502   :  { %3871 = vmatprep.subr.bf16.mxu1 %v7366_v4 }
 0x504   :  { %5873 = vmatpush3.bf16.msra.mxu0 %v6196_v56 }
 0x505   :  { %5874 = vmatprep.subr.bf16.mxu0 %v7722_v22  ;;  %3872 = vmatpush1.bf16.msra.mxu1 %v7368_v52 }
 0x506   :  { %3873 = vmatprep.subr.bf16.mxu1 %v7374_v53 }
 0x508   :  { %5875 = vmatpush3.bf16.msra.mxu0 %v6197_v57  ;;  %v3500_v57 = vunpack.c.h.bf16 %v7730_v44  ;;  %v3507_v44 = vunpack.c.h.bf16 %v7731_v31 }
 0x509   :  { %5876 = vmatprep.subr.bf16.mxu0 %v7722_v22  ;;  %3874 = vmatpush1.bf16.msra.mxu1 %v7372_v18 }
 0x50a   :  { %3875 = vmatprep.subr.bf16.mxu1 %v7376_v60 }
 0x50c   :  { %5877 = vmatpush3.bf16.msra.mxu0 %v6198_v20  ;;  %v3502_v20 = vunpack.c.h.bf16 %v7729_v63 }
 0x50d   :  { %5878 = vmatprep.subr.bf16.mxu0 %v7722_v22  ;;  %3876 = vmatpush1.bf16.msra.mxu1 %v7380_v45 }
 0x50e   :  { %3877 = vmatprep.subr.bf16.mxu1 %v7383_v2 }
 0x510   :  { %5879 = vmatpush3.bf16.msra.mxu0 %v6199_v25 }
 0x511   :  { %5880 = vmatprep.subr.bf16.mxu0 %v7722_v22  ;;  %3878 = vmatpush1.bf16.msra.mxu1 %v7386_v8 }
 0x512   :  { %3879 = vmatprep.subr.bf16.mxu1 %v7389_v28 }
 0x514   :  { %5881 = vmatpush3.bf16.msra.mxu0 %v6200_v43 }
 0x515   :  { %5882 = vmatprep.subr.bf16.mxu0 %v7722_v22  ;;  %3880 = vmatpush1.bf16.msra.mxu1 %v7392_v9 }
 0x516   :  { %3881 = vmatprep.subr.bf16.mxu1 %v7395_v23 }
 0x518   :  { %5883 = vmatpush3.bf16.msra.mxu0 %v6201_v49 }
 0x519   :  { %3882 = vmatpush1.bf16.msra.mxu1 %v7398_v36  ;;  %3910 = vmatprep.subr.bf16.mxu0 %v7450_v15 }
 0x51a   :  { %5888 = vmatprep.subr.bf16.mxu1 %v7722_v22 }
 0x51b   :  { %5885 = vmatmul.mubr.bf16.vlgmr.msra.gmra.mxu0 %v3098_v0 }
 0x51c   :  { %3942 = vmatprep.mubr.bf16.mxu0 %v7723_v42  ;;  %3911 = vmatpush1.bf16.msra.mxu0 %v7452_v48 }
 0x51d   :  { %3912 = vmatprep.subr.bf16.mxu0 %v7456_v24 }
 0x520   :  { %3913 = vmatpush1.bf16.msra.mxu0 %v7458_v35 }
 0x521   :  { %3914 = vmatprep.subr.bf16.mxu0 %v7462_v26 }
 0x524   :  { %3915 = vmatpush1.bf16.msra.mxu0 %v7464_v34 }
 0x525   :  { %3916 = vmatprep.subr.bf16.mxu0 %v7467_v38 }
 0x528   :  { %3917 = vmatpush1.bf16.msra.mxu0 %v7470_v39 }
 0x529   :  { %3918 = vmatprep.subr.bf16.mxu0 %v7473_v54 }
 0x52c   :  { %3919 = vmatpush1.bf16.msra.mxu0 %v7476_v10 }
 0x52d   :  { %3920 = vmatprep.subr.bf16.mxu0 %v7479_v21 }
 0x530   :  { %3921 = vmatpush1.bf16.msra.mxu0 %v7482_v55 }
 0x531   :  { %3922 = vmatprep.subr.bf16.mxu0 %v7485_v27 }
 0x534   :  { %3923 = vmatpush1.bf16.msra.mxu0 %v7488_v46 }
 0x535   :  { %3924 = vmatprep.subr.bf16.mxu0 %v7491_v5 }
 0x538   :  { %3925 = vmatpush1.bf16.msra.mxu0 %v7494_v19 }
 0x539   :  { %4362 = vmatprep.subr.bf16.mxu0 %v7353_v61 }
 0x5bb   :  { %v3406_v13 = vpop.f32.mrf.mxu0  ;;  %v3449_v32 = vpop.f32.mrf.mxu1 }
 0x5bc   :  { %v3511_v12 = vadd.f32 %v3501_v58, %v3449_v32  ;;  %v3509_v40 = vadd.f32 %v3499_v7, %v3406_v13  ;;  %v3505_v32 = vunpack.c.h.bf16 %v7732_v37 }
 0x5bd   :  { %v3451_v59 = vpop.f32.mrf.mxu1  ;;  %v3408_v11 = vpop.f32.mrf.mxu0 }
 0x5be   :  { %v5454_v14 = vmul.f32 -1.442695, %v3511_v12  ;;  %v5452_v0 = vmul.f32 -1.442695, %v3509_v40  ;;  %v3510_v25 = vadd.f32 %v3500_v57, %v3408_v11  ;;  %v3512_v43 = vadd.f32 %v3502_v20, %v3451_v59 }
 0x5bf   :  { %v3453_v33 = vpop.f32.mrf.mxu1  ;;  %v3410_v3 = vpop.f32.mrf.mxu0  ;;  %v3508_v57 = vunpack.c.l.bf16 %v7124_v30 }
 0x5c0   :  { %v3516_v1 = vadd.f32 %v3506_v29, %v3453_v33  ;;  %v3514_v61 = vadd.f32 %v3504_v47, %v3410_v3  ;;  %6434 = vpow2.f32 %v5454_v14  ;;  %v5453_v7 = vmul.f32 -1.442695, %v3510_v25 }
 0x5c1   :  { %6436 = vpow2.f32 %v5452_v0  ;;  %v3412_v49 = vpop.f32.mrf.mxu0  ;;  %v5455_v12 = vmul.f32 -1.442695, %v3512_v43  ;;  %v3455_v47 = vpop.f32.mrf.mxu1 }
 0x5c2   :  { %v5458_v16 = vmul.f32 -1.442695, %v3516_v1  ;;  %v5456_v56 = vmul.f32 -1.442695, %v3514_v61  ;;  %v3515_v40 = vadd.f32 %v3505_v32, %v3412_v49  ;;  %v7733_v1 = vld [vmem:[#allocation37_spill] sm:$0xff]  ;;  %v3517_v37 = vadd.f32 %v3507_v44, %v3455_v47 }
 0x5c3   :  { %v3503_v63 = vunpack.c.l.bf16 %v7733_v1 }
 0x5c4   :  { %6438 = vpow2.f32 %v5458_v16  ;;  %v5457_v59 = vmul.f32 -1.442695, %v3515_v40  ;;  %v5459_v25 = vmul.f32 -1.442695, %v3517_v37 }
 0x5c5   :  { %6440 = vpow2.f32 %v5456_v56 }
 0x5c6   :  { %6442 = vpow2.f32 %v5453_v7 }
 0x5c7   :  { %6444 = vpow2.f32 %v5455_v12 }
 0x5cd   :  { %v6435_v13 = vpop.eup %6434 }
 0x5ce   :  { %v6437_v58 = vpop.eup %6436  ;;  %v3553_v33 = vadd.f32 1.0, %v6435_v13 }
 0x5cf   :  { %v3551_v29 = vadd.f32 1.0, %v6437_v58 }
 0x5d0   :  { %6446 = vrcp.f32 %v3553_v33 }
 0x5d1   :  { %v6439_v3 = vpop.eup %6438  ;;  %6448 = vrcp.f32 %v3551_v29 }
 0x5d2   :  { %v6441_v14 = vpop.eup %6440  ;;  %v3557_v0 = vadd.f32 1.0, %v6439_v3 }
 0x5d3   :  { %v3555_v16 = vadd.f32 1.0, %v6441_v14  ;;  %v6443_v49 = vpop.eup %6442 }
 0x5d4   :  { %v6445_v13 = vpop.eup %6444  ;;  %v3552_v12 = vadd.f32 1.0, %v6443_v49 }
 0x5d5   :  { %v3554_v14 = vadd.f32 1.0, %v6445_v13 }
 0x5db   :  { %v3492_v11 = vpop.f32.mrf.mxu0 }
 0x5dc   :  { %v3513_v61 = vadd.f32 %v3503_v63, %v3492_v11 }
 0x5dd   :  { %v5886_v56 = vpop.f32.mrf.mxu0  ;;  %v6447_v32 = vpop.eup %6446 }
 0x5de   :  { %6450 = vtanh.f32 %v3513_v61  ;;  %v6449_v58 = vpop.eup %6448  ;;  %v3579_v3 = vmul.f32 %v6447_v32, %v7414_v41  ;;  %v3521_v41 = vrot.slane %v7733_v1, 4 }
 0x5df   :  { %6452 = vpow2.f32 %v5457_v59  ;;  %v3495_v20 = vpop.f32.mrf.mxu0 }
 0x5e0   :  { %6454 = vrcp.f32 %v3557_v0  ;;  %v3518_v31 = vadd.f32 %v3508_v57, %v3495_v20  ;;  %v3525_v20 = vunpack.c.l.bf16 %v3521_v41 }
 0x5e1   :  { %6456 = vrcp.f32 %v3555_v16  ;;  %v5887_v43 = vpop.f32.mrf.mxu0 }
 0x5e2   :  { %6458 = vtanh.f32 %v3518_v31 }
 0x5e3   :  { %6460 = vpow2.f32 %v5459_v25  ;;  %v3522_v25 = vrot.slane %v7124_v30, 4  ;;  %v6227_v30 = vld [vmem:[#allocation9 + $0x100] ss:$20 sps:$4 sm:$0xff]  }
 0x5e4   :  { %6462 = vrcp.f32 %v3552_v12 }
 0x5e5   :  { %v3526_v32 = vunpack.c.l.bf16 %v3522_v25 }
 0x5eb   :  { %v6451_v7 = vpop.eup %6450 }
 0x5ec   :  { %v6453_v40 = vpop.eup %6452  ;;  %v3577_v33 = vmul.f32 %v6451_v7, %v6449_v58 }
 0x5ed   :  { %v6455_v29 = vpop.eup %6454  ;;  %v3556_v59 = vadd.f32 1.0, %v6453_v40 }
 0x5ee   :  { %v6457_v47 = vpop.eup %6456  ;;  %v7510_v44 = vadd.f32 %v3579_v3, %v3577_v33  ;;  %v3580_v0 = vmul.f32 %v6455_v29, %v7418_v50 }
 0x5ef   :  { %v6459_v63 = vpop.eup %6458 }
 0x5f0   :  { %6464 = vtanh.f32 %v7510_v44  ;;  %v3578_v11 = vmul.f32 %v6459_v63, %v6457_v47  ;;  %v6461_v37 = vpop.eup %6460  ;;  %v6226_v47 = vld [vmem:[#allocation9 + $0x128] ss:$20 sps:$4 sm:$0xff]   ;;  %v6229_v63 = vld [vmem:[#allocation9 + $0xb0] ss:$20 sps:$4 sm:$0xff]  }
 0x5f1   :  { %6466 = vrcp.f32 %v3554_v14  ;;  %v3558_v16 = vadd.f32 1.0, %v6461_v37  ;;  %v6463_v56 = vpop.eup %6462  ;;  %v6228_v14 = vld [vmem:[#allocation9 + $0xd8] ss:$20 sps:$4 sm:$0xff]  }
 0x5f2   :  { %v7514_v61 = vadd.f32 %v3580_v0, %v3578_v11  ;;  %6468 = vrcp.f32 %v3556_v59  ;;  %v7736_v11 = vld [vmem:[#allocation26_spill] sm:$0xff]  ;;  %v7737_v37 = vld [vmem:[#allocation25_spill] sm:$0xff] }
 0x5f3   :  { %v4001_v0 = vunpack.c.l.bf16 %v7736_v11 }
 0x5f4   :  { %6470 = vtanh.f32 %v7514_v61 }
 0x5f5   :  { %6472 = vrcp.f32 %v3558_v16  ;;  %v3999_v16 = vunpack.c.l.bf16 %v7737_v37 }
 0x5fd   :  { %v6465_v57 = vpop.eup %6464 }
 0x5fe   :  { %v3585_v31 = vmul.f32 %v6465_v57, %v6463_v56  ;;  %v6467_v43 = vpop.eup %6466 }
 0x5ff   :  { %v6469_v49 = vpop.eup %6468 }
 0x600   :  { %v3587_v50 = vsub.f32 %v3585_v31, %v3525_v20 }
 0x601   :  { %v6471_v13 = vpop.eup %6470 }
 0x602   :  { %v3586_v58 = vmul.f32 %v6471_v13, %v6469_v49  ;;  %v3589_v7 = vmul.f32 %v6467_v43, %v3587_v50  ;;  %v6473_v33 = vpop.eup %6472 }
 0x604   :  { %v3588_v12 = vsub.f32 %v3586_v58, %v3526_v32  ;;  %v3591_v40 = vadd.f32 %v3589_v7, %v3525_v20  ;;  %v4000_v7 = vunpack.c.h.bf16 %v7737_v37 }
 0x606   :  { %v3590_v3 = vmul.f32 %v6473_v33, %v3588_v12 }
 0x608   :  { %v3592_v29 = vadd.f32 %v3590_v3, %v3526_v32 }
 0x60a   :  { %v3593_v1 = vpack.c.bf16 %v3592_v29, %v3591_v40 }
 0x60c   :  { %5700 = vst [vmem:[#allocation11 + $0x20] sm:$0xff] %v3593_v1   ;;  %3900 = vmatmul.mubr.bf16.vlgmr.msra.gmra.mxu1 %v3593_v1  ;;  %3943 = vmatmul.mubr.bf16.vlgmr.msra.gmra.mxu0 %v3593_v1 }
 0x60d   :  { %5889 = vmatpush3.bf16.msra.mxu1 %v6226_v47  ;;  %5904 = vmatprep.mubr.msk.bf16.mxu1 %vm6721_vm0, %v7722_v22 }
 0x60e   :  { %5890 = vmatprep.subr.bf16.mxu1 %v7722_v22  ;;  %4363 = vmatpush1.bf16.msra.mxu0 %v7355_v62  ;;  %v6230_v62 = vld [vmem:[#allocation9 + $0x88] ss:$20 sps:$4 sm:$0xff]  }
 0x60f   :  { %4364 = vmatprep.subr.bf16.mxu0 %v7360_v6  ;;  %4394 = vmatprep.mubr.bf16.mxu0 %v7723_v42  ;;  %v6231_v6 = vld [vmem:[#allocation9 + $0x60] ss:$20 sps:$4 sm:$0xff]  }
 0x611   :  { %5891 = vmatpush3.bf16.msra.mxu1 %v6227_v30 }
 0x612   :  { %5892 = vmatprep.subr.bf16.mxu1 %v7722_v22  ;;  %4365 = vmatpush1.bf16.msra.mxu0 %v7362_v51  ;;  %v6232_v51 = vld [vmem:[#allocation9 + $0x38] ss:$20 sps:$4 sm:$0xff]  }
 0x613   :  { %4366 = vmatprep.subr.bf16.mxu0 %v7366_v4  ;;  %v6233_v4 = vld [vmem:[#allocation9 + $0x10] ss:$20 sps:$4 sm:$0xff]  }
 0x615   :  { %5893 = vmatpush3.bf16.msra.mxu1 %v6228_v14 }
 0x616   :  { %5894 = vmatprep.subr.bf16.mxu1 %v7722_v22  ;;  %4367 = vmatpush1.bf16.msra.mxu0 %v7368_v52 }
 0x617   :  { %4368 = vmatprep.subr.bf16.mxu0 %v7374_v53 }
 0x619   :  { %5895 = vmatpush3.bf16.msra.mxu1 %v6229_v63  ;;  %v4002_v63 = vunpack.c.h.bf16 %v7736_v11 }
 0x61a   :  { %5896 = vmatprep.subr.bf16.mxu1 %v7722_v22  ;;  %4369 = vmatpush1.bf16.msra.mxu0 %v7372_v18 }
 0x61b   :  { %4370 = vmatprep.subr.bf16.mxu0 %v7376_v60  ;;  %v7734_v60 = vld [vmem:[#allocation24_spill] sm:$0xff] }
 0x61c   :  { %v3997_v49 = vunpack.c.h.bf16 %v7734_v60 }
 0x61d   :  { %5897 = vmatpush3.bf16.msra.mxu1 %v6230_v62  ;;  %v3998_v62 = vunpack.c.l.bf16 %v7128_v17 }
 0x61e   :  { %5898 = vmatprep.subr.bf16.mxu1 %v7722_v22  ;;  %4371 = vmatpush1.bf16.msra.mxu0 %v7380_v45  ;;  %v3996_v45 = vunpack.c.l.bf16 %v7734_v60 }
 0x61f   :  { %4372 = vmatprep.subr.bf16.mxu0 %v7383_v2 }
 0x621   :  { %5899 = vmatpush3.bf16.msra.mxu1 %v6231_v6 }
 0x622   :  { %5900 = vmatprep.subr.bf16.mxu1 %v7722_v22  ;;  %4373 = vmatpush1.bf16.msra.mxu0 %v7386_v8  ;;  %v7735_v8 = vld [vmem:[#allocation23_spill] sm:$0xff] }
 0x623   :  { %4374 = vmatprep.subr.bf16.mxu0 %v7389_v28  ;;  %v3994_v28 = vunpack.c.l.bf16 %v7735_v8  ;;  %v3995_v43 = vunpack.c.h.bf16 %v7735_v8 }
 0x625   :  { %5901 = vmatpush3.bf16.msra.mxu1 %v6232_v51 }
 0x626   :  { %5902 = vmatprep.subr.bf16.mxu1 %v7722_v22  ;;  %4375 = vmatpush1.bf16.msra.mxu0 %v7392_v9 }
 0x627   :  { %4376 = vmatprep.subr.bf16.mxu0 %v7395_v23 }
 0x629   :  { %5903 = vmatpush3.bf16.msra.mxu1 %v6233_v4 }
 0x62a   :  { %4405 = vmatprep.subr.bf16.mxu1 %v7450_v15  ;;  %4377 = vmatpush1.bf16.msra.mxu0 %v7398_v36 }
 0x62b   :  { %5908 = vmatprep.subr.bf16.mxu0 %v7722_v22 }
 0x62c   :  { %5905 = vmatmul.mubr.bf16.vlgmr.msra.gmra.mxu1 %v3593_v1 }
 0x62d   :  { %4406 = vmatpush1.bf16.msra.mxu1 %v7452_v48  ;;  %4437 = vmatprep.mubr.bf16.mxu1 %v7723_v42 }
 0x62e   :  { %4407 = vmatprep.subr.bf16.mxu1 %v7456_v24 }
 0x631   :  { %4408 = vmatpush1.bf16.msra.mxu1 %v7458_v35 }
 0x632   :  { %4409 = vmatprep.subr.bf16.mxu1 %v7462_v26 }
 0x635   :  { %4410 = vmatpush1.bf16.msra.mxu1 %v7464_v34 }
 0x636   :  { %4411 = vmatprep.subr.bf16.mxu1 %v7467_v38 }
 0x639   :  { %4412 = vmatpush1.bf16.msra.mxu1 %v7470_v39 }
 0x63a   :  { %4413 = vmatprep.subr.bf16.mxu1 %v7473_v54 }
 0x63d   :  { %4414 = vmatpush1.bf16.msra.mxu1 %v7476_v10 }
 0x63e   :  { %4415 = vmatprep.subr.bf16.mxu1 %v7479_v21 }
 0x641   :  { %4416 = vmatpush1.bf16.msra.mxu1 %v7482_v55 }
 0x642   :  { %4417 = vmatprep.subr.bf16.mxu1 %v7485_v27 }
 0x645   :  { %4418 = vmatpush1.bf16.msra.mxu1 %v7488_v46 }
 0x646   :  { %4419 = vmatprep.subr.bf16.mxu1 %v7491_v5 }
 0x649   :  { %4420 = vmatpush1.bf16.msra.mxu1 %v7494_v19 }
 0x6cc   :  { %v3901_v52 = vpop.f32.mrf.mxu1  ;;  %v3944_v18 = vpop.f32.mrf.mxu0 }
 0x6cd   :  { %v4006_v9 = vadd.f32 %v3996_v45, %v3944_v18  ;;  %v4004_v23 = vadd.f32 %v3994_v28, %v3901_v52  ;;  %v7738_v45 = vld [vmem:[#allocation38_spill] sm:$0xff] }
 0x6ce   :  { %v3946_v53 = vpop.f32.mrf.mxu0  ;;  %v3903_v2 = vpop.f32.mrf.mxu1 }
 0x6cf   :  { %v5504_v41 = vmul.f32 -1.442695, %v4006_v9  ;;  %v5502_v57 = vmul.f32 -1.442695, %v4004_v23  ;;  %v4005_v50 = vadd.f32 %v3995_v43, %v3903_v2  ;;  %v4007_v13 = vadd.f32 %v3997_v49, %v3946_v53 }
 0x6d0   :  { %v3948_v36 = vpop.f32.mrf.mxu0  ;;  %v3905_v59 = vpop.f32.mrf.mxu1  ;;  %v4003_v2 = vunpack.c.l.bf16 %v7738_v45 }
 0x6d1   :  { %v4011_v56 = vadd.f32 %v4001_v0, %v3948_v36  ;;  %v4009_v20 = vadd.f32 %v3999_v16, %v3905_v59  ;;  %6474 = vpow2.f32 %v5504_v41  ;;  %v5503_v40 = vmul.f32 -1.442695, %v4005_v50 }
 0x6d2   :  { %6476 = vpow2.f32 %v5502_v57  ;;  %v3907_v32 = vpop.f32.mrf.mxu1  ;;  %v5505_v33 = vmul.f32 -1.442695, %v4007_v13  ;;  %v3950_v30 = vpop.f32.mrf.mxu0 }
 0x6d3   :  { %v5508_v25 = vmul.f32 -1.442695, %v4011_v56  ;;  %v5506_v31 = vmul.f32 -1.442695, %v4009_v20  ;;  %v4010_v3 = vadd.f32 %v4000_v7, %v3907_v32  ;;  %v4012_v52 = vadd.f32 %v4002_v63, %v3950_v30 }
 0x6d5   :  { %6478 = vpow2.f32 %v5508_v25  ;;  %v5507_v6 = vmul.f32 -1.442695, %v4010_v3  ;;  %v5509_v28 = vmul.f32 -1.442695, %v4012_v52 }
 0x6d6   :  { %6480 = vpow2.f32 %v5506_v31 }
 0x6d7   :  { %6482 = vpow2.f32 %v5503_v40 }
 0x6d8   :  { %6484 = vpow2.f32 %v5505_v33 }
 0x6de   :  { %v6475_v58 = vpop.eup %6474 }
 0x6df   :  { %v6477_v12 = vpop.eup %6476  ;;  %v4048_v29 = vadd.f32 1.0, %v6475_v58 }
 0x6e0   :  { %v4046_v1 = vadd.f32 1.0, %v6477_v12 }
 0x6e1   :  { %6486 = vrcp.f32 %v4048_v29  ;;  %v4017_v29 = vrot.slane %v7738_v45, 4  ;;  %v6235_v45 = vld [vmem:[#allocation9 + $0x100] ss:$20 sps:$4 sm:$0xff]  }
 0x6e2   :  { %v6479_v47 = vpop.eup %6478  ;;  %6488 = vrcp.f32 %v4046_v1 }
 0x6e3   :  { %v6481_v14 = vpop.eup %6480  ;;  %v4052_v4 = vadd.f32 1.0, %v6479_v47  ;;  %v4021_v63 = vunpack.c.l.bf16 %v4017_v29 }
 0x6e4   :  { %v4050_v53 = vadd.f32 1.0, %v6481_v14  ;;  %v6483_v36 = vpop.eup %6482 }
 0x6e5   :  { %v6485_v59 = vpop.eup %6484  ;;  %v4047_v16 = vadd.f32 1.0, %v6483_v36  ;;  %v6241_v36 = vld [vmem:[#allocation9 + $0x10] ss:$20 sps:$4 sm:$0xff]  }
 0x6e6   :  { %v4049_v31 = vadd.f32 1.0, %v6485_v59 }
 0x6ec   :  { %v3987_v51 = vpop.f32.mrf.mxu1 }
 0x6ed   :  { %v4008_v18 = vadd.f32 %v3998_v62, %v3987_v51 }
 0x6ee   :  { %v5906_v60 = vpop.f32.mrf.mxu1  ;;  %v6487_v11 = vpop.eup %6486 }
 0x6ef   :  { %6490 = vtanh.f32 %v4008_v18  ;;  %v6489_v0 = vpop.eup %6488  ;;  %v4074_v57 = vmul.f32 %v6487_v11, %v7510_v44  ;;  %v4016_v44 = vrot.slane %v7128_v17, 4  ;;  %v6234_v60 = vld [vmem:[#allocation9 + $0x128] ss:$20 sps:$4 sm:$0xff]  }
 0x6f0   :  { %6492 = vpow2.f32 %v5507_v6  ;;  %v3990_v8 = vpop.f32.mrf.mxu1 }
 0x6f1   :  { %6494 = vrcp.f32 %v4052_v4  ;;  %v4013_v9 = vadd.f32 %v4003_v2, %v3990_v8  ;;  %v4020_v3 = vunpack.c.l.bf16 %v4016_v44  ;;  %v6236_v2 = vld [vmem:[#allocation9 + $0xd8] ss:$20 sps:$4 sm:$0xff]   ;;  %v6237_v8 = vld [vmem:[#allocation9 + $0xb0] ss:$20 sps:$4 sm:$0xff]  }
 0x6f2   :  { %6496 = vrcp.f32 %v4050_v53  ;;  %v5907_v23 = vpop.f32.mrf.mxu1 }
 0x6f3   :  { %6498 = vtanh.f32 %v4013_v9  ;;  %v6239_v9 = vld [vmem:[#allocation9 + $0x60] ss:$20 sps:$4 sm:$0xff]   ;;  %v6240_v23 = vld [vmem:[#allocation9 + $0x38] ss:$20 sps:$4 sm:$0xff]  }
 0x6f4   :  { %6500 = vpow2.f32 %v5509_v28  ;;  %v6238_v28 = vld [vmem:[#allocation9 + $0x88] ss:$20 sps:$4 sm:$0xff]  }
 0x6f5   :  { %6502 = vrcp.f32 %v4047_v16 }
 0x6fc   :  { %v6491_v37 = vpop.eup %6490 }
 0x6fd   :  { %v6493_v41 = vpop.eup %6492  ;;  %v4072_v56 = vmul.f32 %v6491_v37, %v6489_v0  ;;  %v7739_v0 = vld [vmem:[#allocation28_spill] sm:$0xff] }
 0x6fe   :  { %v6495_v20 = vpop.eup %6494  ;;  %v4051_v50 = vadd.f32 1.0, %v6493_v41  ;;  %v4491_v37 = vunpack.c.l.bf16 %v7739_v0  ;;  %v7740_v41 = vld [vmem:[#allocation27_spill] sm:$0xff] }
 0x6ff   :  { %v6497_v25 = vpop.eup %6496  ;;  %v7573_v43 = vadd.f32 %v4074_v57, %v4072_v56  ;;  %v4075_v32 = vmul.f32 %v6495_v20, %v7514_v61  ;;  %v4489_v56 = vunpack.c.l.bf16 %v7740_v41  ;;  %v4490_v29 = vunpack.c.h.bf16 %v7740_v41 }
 0x700   :  { %v6499_v49 = vpop.eup %6498 }
 0x701   :  { %6504 = vtanh.f32 %v7573_v43  ;;  %v4073_v13 = vmul.f32 %v6499_v49, %v6497_v25  ;;  %v6501_v58 = vpop.eup %6500  ;;  %v7741_v49 = vld [vmem:[#allocation30_spill] sm:$0xff] }
 0x702   :  { %6506 = vrcp.f32 %v4049_v31  ;;  %v4053_v12 = vadd.f32 1.0, %v6501_v58  ;;  %v6503_v40 = vpop.eup %6502 }
 0x703   :  { %v7577_v7 = vadd.f32 %v4075_v32, %v4073_v13  ;;  %6508 = vrcp.f32 %v4051_v50  ;;  %v4496_v50 = vunpack.c.l.bf16 %v7741_v49  ;;  %v7742_v13 = vld [vmem:[#allocation29_spill] sm:$0xff] }
 0x704   :  { %v4494_v32 = vunpack.c.l.bf16 %v7742_v13 }
 0x705   :  { %6510 = vtanh.f32 %v7577_v7 }
 0x706   :  { %6512 = vrcp.f32 %v4053_v12 }
 0x70e   :  { %v6505_v33 = vpop.eup %6504 }
 0x70f   :  { %v4080_v47 = vmul.f32 %v6505_v33, %v6503_v40  ;;  %v6507_v1 = vpop.eup %6506 }
 0x710   :  { %v6509_v30 = vpop.eup %6508 }
 0x711   :  { %v4082_v61 = vsub.f32 %v4080_v47, %v4020_v3  ;;  %v4492_v47 = vunpack.c.h.bf16 %v7739_v0 }
 0x712   :  { %v6511_v14 = vpop.eup %6510 }
 0x713   :  { %v4081_v62 = vmul.f32 %v6511_v14, %v6509_v30  ;;  %v4084_v6 = vmul.f32 %v6507_v1, %v4082_v61  ;;  %v6513_v52 = vpop.eup %6512 }
 0x715   :  { %v4083_v51 = vsub.f32 %v4081_v62, %v4021_v63  ;;  %v4086_v4 = vadd.f32 %v4084_v6, %v4020_v3 }
 0x717   :  { %v4085_v18 = vmul.f32 %v6513_v52, %v4083_v51 }
 0x719   :  { %v4087_v53 = vadd.f32 %v4085_v18, %v4021_v63  ;;  %v4495_v63 = vunpack.c.h.bf16 %v7742_v13 }
 0x71b   :  { %v4088_v17 = vpack.c.bf16 %v4087_v53, %v4086_v4 }
 0x71d   :  { %5705 = vst [vmem:[#allocation11 + $0x28] sm:$0xff] %v4088_v17   ;;  %4395 = vmatmul.mubr.bf16.vlgmr.msra.gmra.mxu0 %v4088_v17  ;;  %4438 = vmatmul.mubr.bf16.vlgmr.msra.gmra.mxu1 %v4088_v17 }
 0x71e   :  { %5909 = vmatpush3.bf16.msra.mxu0 %v6234_v60  ;;  %5924 = vmatprep.mubr.msk.bf16.mxu0 %vm6721_vm0, %v7722_v22 }
 0x71f   :  { %5910 = vmatprep.subr.bf16.mxu0 %v7722_v22  ;;  %4889 = vmatprep.mubr.bf16.mxu1 %v7723_v42 }
 0x722   :  { %5911 = vmatpush3.bf16.msra.mxu0 %v6235_v45  ;;  %v4497_v45 = vunpack.c.h.bf16 %v7741_v49 }
 0x723   :  { %5912 = vmatprep.subr.bf16.mxu0 %v7722_v22 }
 0x726   :  { %5913 = vmatpush3.bf16.msra.mxu0 %v6236_v2  ;;  %v7743_v2 = vld [vmem:[#allocation39_spill] sm:$0xff] }
 0x727   :  { %5914 = vmatprep.subr.bf16.mxu0 %v7722_v22 }
 0x72a   :  { %5915 = vmatpush3.bf16.msra.mxu0 %v6237_v8  ;;  %v4493_v8 = vunpack.c.l.bf16 %v7743_v2 }
 0x72b   :  { %5916 = vmatprep.subr.bf16.mxu0 %v7722_v22 }
 0x72e   :  { %5917 = vmatpush3.bf16.msra.mxu0 %v6238_v28 }
 0x72f   :  { %5918 = vmatprep.subr.bf16.mxu0 %v7722_v22 }
 0x732   :  { %5919 = vmatpush3.bf16.msra.mxu0 %v6239_v9 }
 0x733   :  { %5920 = vmatprep.subr.bf16.mxu0 %v7722_v22 }
 0x736   :  { %5921 = vmatpush3.bf16.msra.mxu0 %v6240_v23 }
 0x737   :  { %5922 = vmatprep.subr.bf16.mxu0 %v7722_v22 }
 0x73a   :  { %5923 = vmatpush3.bf16.msra.mxu0 %v6241_v36 }
 0x73b   :  { %4900 = vmatprep.subr.bf16.mxu0 %v7450_v15  ;;  %v6242_v15 = vld [vmem:[#allocation9 + $0x118] ss:$20 sps:$4 sm:$0xff]  }
 0x73d   :  { %5925 = vmatmul.mubr.bf16.vlgmr.msra.gmra.mxu0 %v4088_v17 }
 0x73e   :  { %4901 = vmatpush1.bf16.msra.mxu0 %v7452_v48  ;;  %4932 = vmatprep.mubr.bf16.mxu0 %v7723_v42  ;;  %v6244_v42 = vld [vmem:[#allocation9 + $0x11c] ss:$20 sps:$4 sm:$0xff]   ;;  %v6247_v48 = vld [vmem:[#allocation9 + $0xf4] ss:$20 sps:$4 sm:$0xff]  }
 0x73f   :  { %4902 = vmatprep.subr.bf16.mxu0 %v7456_v24  ;;  %4857 = vmatprep.subr.bf16.mxu1 %v6244_v42  ;;  %v6245_v24 = vld [vmem:[#allocation9 + $0xf0] ss:$20 sps:$4 sm:$0xff]  }
 0x740   :  { %4858 = vmatpush1.bf16.msra.mxu1 %v6242_v15 }
 0x741   :  { %4859 = vmatprep.subr.bf16.mxu1 %v6247_v48 }
 0x742   :  { %4903 = vmatpush1.bf16.msra.mxu0 %v7458_v35  ;;  %v6250_v35 = vld [vmem:[#allocation9 + $0xcc] ss:$20 sps:$4 sm:$0xff]  }
 0x743   :  { %4904 = vmatprep.subr.bf16.mxu0 %v7462_v26  ;;  %v6248_v26 = vld [vmem:[#allocation9 + $0xc8] ss:$20 sps:$4 sm:$0xff]  }
 0x744   :  { %4860 = vmatpush1.bf16.msra.mxu1 %v6245_v24  ;;  %v7744_v24 = vld [vmem:[#allocation40_spill] sm:$0xff] }
 0x745   :  { %4861 = vmatprep.subr.bf16.mxu1 %v6250_v35  ;;  %v4498_v35 = vunpack.c.l.bf16 %v7744_v24 }
 0x746   :  { %4905 = vmatpush1.bf16.msra.mxu0 %v7464_v34  ;;  %v6251_v34 = vld [vmem:[#allocation9 + $0xa0] ss:$20 sps:$4 sm:$0xff]  }
 0x747   :  { %4906 = vmatprep.subr.bf16.mxu0 %v7467_v38  ;;  %v6253_v38 = vld [vmem:[#allocation9 + $0xa4] ss:$20 sps:$4 sm:$0xff]  }
 0x748   :  { %4862 = vmatpush1.bf16.msra.mxu1 %v6248_v26 }
 0x749   :  { %4863 = vmatprep.subr.bf16.mxu1 %v6253_v38 }
 0x74a   :  { %4907 = vmatpush1.bf16.msra.mxu0 %v7470_v39  ;;  %v6256_v39 = vld [vmem:[#allocation9 + $0x7c] ss:$20 sps:$4 sm:$0xff]  }
 0x74b   :  { %4908 = vmatprep.subr.bf16.mxu0 %v7473_v54  ;;  %v6254_v54 = vld [vmem:[#allocation9 + $0x78] ss:$20 sps:$4 sm:$0xff]  }
 0x74c   :  { %4864 = vmatpush1.bf16.msra.mxu1 %v6251_v34 }
 0x74d   :  { %4865 = vmatprep.subr.bf16.mxu1 %v6256_v39 }
 0x74e   :  { %4909 = vmatpush1.bf16.msra.mxu0 %v7476_v10  ;;  %v6259_v10 = vld [vmem:[#allocation9 + $0x54] ss:$20 sps:$4 sm:$0xff]  }
 0x74f   :  { %4910 = vmatprep.subr.bf16.mxu0 %v7479_v21  ;;  %v6257_v21 = vld [vmem:[#allocation9 + $0x50] ss:$20 sps:$4 sm:$0xff]  }
 0x750   :  { %4866 = vmatpush1.bf16.msra.mxu1 %v6254_v54 }
 0x751   :  { %4867 = vmatprep.subr.bf16.mxu1 %v6259_v10 }
 0x752   :  { %4911 = vmatpush1.bf16.msra.mxu0 %v7482_v55  ;;  %v6262_v55 = vld [vmem:[#allocation9 + $0x2c] ss:$20 sps:$4 sm:$0xff]  }
 0x753   :  { %4912 = vmatprep.subr.bf16.mxu0 %v7485_v27  ;;  %v6260_v27 = vld [vmem:[#allocation9 + $0x28] ss:$20 sps:$4 sm:$0xff]  }
 0x754   :  { %4868 = vmatpush1.bf16.msra.mxu1 %v6257_v21 }
 0x755   :  { %4869 = vmatprep.subr.bf16.mxu1 %v6262_v55 }
 0x756   :  { %4913 = vmatpush1.bf16.msra.mxu0 %v7488_v46  ;;  %v6265_v46 = vld [vmem:[#allocation9 + $0x4] ss:$20 sps:$4 sm:$0xff]  }
 0x757   :  { %4914 = vmatprep.subr.bf16.mxu0 %v7491_v5  ;;  %v6263_v5 = vld [vmem:[#allocation9] ss:$20 sps:$4 sm:$0xff]  }
 0x758   :  { %4870 = vmatpush1.bf16.msra.mxu1 %v6260_v27 }
 0x759   :  { %4871 = vmatprep.subr.bf16.mxu1 %v6265_v46 }
 0x75a   :  { %4915 = vmatpush1.bf16.msra.mxu0 %v7494_v19 }
 0x75c   :  { %4872 = vmatpush1.bf16.msra.mxu1 %v6263_v5 }
 0x75d   :  { %5928 = vmatprep.subr.bf16.mxu1 %v7722_v22 }
 0x7dd   :  { %v4396_v19 = vpop.f32.mrf.mxu0  ;;  %v4439_v59 = vpop.f32.mrf.mxu1 }
 0x7de   :  { %v4501_v57 = vadd.f32 %v4491_v37, %v4439_v59  ;;  %v4499_v20 = vadd.f32 %v4489_v56, %v4396_v19 }
 0x7df   :  { %v4441_v11 = vpop.f32.mrf.mxu1  ;;  %v4398_v16 = vpop.f32.mrf.mxu0 }
 0x7e0   :  { %v5554_v58 = vmul.f32 -1.442695, %v4501_v57  ;;  %v5552_v44 = vmul.f32 -1.442695, %v4499_v20  ;;  %v4500_v1 = vadd.f32 %v4490_v29, %v4398_v16  ;;  %v4502_v30 = vadd.f32 %v4492_v47, %v4441_v11 }
 0x7e1   :  { %v4443_v25 = vpop.f32.mrf.mxu1  ;;  %v4400_v31 = vpop.f32.mrf.mxu0 }
 0x7e2   :  { %v4506_v12 = vadd.f32 %v4496_v50, %v4443_v25  ;;  %v4504_v40 = vadd.f32 %v4494_v32, %v4400_v31  ;;  %6514 = vpow2.f32 %v5554_v58  ;;  %v5553_v6 = vmul.f32 -1.442695, %v4500_v1 }
 0x7e3   :  { %6516 = vpow2.f32 %v5552_v44  ;;  %v4402_v61 = vpop.f32.mrf.mxu0  ;;  %v5555_v51 = vmul.f32 -1.442695, %v4502_v30  ;;  %v4445_v60 = vpop.f32.mrf.mxu1  ;;  %v4512_v58 = vrot.slane %v7744_v24, 4 }
 0x7e4   :  { %v5558_v33 = vmul.f32 -1.442695, %v4506_v12  ;;  %v5556_v3 = vmul.f32 -1.442695, %v4504_v40  ;;  %v4505_v4 = vadd.f32 %v4495_v63, %v4402_v61  ;;  %v4507_v36 = vadd.f32 %v4497_v45, %v4445_v60  ;;  %v6272_v60 = vld [vmem:[#allocation9 + $0x38] ss:$20 sps:$4 sm:$0xff]  }
 0x7e6   :  { %6518 = vpow2.f32 %v5558_v33  ;;  %v5557_v28 = vmul.f32 -1.442695, %v4505_v4  ;;  %v5559_v34 = vmul.f32 -1.442695, %v4507_v36  ;;  %v6268_v4 = vld [vmem:[#allocation9 + $0xd8] ss:$20 sps:$4 sm:$0xff]  }
 0x7e7   :  { %6520 = vpow2.f32 %v5556_v3  ;;  %v4516_v3 = vunpack.c.l.bf16 %v4512_v58  ;;  %v7746_v36 = vld [vmem:[#allocation31_spill] sm:$0xff]  ;;  %v7749_v58 = vld [vmem:[#allocation41_spill] sm:$0xff] }
 0x7e8   :  { %6522 = vpow2.f32 %v5553_v6 }
 0x7e9   :  { %6524 = vpow2.f32 %v5555_v51  ;;  %v6267_v51 = vld [vmem:[#allocation9 + $0x100] ss:$20 sps:$4 sm:$0xff]  }
 0x7ef   :  { %v6515_v14 = vpop.eup %6514 }
 0x7f0   :  { %v6517_v62 = vpop.eup %6516  ;;  %v4543_v52 = vadd.f32 1.0, %v6515_v14 }
 0x7f1   :  { %v4541_v53 = vadd.f32 1.0, %v6517_v62  ;;  %v6266_v62 = vld [vmem:[#allocation9 + $0x128] ss:$20 sps:$4 sm:$0xff]  }
 0x7f2   :  { %6526 = vrcp.f32 %v4543_v52  ;;  %v6269_v52 = vld [vmem:[#allocation9 + $0xb0] ss:$20 sps:$4 sm:$0xff]  }
 0x7f3   :  { %v6519_v18 = vpop.eup %6518  ;;  %6528 = vrcp.f32 %v4541_v53  ;;  %v6271_v53 = vld [vmem:[#allocation9 + $0x60] ss:$20 sps:$4 sm:$0xff]  }
 0x7f4   :  { %v6521_v17 = vpop.eup %6520  ;;  %v4547_v23 = vadd.f32 1.0, %v6519_v18  ;;  %v6270_v18 = vld [vmem:[#allocation9 + $0x88] ss:$20 sps:$4 sm:$0xff]  }
 0x7f5   :  { %v4545_v15 = vadd.f32 1.0, %v6521_v17  ;;  %v6523_v54 = vpop.eup %6522  ;;  %v6273_v17 = vld [vmem:[#allocation9 + $0x10] ss:$20 sps:$4 sm:$0xff]  }
 0x7f6   :  { %v6525_v10 = vpop.eup %6524  ;;  %v4542_v46 = vadd.f32 1.0, %v6523_v54 }
 0x7f7   :  { %v4544_v37 = vadd.f32 1.0, %v6525_v10 }
 0x7fd   :  { %v4482_v9 = vpop.f32.mrf.mxu0 }
 0x7fe   :  { %v4503_v42 = vadd.f32 %v4493_v8, %v4482_v9 }
 0x7ff   :  { %v5926_v48 = vpop.f32.mrf.mxu0  ;;  %v6527_v21 = vpop.eup %6526 }
 0x800   :  { %6530 = vtanh.f32 %v4503_v42  ;;  %v6529_v55 = vpop.eup %6528  ;;  %v4569_v59 = vmul.f32 %v6527_v21, %v7573_v43  ;;  %v4511_v43 = vrot.slane %v7743_v2, 4  ;;  %v4984_v42 = vunpack.c.l.bf16 %v7746_v36 }
 0x801   :  { %6532 = vpow2.f32 %v5557_v28  ;;  %v4485_v26 = vpop.f32.mrf.mxu0  ;;  %v7745_v28 = vld [vmem:[#allocation32_spill] sm:$0xff] }
 0x802   :  { %6534 = vrcp.f32 %v4547_v23  ;;  %v4508_v38 = vadd.f32 %v4498_v35, %v4485_v26  ;;  %v4515_v32 = vunpack.c.l.bf16 %v4511_v43  ;;  %v4986_v9 = vunpack.c.l.bf16 %v7745_v28  ;;  %v7747_v26 = vld [vmem:[#allocation34_spill] sm:$0xff] }
 0x803   :  { %6536 = vrcp.f32 %v4545_v15  ;;  %v5927_v39 = vpop.f32.mrf.mxu0 }
 0x804   :  { %6538 = vtanh.f32 %v4508_v38  ;;  %v7748_v38 = vld [vmem:[#allocation33_spill] sm:$0xff] }
 0x805   :  { %6540 = vpow2.f32 %v5559_v34  ;;  %v4991_v34 = vunpack.c.l.bf16 %v7747_v26  ;;  %v4989_v39 = vunpack.c.l.bf16 %v7748_v38 }
 0x806   :  { %6542 = vrcp.f32 %v4542_v46  ;;  %v4985_v46 = vunpack.c.h.bf16 %v7746_v36 }
 0x80d   :  { %v6531_v27 = vpop.eup %6530 }
 0x80e   :  { %v6533_v5 = vpop.eup %6532  ;;  %v4567_v19 = vmul.f32 %v6531_v27, %v6529_v55 }
 0x80f   :  { %v6535_v11 = vpop.eup %6534  ;;  %v4546_v56 = vadd.f32 1.0, %v6533_v5  ;;  %v4987_v5 = vunpack.c.h.bf16 %v7745_v28 }
 0x810   :  { %v6537_v0 = vpop.eup %6536  ;;  %v7621_v16 = vadd.f32 %v4569_v59, %v4567_v19  ;;  %v4570_v20 = vmul.f32 %v6535_v11, %v7577_v7 }
 0x811   :  { %v6539_v41 = vpop.eup %6538 }
 0x812   :  { %6544 = vtanh.f32 %v7621_v16  ;;  %v4568_v57 = vmul.f32 %v6539_v41, %v6537_v0  ;;  %v6541_v25 = vpop.eup %6540 }
 0x813   :  { %6546 = vrcp.f32 %v4544_v37  ;;  %v4548_v49 = vadd.f32 1.0, %v6541_v25  ;;  %v6543_v50 = vpop.eup %6542  ;;  %v4990_v37 = vunpack.c.h.bf16 %v7748_v38 }
 0x814   :  { %v7625_v31 = vadd.f32 %v4570_v20, %v4568_v57  ;;  %6548 = vrcp.f32 %v4546_v56 }
 0x816   :  { %6550 = vtanh.f32 %v7625_v31 }
 0x817   :  { %6552 = vrcp.f32 %v4548_v49 }
 0x81f   :  { %v6545_v13 = vpop.eup %6544 }
 0x820   :  { %v4575_v12 = vmul.f32 %v6545_v13, %v6543_v50  ;;  %v6547_v44 = vpop.eup %6546 }
 0x821   :  { %v6549_v40 = vpop.eup %6548 }
 0x822   :  { %v4577_v7 = vsub.f32 %v4575_v12, %v4515_v32  ;;  %v4988_v12 = vunpack.c.l.bf16 %v7749_v58 }
 0x823   :  { %v6551_v33 = vpop.eup %6550 }
 0x824   :  { %v4576_v29 = vmul.f32 %v6551_v33, %v6549_v40  ;;  %v4579_v47 = vmul.f32 %v6547_v44, %v4577_v7  ;;  %v6553_v61 = vpop.eup %6552 }
 0x826   :  { %v4578_v1 = vsub.f32 %v4576_v29, %v4516_v3  ;;  %v4581_v30 = vadd.f32 %v4579_v47, %v4515_v32  ;;  %v4992_v32 = vunpack.c.h.bf16 %v7747_v26 }
 0x828   :  { %v4580_v14 = vmul.f32 %v6553_v61, %v4578_v1  ;;  %v7750_v1 = vld [vmem:[#allocation42_spill] sm:$0xff] }
 0x82a   :  { %v4582_v63 = vadd.f32 %v4580_v14, %v4516_v3 }
 0x82c   :  { %v4583_v6 = vpack.c.bf16 %v4582_v63, %v4581_v30  ;;  %v4993_v30 = vunpack.c.l.bf16 %v7750_v1 }
 0x82e   :  { %5710 = vst [vmem:[#allocation11 + $0x30] sm:$0xff] %v4583_v6   ;;  %4890 = vmatmul.mubr.bf16.vlgmr.msra.gmra.mxu1 %v4583_v6  ;;  %4933 = vmatmul.mubr.bf16.vlgmr.msra.gmra.mxu0 %v4583_v6 }
 0x82f   :  { %5929 = vmatpush3.bf16.msra.mxu1 %v6266_v62  ;;  %5944 = vmatprep.mubr.msk.bf16.mxu1 %vm6721_vm0, %v7722_v22 }
 0x830   :  { %5930 = vmatprep.subr.bf16.mxu1 %v7722_v22 }
 0x833   :  { %5931 = vmatpush3.bf16.msra.mxu1 %v6267_v51 }
 0x834   :  { %5932 = vmatprep.subr.bf16.mxu1 %v7722_v22 }
 0x837   :  { %5933 = vmatpush3.bf16.msra.mxu1 %v6268_v4 }
 0x838   :  { %5934 = vmatprep.subr.bf16.mxu1 %v7722_v22 }
 0x83b   :  { %5935 = vmatpush3.bf16.msra.mxu1 %v6269_v52 }
 0x83c   :  { %5936 = vmatprep.subr.bf16.mxu1 %v7722_v22 }
 0x83f   :  { %5937 = vmatpush3.bf16.msra.mxu1 %v6270_v18 }
 0x840   :  { %5938 = vmatprep.subr.bf16.mxu1 %v7722_v22 }
 0x843   :  { %5939 = vmatpush3.bf16.msra.mxu1 %v6271_v53 }
 0x844   :  { %5940 = vmatprep.subr.bf16.mxu1 %v7722_v22 }
 0x847   :  { %5941 = vmatpush3.bf16.msra.mxu1 %v6272_v60 }
 0x848   :  { %5942 = vmatprep.subr.bf16.mxu1 %v7722_v22 }
 0x84b   :  { %5943 = vmatpush3.bf16.msra.mxu1 %v6273_v17 }
 0x84e   :  { %5945 = vmatmul.mubr.bf16.vlgmr.msra.gmra.mxu1 %v4583_v6 }
 0x8ee   :  { %v4891_v45 = vpop.f32.mrf.mxu1  ;;  %v4934_v2 = vpop.f32.mrf.mxu0 }
 0x8ef   :  { %v4996_v15 = vadd.f32 %v4986_v9, %v4934_v2  ;;  %v4994_v48 = vadd.f32 %v4984_v42, %v4891_v45 }
 0x8f0   :  { %v4936_v8 = vpop.f32.mrf.mxu0  ;;  %v4893_v23 = vpop.f32.mrf.mxu1 }
 0x8f1   :  { %v5604_v54 = vmul.f32 -1.442695, %v4996_v15  ;;  %v5602_v10 = vmul.f32 -1.442695, %v4994_v48  ;;  %v4995_v19 = vadd.f32 %v4985_v46, %v4893_v23  ;;  %v4997_v59 = vadd.f32 %v4987_v5, %v4936_v8 }
 0x8f2   :  { %v4938_v24 = vpop.f32.mrf.mxu0  ;;  %v4895_v35 = vpop.f32.mrf.mxu1 }
 0x8f3   :  { %v5001_v22 = vadd.f32 %v4991_v34, %v4938_v24  ;;  %v4999_v21 = vadd.f32 %v4989_v39, %v4895_v35  ;;  %6554 = vpow2.f32 %v5604_v54  ;;  %v5603_v56 = vmul.f32 -1.442695, %v4995_v19 }
 0x8f4   :  { %6556 = vpow2.f32 %v5602_v10  ;;  %v4897_v11 = vpop.f32.mrf.mxu1  ;;  %v5605_v57 = vmul.f32 -1.442695, %v4997_v59  ;;  %v4940_v50 = vpop.f32.mrf.mxu0  ;;  %v5007_v39 = vrot.slane %v7750_v1, 4 }
 0x8f5   :  { %v5608_v55 = vmul.f32 -1.442695, %v5001_v22  ;;  %v5606_v27 = vmul.f32 -1.442695, %v4999_v21  ;;  %v5000_v20 = vadd.f32 %v4990_v37, %v4897_v11  ;;  %v5002_v33 = vadd.f32 %v4992_v32, %v4940_v50 }
 0x8f7   :  { %6558 = vpow2.f32 %v5608_v55  ;;  %v5607_v44 = vmul.f32 -1.442695, %v5000_v20  ;;  %v5609_v14 = vmul.f32 -1.442695, %v5002_v33 }
 0x8f8   :  { %6560 = vpow2.f32 %v5606_v27 }
 0x8f9   :  { %6562 = vpow2.f32 %v5603_v56 }
 0x8fa   :  { %6564 = vpow2.f32 %v5605_v57 }
 0x900   :  { %v6555_v0 = vpop.eup %6554 }
 0x901   :  { %v6557_v41 = vpop.eup %6556  ;;  %v5038_v25 = vadd.f32 1.0, %v6555_v0 }
 0x902   :  { %v5036_v43 = vadd.f32 1.0, %v6557_v41 }
 0x903   :  { %6566 = vrcp.f32 %v5038_v25 }
 0x904   :  { %v6559_v49 = vpop.eup %6558  ;;  %6568 = vrcp.f32 %v5036_v43 }
 0x905   :  { %v6561_v13 = vpop.eup %6560  ;;  %v5042_v7 = vadd.f32 1.0, %v6559_v49 }
 0x906   :  { %v5040_v29 = vadd.f32 1.0, %v6561_v13  ;;  %v6563_v6 = vpop.eup %6562 }
 0x907   :  { %v6565_v51 = vpop.eup %6564  ;;  %v5037_v53 = vadd.f32 1.0, %v6563_v6 }
 0x908   :  { %v5039_v28 = vadd.f32 1.0, %v6565_v51 }
 0x90e   :  { %v4977_v40 = vpop.f32.mrf.mxu1 }
 0x90f   :  { %v4998_v3 = vadd.f32 %v4988_v12, %v4977_v40 }
 0x910   :  { %v5946_v47 = vpop.f32.mrf.mxu1  ;;  %v6567_v4 = vpop.eup %6566 }
 0x911   :  { %6570 = vtanh.f32 %v4998_v3  ;;  %v6569_v52 = vpop.eup %6568  ;;  %v5064_v45 = vmul.f32 %v6567_v4, %v7621_v16  ;;  %v5006_v16 = vrot.slane %v7749_v58, 4 }
 0x912   :  { %6572 = vpow2.f32 %v5607_v44  ;;  %v4980_v61 = vpop.f32.mrf.mxu1 }
 0x913   :  { %6574 = vrcp.f32 %v5042_v7  ;;  %v5003_v63 = vadd.f32 %v4993_v30, %v4980_v61  ;;  %v5010_v38 = vunpack.c.l.bf16 %v5006_v16 }
 0x914   :  { %6576 = vrcp.f32 %v5040_v29  ;;  %v5947_v62 = vpop.f32.mrf.mxu1 }
 0x915   :  { %6578 = vtanh.f32 %v5003_v63 }
 0x916   :  { %6580 = vpow2.f32 %v5609_v14 }
 0x917   :  { %6582 = vrcp.f32 %v5037_v53 }
 0x91e   :  { %v6571_v18 = vpop.eup %6570 }
 0x91f   :  { %v6573_v60 = vpop.eup %6572  ;;  %v5062_v17 = vmul.f32 %v6571_v18, %v6569_v52 }
 0x920   :  { %v6575_v2 = vpop.eup %6574  ;;  %v5041_v36 = vadd.f32 1.0, %v6573_v60 }
 0x921   :  { %v6577_v8 = vpop.eup %6576  ;;  %v5066_v9 = vadd.f32 %v5064_v45, %v5062_v17  ;;  %v5065_v15 = vmul.f32 %v6575_v2, %v7625_v31  ;;  %v5011_v31 = vunpack.c.l.bf16 %v5007_v39 }
 0x922   :  { %v6579_v23 = vpop.eup %6578 }
 0x923   :  { %6584 = vtanh.f32 %v5066_v9  ;;  %v5063_v42 = vmul.f32 %v6579_v23, %v6577_v8  ;;  %v6581_v48 = vpop.eup %6580 }
 0x924   :  { %6586 = vrcp.f32 %v5039_v28  ;;  %v5043_v35 = vadd.f32 1.0, %v6581_v48  ;;  %v6583_v26 = vpop.eup %6582 }
 0x925   :  { %v5067_v24 = vadd.f32 %v5065_v15, %v5063_v42  ;;  %6588 = vrcp.f32 %v5041_v36 }
 0x927   :  { %6590 = vtanh.f32 %v5067_v24 }
 0x928   :  { %6592 = vrcp.f32 %v5043_v35 }
 0x930   :  { %v6585_v34 = vpop.eup %6584 }
 0x931   :  { %v5070_v54 = vmul.f32 %v6585_v34, %v6583_v26  ;;  %v6587_v22 = vpop.eup %6586 }
 0x932   :  { %v6589_v10 = vpop.eup %6588 }
 0x933   :  { %v5072_v21 = vsub.f32 %v5070_v54, %v5010_v38 }
 0x934   :  { %v6591_v55 = vpop.eup %6590 }
 0x935   :  { %v5071_v27 = vmul.f32 %v6591_v55, %v6589_v10  ;;  %v5074_v46 = vmul.f32 %v6587_v22, %v5072_v21  ;;  %v6593_v59 = vpop.eup %6592 }
 0x937   :  { %v5073_v5 = vsub.f32 %v5071_v27, %v5011_v31  ;;  %v5076_v19 = vadd.f32 %v5074_v46, %v5010_v38 }
 0x939   :  { %v5075_v11 = vmul.f32 %v6593_v59, %v5073_v5 }
 0x93b   :  { %v5077_v0 = vadd.f32 %v5075_v11, %v5011_v31 }
 0x93d   :  { %v5714_v37 = vpack.c.bf16 %v5077_v0, %v5076_v19 }
 0x93f   :  { %5715 = vst [vmem:[#allocation11 + $0x38] sm:$0xff] %v5714_v37  }
 0x940   :  { %6692 = shalt.err (!%p6689_p10)
}
 0x941   :  { %5100 = dma.vmem_to_hbm [thread:$0]  %s5095_s3, 1024, %s7663_s4, [#allocation5], %s6713_s25, %s6713_s25, %s6714_s26  }
 0x942   :  { %6707 = dma.done.wait [#allocation5], 1024  }
 0x943   :  { %6708 = vsyncadd [#allocation5], 4294966272 }
 0x944   :  { %5104 = vsyncpa [#allocation4], 1 }
 0x945   :  { %5105 = vsyncpa [#allocation7], 1 }
 0x946   :  { %5106 = vsyncpa [#allocation10], 1 }
 0x947   :  { %5107 = vsyncpa [#allocation5], 1 }

</bundles_post_ra>
